<compile_context>
chip_gen: v6e
topology: v6e:2x2x1
jax: 0.10.0
libtpu: 0.0.40
codegen_flags: <defaults>
</compile_context>

<pallas_src>
import functools
import math

import jax
import jax.numpy as jnp
import numpy as np
from jax.experimental import pallas as pl
from jax.experimental.pallas import tpu as pltpu


# ----------------------------------------------------------------------------- helpers
def _layer_norm(v, w, b, eps=1e-5):
    mu = jnp.mean(v, axis=-1, keepdims=True)
    var = jnp.mean((v - mu) ** 2, axis=-1, keepdims=True)
    return (v - mu) * jax.lax.rsqrt(var + eps) * w + b


def _gelu_tanh(v):
    # TODO(synk): torch.nn.GELU() is the exact-erf form; the tanh approximation
    # (~1e-3 max abs deviation) keeps the nonlinearity on the EUP slot.
    c = 0.7978845608028654  # sqrt(2/pi)
    return 0.5 * v * (1.0 + jnp.tanh(c * (v + 0.044715 * v * v * v)))


# ----------------------------------------------------------------------------- kernel
def fused_model_kernel(
    feats_ref, ew_ref, eb_ref, hsum_ref, hexp_ref,
    ln1w_ref, ln1b_ref, wqkv_ref, bqkv_ref, wo_ref, bo_ref,
    ln2w_ref, ln2b_ref, w1_ref, b1_ref, w2_ref, b2_ref,
    flnw_ref, flnb_ref, wt_ref, wn_ref, ab_ref,
    out_ref, tok_ref,
    *, seq_len, tile_nodes, hidden, n_layers,
):
    """grid = (node_tiles, n_layers); tok_ref is a VMEM scratch (S*TN, H) residual stream,
    POSITION-major (row j*TN + n <=> node n, hop-token j), carried across the layer axis."""
    l = pl.program_id(1)
    S, TN, H = seq_len, tile_nodes, hidden

    # ---- layer-0 prologue: hop-token embedding (att_embeddings_nope) ----
    @pl.when(l == 0)
    def _():
        for j in range(S):
            tok_ref[j * TN:(j + 1) * TN, :] = (
                jnp.dot(feats_ref[j], ew_ref[...],
                        preferred_element_type=jnp.float32) + eb_ref[...])

    x = tok_ref[...]                                          # (S*TN, H) f32

    # ---- pre-LN multi-head self-attention (dropouts are eval-mode identity) ----
    y = _layer_norm(x, ln1w_ref[0], ln1b_ref[0]).astype(jnp.bfloat16)
    qkv = (jnp.dot(y, wqkv_ref[0], preferred_element_type=jnp.float32)
           + bqkv_ref[0])                                     # (S*TN, 3H); q pre-scaled
    qs = [qkv[i * TN:(i + 1) * TN, 0 * H:1 * H] for i in range(S)]
    ks = [qkv[j * TN:(j + 1) * TN, 1 * H:2 * H] for j in range(S)]
    vs = [qkv[j * TN:(j + 1) * TN, 2 * H:3 * H] for j in range(S)]

    # per-node (query-pos i, key-pos j) products; one MXU matmul sums each head's dk chunk
    prods = jnp.concatenate(
        [qs[i] * ks[j] for i in range(S) for j in range(S)], axis=0)   # (S*S*TN, H)
    scores = jnp.dot(prods.astype(jnp.bfloat16), hsum_ref[...],
                     preferred_element_type=jnp.float32)               # (S*S*TN, nh)

    def blk(a, i, j):
        return a[(i * S + j) * TN:(i * S + j + 1) * TN, :]

    probs = []                                                # (TN, nh) per (i, j)
    for i in range(S):
        sij = [blk(scores, i, j) for j in range(S)]
        m = sij[0]
        for j in range(1, S):
            m = jnp.maximum(m, sij[j])
        eij = [jnp.exp(s - m) for s in sij]
        den = eij[0]
        for j in range(1, S):
            den = den + eij[j]
        inv = pl.reciprocal(den, approx=True)
        probs.extend([e * inv for e in eij])

    # expand per-head probs to per-channel with one MXU matmul, then weight V
    pcat = jnp.concatenate(probs, axis=0).astype(jnp.bfloat16)         # (S*S*TN, nh)
    pfull = jnp.dot(pcat, hexp_ref[...], preferred_element_type=jnp.float32)
    ctx_blocks = []
    for i in range(S):
        acc = blk(pfull, i, 0) * vs[0]
        for j in range(1, S):
            acc = acc + blk(pfull, i, j) * vs[j]
        ctx_blocks.append(acc)
    ctx = jnp.concatenate(ctx_blocks, axis=0).astype(jnp.bfloat16)     # (S*TN, H)
    x = x + jnp.dot(ctx, wo_ref[0], preferred_element_type=jnp.float32) + bo_ref[0]

    # ---- pre-LN FFN ----
    y2 = _layer_norm(x, ln2w_ref[0], ln2b_ref[0]).astype(jnp.bfloat16)
    h1 = jnp.dot(y2, w1_ref[0], preferred_element_type=jnp.float32) + b1_ref[0]
    h1 = _gelu_tanh(h1).astype(jnp.bfloat16)
    x = x + jnp.dot(h1, w2_ref[0], preferred_element_type=jnp.float32) + b2_ref[0]
    tok_ref[...] = x

    # ---- last-layer epilogue: final LayerNorm + hop-attention readout (agg='add') ----
    @pl.when(l == n_layers - 1)
    def _():
        o = _layer_norm(x, flnw_ref[...], flnb_ref[...])               # (S*TN, H)
        node = o[0:TN, :]                                              # hop-0 tokens
        nbrs = [o[j * TN:(j + 1) * TN, :] for j in range(1, S)]
        aw = jnp.sum(node * wt_ref[...], axis=-1, keepdims=True)       # (TN, 1)
        sj = [aw + jnp.sum(nb * wn_ref[...], axis=-1, keepdims=True) + ab_ref[...]
              for nb in nbrs]
        m = sj[0]
        for j in range(1, S - 1):
            m = jnp.maximum(m, sj[j])
        ej = [jnp.exp(s - m) for s in sj]
        den = ej[0]
        for j in range(1, S - 1):
            den = den + ej[j]
        inv = pl.reciprocal(den, approx=True)
        res = node
        for j in range(S - 1):
            res = res + (ej[j] * inv) * nbrs[j]
        out_ref[...] = res


# ----------------------------------------------------------------------------- wrapper
def run_model(feats_pm, params, *, seq_len, tile_nodes, hidden, n_layers):
    S, N_pad, din = feats_pm.shape
    assert S == seq_len and N_pad % tile_nodes == 0
    TN, H = tile_nodes, hidden
    st = params["stack"]

    const_args = [params["embed_w"], params["embed_b"],
                  params["head_sum"], params["head_expand"]]
    layer_args = [st["ln1_w"], st["ln1_b"], st["wqkv"], st["bqkv"], st["wo"], st["bo"],
                  st["ln2_w"], st["ln2_b"], st["w1"], st["b1"], st["w2"], st["b2"]]
    tail_args = [params["final_ln_w"], params["final_ln_b"],
                 params["attn_wt"], params["attn_wn"], params["attn_b"]]

    def const_spec(a):
        return pl.BlockSpec(a.shape, lambda i, l, nd=a.ndim: (0,) * nd)

    def layer_spec(a):
        return pl.BlockSpec((1,) + a.shape[1:],
                            lambda i, l, nd=a.ndim: (l,) + (0,) * (nd - 1))

    kernel = functools.partial(fused_model_kernel, seq_len=S, tile_nodes=TN,
                               hidden=H, n_layers=n_layers)
    return pl.pallas_call(
        kernel,
        out_shape=jax.ShapeDtypeStruct((N_pad, H), jnp.float32),
        grid=(N_pad // TN, n_layers),
        in_specs=([pl.BlockSpec((S, TN, din), lambda i, l: (0, i, 0))]
                  + [const_spec(a) for a in const_args]
                  + [layer_spec(a) for a in layer_args]
                  + [const_spec(a) for a in tail_args]),
        out_specs=pl.BlockSpec((TN, H), lambda i, l: (i, 0)),
        scratch_shapes=[pltpu.VMEM((S * TN, H), jnp.float32)],
        compiler_params=pltpu.CompilerParams(
            dimension_semantics=("parallel", "arbitrary")),
    )(feats_pm, *const_args, *layer_args, *tail_args)


# ----------------------------------------------------------------------------- graph glue
# TODO(synk): calculate_gcn_laplacian / construct_features_sparse are not defined in the
# reference file; a standard GCN-normalized adjacency + hop2token construction is used.
def gcn_laplacian(adj):
    n = adj.shape[0]
    a = adj + jnp.eye(n, dtype=adj.dtype)
    d_inv_sqrt = 1.0 / jnp.sqrt(jnp.sum(a, axis=1))
    return a * d_inv_sqrt[:, None] * d_inv_sqrt[None, :]


def construct_features(lap, x, hops):
    feats = [x]
    cur = x
    for _ in range(hops):
        cur = lap @ cur
        feats.append(cur)
    return jnp.stack(feats, axis=1)  # (N, hops+1, input_dim)


# ----------------------------------------------------------------------------- params
def build_params(key, input_dim, hidden_dim, num_heads, n_layers):
    std = 0.02 / math.sqrt(n_layers)
    ffn_dim = 2 * hidden_dim
    dk = hidden_dim // num_heads
    scale = float(dk) ** -0.5

    def linear(k, in_d, out_d):
        # torch layout (out, in) init, bias zeroed (per init_params); returned as (in, out)
        w_t = std * jax.random.normal(k, (out_d, in_d), jnp.float32)
        return w_t.T, jnp.zeros((out_d,), jnp.float32)

    keys = jax.random.split(key, 2 + 6 * n_layers)
    ki = iter(keys)

    params = {}
    ew, eb = linear(next(ki), input_dim, hidden_dim)
    params["embed_w"] = ew.astype(jnp.bfloat16)
    params["embed_b"] = eb.reshape(1, hidden_dim)

    # constant 0/1 matrices: per-head dk-sum and head->channel expansion
    hs = np.zeros((hidden_dim, num_heads), np.float32)
    for h in range(num_heads):
        hs[h * dk:(h + 1) * dk, h] = 1.0
    params["head_sum"] = jnp.asarray(hs, jnp.bfloat16)          # (H, nh)
    params["head_expand"] = jnp.asarray(hs.T, jnp.bfloat16)     # (nh, H)

    names = ["ln1_w", "ln1_b", "wqkv", "bqkv", "wo", "bo",
             "ln2_w", "ln2_b", "w1", "b1", "w2", "b2"]
    per_layer = {k: [] for k in names}
    for _ in range(n_layers):
        wq, bq = linear(next(ki), hidden_dim, hidden_dim)
        wk, bk = linear(next(ki), hidden_dim, hidden_dim)
        wv, bv = linear(next(ki), hidden_dim, hidden_dim)
        wo, bo = linear(next(ki), hidden_dim, hidden_dim)
        w1, b1 = linear(next(ki), hidden_dim, ffn_dim)
        w2, b2 = linear(next(ki), ffn_dim, hidden_dim)
        per_layer["ln1_w"].append(jnp.ones((1, hidden_dim), jnp.float32))
        per_layer["ln1_b"].append(jnp.zeros((1, hidden_dim), jnp.float32))
        # fused QKV with the attention scale folded into the q weights/bias
        per_layer["wqkv"].append(jnp.concatenate([wq * scale, wk, wv], axis=1))
        per_layer["bqkv"].append(
            jnp.concatenate([bq * scale, bk, bv]).reshape(1, 3 * hidden_dim))
        per_layer["wo"].append(wo)
        per_layer["bo"].append(bo.reshape(1, hidden_dim))
        per_layer["ln2_w"].append(jnp.ones((1, hidden_dim), jnp.float32))
        per_layer["ln2_b"].append(jnp.zeros((1, hidden_dim), jnp.float32))
        per_layer["w1"].append(w1)
        per_layer["b1"].append(b1.reshape(1, ffn_dim))
        per_layer["w2"].append(w2)
        per_layer["b2"].append(b2.reshape(1, hidden_dim))

    stack = {k: jnp.stack(v) for k, v in per_layer.items()}
    for k in ("wqkv", "wo", "w1", "w2"):     # bf16 matmul operands, f32 accumulation
        stack[k] = stack[k].astype(jnp.bfloat16)
    params["stack"] = stack

    params["final_ln_w"] = jnp.ones((1, hidden_dim), jnp.float32)
    params["final_ln_b"] = jnp.zeros((1, hidden_dim), jnp.float32)

    wa, ba = linear(next(ki), 2 * hidden_dim, 1)        # attn_layer: Linear(2H, 1)
    params["attn_wt"] = wa[:hidden_dim, 0].reshape(1, hidden_dim)
    params["attn_wn"] = wa[hidden_dim:, 0].reshape(1, hidden_dim)
    params["attn_b"] = ba.reshape(1, 1)
    # self.scaling is a parameter but unused in forward -> omitted
    return params


# ----------------------------------------------------------------------------- forward
def transformer_forward(params, x, adj, *, hops, tile_nodes):
    N = x.shape[0]
    S = hops + 1
    H = params["embed_w"].shape[1]
    n_layers = params["stack"]["wqkv"].shape[0]

    lap = gcn_laplacian(adj)
    feats = construct_features(lap, x, hops)               # (N, S, input_dim)

    # pad node count up to a tile multiple (padded nodes attend only within themselves
    # so they never pollute real nodes; their readout rows are sliced off at the end)
    n_tiles = -(-N // tile_nodes)
    N_pad = n_tiles * tile_nodes
    if N_pad != N:
        feats = jnp.pad(feats, ((0, N_pad - N), (0, 0), (0, 0)))

    # position-major layout: (S, N_pad, din) so every hop-position is a contiguous row block
    feats_pm = jnp.transpose(feats, (1, 0, 2)).astype(jnp.bfloat16)

    out = run_model(feats_pm, params, seq_len=S, tile_nodes=tile_nodes,
                    hidden=H, n_layers=n_layers)           # (N_pad, H)
    return out[:N]                                         # agg='add', squeezed


# ----------------------------------------------------------------------------- main
if __name__ == "__main__":
    N_NODES = 64
    INPUT_DIM = 16
    HOPS = 3                 # seq_len = 4
    HIDDEN = 32
    NUM_HEADS = 4
    N_LAYERS = 2
    TILE_NODES = 32          # 2 node tiles keep both v7x TensorCores busy; on v6e this
                             # can be raised to 64 (M=256) to fill the 256-wide MXU.

    root = jax.random.PRNGKey(0)
    k_param, k_x, k_adj = jax.random.split(root, 3)

    params = build_params(k_param, INPUT_DIM, HIDDEN, NUM_HEADS, N_LAYERS)

    x = jax.random.normal(k_x, (N_NODES, INPUT_DIM), jnp.float32)
    a = (jax.random.uniform(k_adj, (N_NODES, N_NODES)) < 0.15).astype(jnp.float32)
    adj = jnp.maximum(a, a.T) * (1.0 - jnp.eye(N_NODES, dtype=jnp.float32))

    out = transformer_forward(params, x, adj, hops=HOPS, tile_nodes=TILE_NODES)
    jax.block_until_ready(out)
    assert out.shape == (N_NODES, HIDDEN)
    print("KERNEL_OK")
</pallas_src>

<mosaic_0001>
module attributes {stable_mosaic.version = 11 : i64} {
  func.func @fused_model_kernel(%arg0: i32, %arg1: i32, %arg2: memref<4x32x16xbf16, #tpu.memory_space<vmem>>, %arg3: memref<16x32xbf16, #tpu.memory_space<vmem>>, %arg4: memref<1x32xf32, #tpu.memory_space<vmem>>, %arg5: memref<32x4xbf16, #tpu.memory_space<vmem>>, %arg6: memref<4x32xbf16, #tpu.memory_space<vmem>>, %arg7: memref<1x1x32xf32, #tpu.memory_space<vmem>>, %arg8: memref<1x1x32xf32, #tpu.memory_space<vmem>>, %arg9: memref<1x32x96xbf16, #tpu.memory_space<vmem>>, %arg10: memref<1x1x96xf32, #tpu.memory_space<vmem>>, %arg11: memref<1x32x32xbf16, #tpu.memory_space<vmem>>, %arg12: memref<1x1x32xf32, #tpu.memory_space<vmem>>, %arg13: memref<1x1x32xf32, #tpu.memory_space<vmem>>, %arg14: memref<1x1x32xf32, #tpu.memory_space<vmem>>, %arg15: memref<1x32x64xbf16, #tpu.memory_space<vmem>>, %arg16: memref<1x1x64xf32, #tpu.memory_space<vmem>>, %arg17: memref<1x64x32xbf16, #tpu.memory_space<vmem>>, %arg18: memref<1x1x32xf32, #tpu.memory_space<vmem>>, %arg19: memref<1x32xf32, #tpu.memory_space<vmem>>, %arg20: memref<1x32xf32, #tpu.memory_space<vmem>>, %arg21: memref<1x32xf32, #tpu.memory_space<vmem>>, %arg22: memref<1x32xf32, #tpu.memory_space<vmem>>, %arg23: memref<1x1xf32, #tpu.memory_space<vmem>>, %arg24: memref<32x32xf32, #tpu.memory_space<vmem>>, %arg25: memref<128x32xf32, #tpu.memory_space<vmem>>) attributes {dimension_semantics = [#tpu.dimension_semantics<parallel>, #tpu.dimension_semantics<arbitrary>], iteration_bounds = array<i64: 2, 2>, scalar_prefetch = 0 : i64, scratch_operands = 1 : i64, tpu.core_type = #tpu.core_type<tc>, window_params = [{transform_indices = @transform_0, window_bounds = array<i64: 4, 32, 16>}, {pipeline_mode = #tpu.pipeline_mode<synchronous>, transform_indices = @transform_1, window_bounds = array<i64: 16, 32>}, {pipeline_mode = #tpu.pipeline_mode<synchronous>, transform_indices = @transform_2, window_bounds = array<i64: 1, 32>}, {pipeline_mode = #tpu.pipeline_mode<synchronous>, transform_indices = @transform_3, window_bounds = array<i64: 32, 4>}, {pipeline_mode = #tpu.pipeline_mode<synchronous>, transform_indices = @transform_4, window_bounds = array<i64: 4, 32>}, {transform_indices = @transform_5, window_bounds = array<i64: 1, 1, 32>}, {transform_indices = @transform_6, window_bounds = array<i64: 1, 1, 32>}, {transform_indices = @transform_7, window_bounds = array<i64: 1, 32, 96>}, {transform_indices = @transform_8, window_bounds = array<i64: 1, 1, 96>}, {transform_indices = @transform_9, window_bounds = array<i64: 1, 32, 32>}, {transform_indices = @transform_10, window_bounds = array<i64: 1, 1, 32>}, {transform_indices = @transform_11, window_bounds = array<i64: 1, 1, 32>}, {transform_indices = @transform_12, window_bounds = array<i64: 1, 1, 32>}, {transform_indices = @transform_13, window_bounds = array<i64: 1, 32, 64>}, {transform_indices = @transform_14, window_bounds = array<i64: 1, 1, 64>}, {transform_indices = @transform_15, window_bounds = array<i64: 1, 64, 32>}, {transform_indices = @transform_16, window_bounds = array<i64: 1, 1, 32>}, {pipeline_mode = #tpu.pipeline_mode<synchronous>, transform_indices = @transform_17, window_bounds = array<i64: 1, 32>}, {pipeline_mode = #tpu.pipeline_mode<synchronous>, transform_indices = @transform_18, window_bounds = array<i64: 1, 32>}, {pipeline_mode = #tpu.pipeline_mode<synchronous>, transform_indices = @transform_19, window_bounds = array<i64: 1, 32>}, {pipeline_mode = #tpu.pipeline_mode<synchronous>, transform_indices = @transform_20, window_bounds = array<i64: 1, 32>}, {pipeline_mode = #tpu.pipeline_mode<synchronous>, transform_indices = @transform_21, window_bounds = array<i64: 1, 1>}, {transform_indices = @transform_22, window_bounds = array<i64: 32, 32>}]} {
    %c0_i32 = arith.constant 0 : i32
    %0 = arith.cmpi eq, %arg1, %c0_i32 : i32
    %1 = arith.extui %0 : i1 to i32
    %c0_i32_0 = arith.constant 0 : i32
    %2 = arith.cmpi ne, %1, %c0_i32_0 : i32
    scf.if %2 {
      %c0_64 = arith.constant 0 : index
      %c0_65 = arith.constant 0 : index
      %c0_66 = arith.constant 0 : index
      %280 = vector.load %arg2[%c0_64, %c0_65, %c0_66] : memref<4x32x16xbf16, #tpu.memory_space<vmem>>, vector<1x32x16xbf16>
      %281 = vector.shape_cast %280 : vector<1x32x16xbf16> to vector<32x16xbf16>
      %c0_67 = arith.constant 0 : index
      %c0_68 = arith.constant 0 : index
      %282 = vector.load %arg3[%c0_67, %c0_68] : memref<16x32xbf16, #tpu.memory_space<vmem>>, vector<16x32xbf16>
      %cst_69 = arith.constant dense<0.000000e+00> : vector<32x32xf32>
      %283 = tpu.matmul %281, %282, %cst_69 {dimension_numbers = #tpu.dot_dimension_numbers<[1], [0], [0], [1], [0, 0, 1, 1], [], []>} : vector<32x16xbf16>, vector<16x32xbf16>, vector<32x32xf32> -> vector<32x32xf32>
      %c0_70 = arith.constant 0 : index
      %c0_71 = arith.constant 0 : index
      %284 = vector.load %arg4[%c0_70, %c0_71] : memref<1x32xf32, #tpu.memory_space<vmem>>, vector<1x32xf32>
      %285 = vector.broadcast %284 : vector<1x32xf32> to vector<32x32xf32>
      %286 = arith.addf %283, %285 : vector<32x32xf32>
      %c0_72 = arith.constant 0 : index
      %c0_73 = arith.constant 0 : index
      %287 = vector.load %arg25[%c0_72, %c0_73] : memref<128x32xf32, #tpu.memory_space<vmem>>, vector<32x32xf32>
      tpu.vector_store %arg25[%c0_72, %c0_73], %286 {strides = array<i32>} : memref<128x32xf32, #tpu.memory_space<vmem>>, vector<32x32xf32>,
      %c1 = arith.constant 1 : index
      %c0_74 = arith.constant 0 : index
      %c0_75 = arith.constant 0 : index
      %288 = vector.load %arg2[%c1, %c0_74, %c0_75] : memref<4x32x16xbf16, #tpu.memory_space<vmem>>, vector<1x32x16xbf16>
      %289 = vector.shape_cast %288 : vector<1x32x16xbf16> to vector<32x16xbf16>
      %c0_76 = arith.constant 0 : index
      %c0_77 = arith.constant 0 : index
      %290 = vector.load %arg3[%c0_76, %c0_77] : memref<16x32xbf16, #tpu.memory_space<vmem>>, vector<16x32xbf16>
      %cst_78 = arith.constant dense<0.000000e+00> : vector<32x32xf32>
      %291 = tpu.matmul %289, %290, %cst_78 {dimension_numbers = #tpu.dot_dimension_numbers<[1], [0], [0], [1], [0, 0, 1, 1], [], []>} : vector<32x16xbf16>, vector<16x32xbf16>, vector<32x32xf32> -> vector<32x32xf32>
      %c0_79 = arith.constant 0 : index
      %c0_80 = arith.constant 0 : index
      %292 = vector.load %arg4[%c0_79, %c0_80] : memref<1x32xf32, #tpu.memory_space<vmem>>, vector<1x32xf32>
      %293 = vector.broadcast %292 : vector<1x32xf32> to vector<32x32xf32>
      %294 = arith.addf %291, %293 : vector<32x32xf32>
      %c32 = arith.constant 32 : index
      %c0_81 = arith.constant 0 : index
      %295 = vector.load %arg25[%c32, %c0_81] : memref<128x32xf32, #tpu.memory_space<vmem>>, vector<32x32xf32>
      tpu.vector_store %arg25[%c32, %c0_81], %294 {strides = array<i32>} : memref<128x32xf32, #tpu.memory_space<vmem>>, vector<32x32xf32>,
      %c2 = arith.constant 2 : index
      %c0_82 = arith.constant 0 : index
      %c0_83 = arith.constant 0 : index
      %296 = vector.load %arg2[%c2, %c0_82, %c0_83] : memref<4x32x16xbf16, #tpu.memory_space<vmem>>, vector<1x32x16xbf16>
      %297 = vector.shape_cast %296 : vector<1x32x16xbf16> to vector<32x16xbf16>
      %c0_84 = arith.constant 0 : index
      %c0_85 = arith.constant 0 : index
      %298 = vector.load %arg3[%c0_84, %c0_85] : memref<16x32xbf16, #tpu.memory_space<vmem>>, vector<16x32xbf16>
      %cst_86 = arith.constant dense<0.000000e+00> : vector<32x32xf32>
      %299 = tpu.matmul %297, %298, %cst_86 {dimension_numbers = #tpu.dot_dimension_numbers<[1], [0], [0], [1], [0, 0, 1, 1], [], []>} : vector<32x16xbf16>, vector<16x32xbf16>, vector<32x32xf32> -> vector<32x32xf32>
      %c0_87 = arith.constant 0 : index
      %c0_88 = arith.constant 0 : index
      %300 = vector.load %arg4[%c0_87, %c0_88] : memref<1x32xf32, #tpu.memory_space<vmem>>, vector<1x32xf32>
      %301 = vector.broadcast %300 : vector<1x32xf32> to vector<32x32xf32>
      %302 = arith.addf %299, %301 : vector<32x32xf32>
      %c64 = arith.constant 64 : index
      %c0_89 = arith.constant 0 : index
      %303 = vector.load %arg25[%c64, %c0_89] : memref<128x32xf32, #tpu.memory_space<vmem>>, vector<32x32xf32>
      tpu.vector_store %arg25[%c64, %c0_89], %302 {strides = array<i32>} : memref<128x32xf32, #tpu.memory_space<vmem>>, vector<32x32xf32>,
      %c3 = arith.constant 3 : index
      %c0_90 = arith.constant 0 : index
      %c0_91 = arith.constant 0 : index
      %304 = vector.load %arg2[%c3, %c0_90, %c0_91] : memref<4x32x16xbf16, #tpu.memory_space<vmem>>, vector<1x32x16xbf16>
      %305 = vector.shape_cast %304 : vector<1x32x16xbf16> to vector<32x16xbf16>
      %c0_92 = arith.constant 0 : index
      %c0_93 = arith.constant 0 : index
      %306 = vector.load %arg3[%c0_92, %c0_93] : memref<16x32xbf16, #tpu.memory_space<vmem>>, vector<16x32xbf16>
      %cst_94 = arith.constant dense<0.000000e+00> : vector<32x32xf32>
      %307 = tpu.matmul %305, %306, %cst_94 {dimension_numbers = #tpu.dot_dimension_numbers<[1], [0], [0], [1], [0, 0, 1, 1], [], []>} : vector<32x16xbf16>, vector<16x32xbf16>, vector<32x32xf32> -> vector<32x32xf32>
      %c0_95 = arith.constant 0 : index
      %c0_96 = arith.constant 0 : index
      %308 = vector.load %arg4[%c0_95, %c0_96] : memref<1x32xf32, #tpu.memory_space<vmem>>, vector<1x32xf32>
      %309 = vector.broadcast %308 : vector<1x32xf32> to vector<32x32xf32>
      %310 = arith.addf %307, %309 : vector<32x32xf32>
      %c96 = arith.constant 96 : index
      %c0_97 = arith.constant 0 : index
      %311 = vector.load %arg25[%c96, %c0_97] : memref<128x32xf32, #tpu.memory_space<vmem>>, vector<32x32xf32>
      tpu.vector_store %arg25[%c96, %c0_97], %310 {strides = array<i32>} : memref<128x32xf32, #tpu.memory_space<vmem>>, vector<32x32xf32>,
    } else {
    }
    %c0 = arith.constant 0 : index
    %c0_1 = arith.constant 0 : index
    %3 = vector.load %arg25[%c0, %c0_1] : memref<128x32xf32, #tpu.memory_space<vmem>>, vector<128x32xf32>
    %c0_2 = arith.constant 0 : index
    %c0_3 = arith.constant 0 : index
    %c0_4 = arith.constant 0 : index
    %4 = vector.load %arg7[%c0_2, %c0_3, %c0_4] : memref<1x1x32xf32, #tpu.memory_space<vmem>>, vector<1x1x32xf32>
    %5 = vector.shape_cast %4 : vector<1x1x32xf32> to vector<1x32xf32>
    %c0_5 = arith.constant 0 : index
    %c0_6 = arith.constant 0 : index
    %c0_7 = arith.constant 0 : index
    %6 = vector.load %arg8[%c0_5, %c0_6, %c0_7] : memref<1x1x32xf32, #tpu.memory_space<vmem>>, vector<1x1x32xf32>
    %7 = vector.shape_cast %6 : vector<1x1x32xf32> to vector<1x32xf32>
    %cst = arith.constant dense<0.000000e+00> : vector<128xf32>
    %8 = vector.multi_reduction <add>, %3, %cst [1] : vector<128x32xf32> to vector<128xf32>
    %9 = vector.shape_cast %8 : vector<128xf32> to vector<128x1xf32>
    %cst_8 = arith.constant 3.200000e+01 : f32
    %10 = vector.broadcast %cst_8 : f32 to vector<128x1xf32>
    %11 = arith.divf %9, %10 : vector<128x1xf32>
    %12 = vector.broadcast %11 : vector<128x1xf32> to vector<128x32xf32>
    %13 = arith.subf %3, %12 : vector<128x32xf32>
    %14 = arith.mulf %13, %13 : vector<128x32xf32>
    %cst_9 = arith.constant dense<0.000000e+00> : vector<128xf32>
    %15 = vector.multi_reduction <add>, %14, %cst_9 [1] : vector<128x32xf32> to vector<128xf32>
    %16 = vector.shape_cast %15 : vector<128xf32> to vector<128x1xf32>
    %cst_10 = arith.constant 3.200000e+01 : f32
    %17 = vector.broadcast %cst_10 : f32 to vector<128x1xf32>
    %18 = arith.divf %16, %17 : vector<128x1xf32>
    %19 = vector.broadcast %11 : vector<128x1xf32> to vector<128x32xf32>
    %20 = arith.subf %3, %19 : vector<128x32xf32>
    %cst_11 = arith.constant 9.99999974E-6 : f32
    %21 = vector.broadcast %cst_11 : f32 to vector<128x1xf32>
    %22 = arith.addf %18, %21 : vector<128x1xf32>
    %23 = math.rsqrt %22 : vector<128x1xf32>
    %24 = vector.broadcast %23 : vector<128x1xf32> to vector<128x32xf32>
    %25 = arith.mulf %20, %24 : vector<128x32xf32>
    %26 = vector.broadcast %5 : vector<1x32xf32> to vector<128x32xf32>
    %27 = arith.mulf %25, %26 : vector<128x32xf32>
    %28 = vector.broadcast %7 : vector<1x32xf32> to vector<128x32xf32>
    %29 = arith.addf %27, %28 : vector<128x32xf32>
    %30 = arith.truncf %29 : vector<128x32xf32> to vector<128x32xbf16>
    %c0_12 = arith.constant 0 : index
    %c0_13 = arith.constant 0 : index
    %c0_14 = arith.constant 0 : index
    %31 = vector.load %arg9[%c0_12, %c0_13, %c0_14] : memref<1x32x96xbf16, #tpu.memory_space<vmem>>, vector<1x32x96xbf16>
    %32 = vector.shape_cast %31 : vector<1x32x96xbf16> to vector<32x96xbf16>
    %cst_15 = arith.constant dense<0.000000e+00> : vector<128x96xf32>
    %33 = tpu.matmul %30, %32, %cst_15 {dimension_numbers = #tpu.dot_dimension_numbers<[1], [0], [0], [1], [0, 0, 1, 1], [], []>} : vector<128x32xbf16>, vector<32x96xbf16>, vector<128x96xf32> -> vector<128x96xf32>
    %c0_16 = arith.constant 0 : index
    %c0_17 = arith.constant 0 : index
    %c0_18 = arith.constant 0 : index
    %34 = vector.load %arg10[%c0_16, %c0_17, %c0_18] : memref<1x1x96xf32, #tpu.memory_space<vmem>>, vector<1x1x96xf32>
    %35 = vector.shape_cast %34 : vector<1x1x96xf32> to vector<1x96xf32>
    %36 = vector.broadcast %35 : vector<1x96xf32> to vector<128x96xf32>
    %37 = arith.addf %33, %36 : vector<128x96xf32>
    %38 = vector.extract_strided_slice %37 {offsets = [0, 0], sizes = [32, 32], strides = [1, 1]} : vector<128x96xf32> to vector<32x32xf32>
    %39 = vector.extract_strided_slice %37 {offsets = [32, 0], sizes = [32, 32], strides = [1, 1]} : vector<128x96xf32> to vector<32x32xf32>
    %40 = vector.extract_strided_slice %37 {offsets = [64, 0], sizes = [32, 32], strides = [1, 1]} : vector<128x96xf32> to vector<32x32xf32>
    %41 = vector.extract_strided_slice %37 {offsets = [96, 0], sizes = [32, 32], strides = [1, 1]} : vector<128x96xf32> to vector<32x32xf32>
    %42 = vector.extract_strided_slice %37 {offsets = [0, 32], sizes = [32, 32], strides = [1, 1]} : vector<128x96xf32> to vector<32x32xf32>
    %43 = vector.extract_strided_slice %37 {offsets = [32, 32], sizes = [32, 32], strides = [1, 1]} : vector<128x96xf32> to vector<32x32xf32>
    %44 = vector.extract_strided_slice %37 {offsets = [64, 32], sizes = [32, 32], strides = [1, 1]} : vector<128x96xf32> to vector<32x32xf32>
    %45 = vector.extract_strided_slice %37 {offsets = [96, 32], sizes = [32, 32], strides = [1, 1]} : vector<128x96xf32> to vector<32x32xf32>
    %46 = vector.extract_strided_slice %37 {offsets = [0, 64], sizes = [32, 32], strides = [1, 1]} : vector<128x96xf32> to vector<32x32xf32>
    %47 = vector.extract_strided_slice %37 {offsets = [32, 64], sizes = [32, 32], strides = [1, 1]} : vector<128x96xf32> to vector<32x32xf32>
    %48 = vector.extract_strided_slice %37 {offsets = [64, 64], sizes = [32, 32], strides = [1, 1]} : vector<128x96xf32> to vector<32x32xf32>
    %49 = vector.extract_strided_slice %37 {offsets = [96, 64], sizes = [32, 32], strides = [1, 1]} : vector<128x96xf32> to vector<32x32xf32>
    %50 = arith.mulf %38, %42 : vector<32x32xf32>
    %51 = arith.mulf %38, %43 : vector<32x32xf32>
    %52 = arith.mulf %38, %44 : vector<32x32xf32>
    %53 = arith.mulf %38, %45 : vector<32x32xf32>
    %54 = arith.mulf %39, %42 : vector<32x32xf32>
    %55 = arith.mulf %39, %43 : vector<32x32xf32>
    %56 = arith.mulf %39, %44 : vector<32x32xf32>
    %57 = arith.mulf %39, %45 : vector<32x32xf32>
    %58 = arith.mulf %40, %42 : vector<32x32xf32>
    %59 = arith.mulf %40, %43 : vector<32x32xf32>
    %60 = arith.mulf %40, %44 : vector<32x32xf32>
    %61 = arith.mulf %40, %45 : vector<32x32xf32>
    %62 = arith.mulf %41, %42 : vector<32x32xf32>
    %63 = arith.mulf %41, %43 : vector<32x32xf32>
    %64 = arith.mulf %41, %44 : vector<32x32xf32>
    %65 = arith.mulf %41, %45 : vector<32x32xf32>
    %66 = tpu.concatenate %50, %51, %52, %53, %54, %55, %56, %57, %58, %59, %60, %61, %62, %63, %64, %65 in 0 : vector<32x32xf32>, vector<32x32xf32>, vector<32x32xf32>, vector<32x32xf32>, vector<32x32xf32>, vector<32x32xf32>, vector<32x32xf32>, vector<32x32xf32>, vector<32x32xf32>, vector<32x32xf32>, vector<32x32xf32>, vector<32x32xf32>, vector<32x32xf32>, vector<32x32xf32>, vector<32x32xf32>, vector<32x32xf32> -> vector<512x32xf32>
    %67 = arith.truncf %66 : vector<512x32xf32> to vector<512x32xbf16>
    %c0_19 = arith.constant 0 : index
    %c0_20 = arith.constant 0 : index
    %68 = vector.load %arg5[%c0_19, %c0_20] : memref<32x4xbf16, #tpu.memory_space<vmem>>, vector<32x4xbf16>
    %cst_21 = arith.constant dense<0.000000e+00> : vector<512x4xf32>
    %69 = tpu.matmul %67, %68, %cst_21 {dimension_numbers = #tpu.dot_dimension_numbers<[1], [0], [0], [1], [0, 0, 1, 1], [], []>} : vector<512x32xbf16>, vector<32x4xbf16>, vector<512x4xf32> -> vector<512x4xf32>
    %70 = vector.extract_strided_slice %69 {offsets = [0, 0], sizes = [32, 4], strides = [1, 1]} : vector<512x4xf32> to vector<32x4xf32>
    %71 = vector.extract_strided_slice %69 {offsets = [32, 0], sizes = [32, 4], strides = [1, 1]} : vector<512x4xf32> to vector<32x4xf32>
    %72 = vector.extract_strided_slice %69 {offsets = [64, 0], sizes = [32, 4], strides = [1, 1]} : vector<512x4xf32> to vector<32x4xf32>
    %73 = vector.extract_strided_slice %69 {offsets = [96, 0], sizes = [32, 4], strides = [1, 1]} : vector<512x4xf32> to vector<32x4xf32>
    %74 = arith.maximumf %70, %71 : vector<32x4xf32>
    %75 = arith.maximumf %74, %72 : vector<32x4xf32>
    %76 = arith.maximumf %75, %73 : vector<32x4xf32>
    %77 = arith.subf %70, %76 : vector<32x4xf32>
    %78 = math.exp %77 : vector<32x4xf32>
    %79 = arith.subf %71, %76 : vector<32x4xf32>
    %80 = math.exp %79 : vector<32x4xf32>
    %81 = arith.subf %72, %76 : vector<32x4xf32>
    %82 = math.exp %81 : vector<32x4xf32>
    %83 = arith.subf %73, %76 : vector<32x4xf32>
    %84 = math.exp %83 : vector<32x4xf32>
    %85 = arith.addf %78, %80 : vector<32x4xf32>
    %86 = arith.addf %85, %82 : vector<32x4xf32>
    %87 = arith.addf %86, %84 : vector<32x4xf32>
    %88 = tpu.reciprocal %87 {approx = true} : vector<32x4xf32> -> vector<32x4xf32>
    %89 = arith.mulf %78, %88 : vector<32x4xf32>
    %90 = arith.mulf %80, %88 : vector<32x4xf32>
    %91 = arith.mulf %82, %88 : vector<32x4xf32>
    %92 = arith.mulf %84, %88 : vector<32x4xf32>
    %93 = vector.extract_strided_slice %69 {offsets = [128, 0], sizes = [32, 4], strides = [1, 1]} : vector<512x4xf32> to vector<32x4xf32>
    %94 = vector.extract_strided_slice %69 {offsets = [160, 0], sizes = [32, 4], strides = [1, 1]} : vector<512x4xf32> to vector<32x4xf32>
    %95 = vector.extract_strided_slice %69 {offsets = [192, 0], sizes = [32, 4], strides = [1, 1]} : vector<512x4xf32> to vector<32x4xf32>
    %96 = vector.extract_strided_slice %69 {offsets = [224, 0], sizes = [32, 4], strides = [1, 1]} : vector<512x4xf32> to vector<32x4xf32>
    %97 = arith.maximumf %93, %94 : vector<32x4xf32>
    %98 = arith.maximumf %97, %95 : vector<32x4xf32>
    %99 = arith.maximumf %98, %96 : vector<32x4xf32>
    %100 = arith.subf %93, %99 : vector<32x4xf32>
    %101 = math.exp %100 : vector<32x4xf32>
    %102 = arith.subf %94, %99 : vector<32x4xf32>
    %103 = math.exp %102 : vector<32x4xf32>
    %104 = arith.subf %95, %99 : vector<32x4xf32>
    %105 = math.exp %104 : vector<32x4xf32>
    %106 = arith.subf %96, %99 : vector<32x4xf32>
    %107 = math.exp %106 : vector<32x4xf32>
    %108 = arith.addf %101, %103 : vector<32x4xf32>
    %109 = arith.addf %108, %105 : vector<32x4xf32>
    %110 = arith.addf %109, %107 : vector<32x4xf32>
    %111 = tpu.reciprocal %110 {approx = true} : vector<32x4xf32> -> vector<32x4xf32>
    %112 = arith.mulf %101, %111 : vector<32x4xf32>
    %113 = arith.mulf %103, %111 : vector<32x4xf32>
    %114 = arith.mulf %105, %111 : vector<32x4xf32>
    %115 = arith.mulf %107, %111 : vector<32x4xf32>
    %116 = vector.extract_strided_slice %69 {offsets = [256, 0], sizes = [32, 4], strides = [1, 1]} : vector<512x4xf32> to vector<32x4xf32>
    %117 = vector.extract_strided_slice %69 {offsets = [288, 0], sizes = [32, 4], strides = [1, 1]} : vector<512x4xf32> to vector<32x4xf32>
    %118 = vector.extract_strided_slice %69 {offsets = [320, 0], sizes = [32, 4], strides = [1, 1]} : vector<512x4xf32> to vector<32x4xf32>
    %119 = vector.extract_strided_slice %69 {offsets = [352, 0], sizes = [32, 4], strides = [1, 1]} : vector<512x4xf32> to vector<32x4xf32>
    %120 = arith.maximumf %116, %117 : vector<32x4xf32>
    %121 = arith.maximumf %120, %118 : vector<32x4xf32>
    %122 = arith.maximumf %121, %119 : vector<32x4xf32>
    %123 = arith.subf %116, %122 : vector<32x4xf32>
    %124 = math.exp %123 : vector<32x4xf32>
    %125 = arith.subf %117, %122 : vector<32x4xf32>
    %126 = math.exp %125 : vector<32x4xf32>
    %127 = arith.subf %118, %122 : vector<32x4xf32>
    %128 = math.exp %127 : vector<32x4xf32>
    %129 = arith.subf %119, %122 : vector<32x4xf32>
    %130 = math.exp %129 : vector<32x4xf32>
    %131 = arith.addf %124, %126 : vector<32x4xf32>
    %132 = arith.addf %131, %128 : vector<32x4xf32>
    %133 = arith.addf %132, %130 : vector<32x4xf32>
    %134 = tpu.reciprocal %133 {approx = true} : vector<32x4xf32> -> vector<32x4xf32>
    %135 = arith.mulf %124, %134 : vector<32x4xf32>
    %136 = arith.mulf %126, %134 : vector<32x4xf32>
    %137 = arith.mulf %128, %134 : vector<32x4xf32>
    %138 = arith.mulf %130, %134 : vector<32x4xf32>
    %139 = vector.extract_strided_slice %69 {offsets = [384, 0], sizes = [32, 4], strides = [1, 1]} : vector<512x4xf32> to vector<32x4xf32>
    %140 = vector.extract_strided_slice %69 {offsets = [416, 0], sizes = [32, 4], strides = [1, 1]} : vector<512x4xf32> to vector<32x4xf32>
    %141 = vector.extract_strided_slice %69 {offsets = [448, 0], sizes = [32, 4], strides = [1, 1]} : vector<512x4xf32> to vector<32x4xf32>
    %142 = vector.extract_strided_slice %69 {offsets = [480, 0], sizes = [32, 4], strides = [1, 1]} : vector<512x4xf32> to vector<32x4xf32>
    %143 = arith.maximumf %139, %140 : vector<32x4xf32>
    %144 = arith.maximumf %143, %141 : vector<32x4xf32>
    %145 = arith.maximumf %144, %142 : vector<32x4xf32>
    %146 = arith.subf %139, %145 : vector<32x4xf32>
    %147 = math.exp %146 : vector<32x4xf32>
    %148 = arith.subf %140, %145 : vector<32x4xf32>
    %149 = math.exp %148 : vector<32x4xf32>
    %150 = arith.subf %141, %145 : vector<32x4xf32>
    %151 = math.exp %150 : vector<32x4xf32>
    %152 = arith.subf %142, %145 : vector<32x4xf32>
    %153 = math.exp %152 : vector<32x4xf32>
    %154 = arith.addf %147, %149 : vector<32x4xf32>
    %155 = arith.addf %154, %151 : vector<32x4xf32>
    %156 = arith.addf %155, %153 : vector<32x4xf32>
    %157 = tpu.reciprocal %156 {approx = true} : vector<32x4xf32> -> vector<32x4xf32>
    %158 = arith.mulf %147, %157 : vector<32x4xf32>
    %159 = arith.mulf %149, %157 : vector<32x4xf32>
    %160 = arith.mulf %151, %157 : vector<32x4xf32>
    %161 = arith.mulf %153, %157 : vector<32x4xf32>
    %162 = tpu.concatenate %89, %90, %91, %92, %112, %113, %114, %115, %135, %136, %137, %138, %158, %159, %160, %161 in 0 : vector<32x4xf32>, vector<32x4xf32>, vector<32x4xf32>, vector<32x4xf32>, vector<32x4xf32>, vector<32x4xf32>, vector<32x4xf32>, vector<32x4xf32>, vector<32x4xf32>, vector<32x4xf32>, vector<32x4xf32>, vector<32x4xf32>, vector<32x4xf32>, vector<32x4xf32>, vector<32x4xf32>, vector<32x4xf32> -> vector<512x4xf32>
    %163 = arith.truncf %162 : vector<512x4xf32> to vector<512x4xbf16>
    %c0_22 = arith.constant 0 : index
    %c0_23 = arith.constant 0 : index
    %164 = vector.load %arg6[%c0_22, %c0_23] : memref<4x32xbf16, #tpu.memory_space<vmem>>, vector<4x32xbf16>
    %cst_24 = arith.constant dense<0.000000e+00> : vector<512x32xf32>
    %165 = tpu.matmul %163, %164, %cst_24 {dimension_numbers = #tpu.dot_dimension_numbers<[1], [0], [0], [1], [0, 0, 1, 1], [], []>} : vector<512x4xbf16>, vector<4x32xbf16>, vector<512x32xf32> -> vector<512x32xf32>
    %166 = vector.extract_strided_slice %165 {offsets = [0, 0], sizes = [32, 32], strides = [1, 1]} : vector<512x32xf32> to vector<32x32xf32>
    %167 = arith.mulf %166, %46 : vector<32x32xf32>
    %168 = vector.extract_strided_slice %165 {offsets = [32, 0], sizes = [32, 32], strides = [1, 1]} : vector<512x32xf32> to vector<32x32xf32>
    %169 = arith.mulf %168, %47 : vector<32x32xf32>
    %170 = arith.addf %167, %169 : vector<32x32xf32>
    %171 = vector.extract_strided_slice %165 {offsets = [64, 0], sizes = [32, 32], strides = [1, 1]} : vector<512x32xf32> to vector<32x32xf32>
    %172 = arith.mulf %171, %48 : vector<32x32xf32>
    %173 = arith.addf %170, %172 : vector<32x32xf32>
    %174 = vector.extract_strided_slice %165 {offsets = [96, 0], sizes = [32, 32], strides = [1, 1]} : vector<512x32xf32> to vector<32x32xf32>
    %175 = arith.mulf %174, %49 : vector<32x32xf32>
    %176 = arith.addf %173, %175 : vector<32x32xf32>
    %177 = vector.extract_strided_slice %165 {offsets = [128, 0], sizes = [32, 32], strides = [1, 1]} : vector<512x32xf32> to vector<32x32xf32>
    %178 = arith.mulf %177, %46 : vector<32x32xf32>
    %179 = vector.extract_strided_slice %165 {offsets = [160, 0], sizes = [32, 32], strides = [1, 1]} : vector<512x32xf32> to vector<32x32xf32>
    %180 = arith.mulf %179, %47 : vector<32x32xf32>
    %181 = arith.addf %178, %180 : vector<32x32xf32>
    %182 = vector.extract_strided_slice %165 {offsets = [192, 0], sizes = [32, 32], strides = [1, 1]} : vector<512x32xf32> to vector<32x32xf32>
    %183 = arith.mulf %182, %48 : vector<32x32xf32>
    %184 = arith.addf %181, %183 : vector<32x32xf32>
    %185 = vector.extract_strided_slice %165 {offsets = [224, 0], sizes = [32, 32], strides = [1, 1]} : vector<512x32xf32> to vector<32x32xf32>
    %186 = arith.mulf %185, %49 : vector<32x32xf32>
    %187 = arith.addf %184, %186 : vector<32x32xf32>
    %188 = vector.extract_strided_slice %165 {offsets = [256, 0], sizes = [32, 32], strides = [1, 1]} : vector<512x32xf32> to vector<32x32xf32>
    %189 = arith.mulf %188, %46 : vector<32x32xf32>
    %190 = vector.extract_strided_slice %165 {offsets = [288, 0], sizes = [32, 32], strides = [1, 1]} : vector<512x32xf32> to vector<32x32xf32>
    %191 = arith.mulf %190, %47 : vector<32x32xf32>
    %192 = arith.addf %189, %191 : vector<32x32xf32>
    %193 = vector.extract_strided_slice %165 {offsets = [320, 0], sizes = [32, 32], strides = [1, 1]} : vector<512x32xf32> to vector<32x32xf32>
    %194 = arith.mulf %193, %48 : vector<32x32xf32>
    %195 = arith.addf %192, %194 : vector<32x32xf32>
    %196 = vector.extract_strided_slice %165 {offsets = [352, 0], sizes = [32, 32], strides = [1, 1]} : vector<512x32xf32> to vector<32x32xf32>
    %197 = arith.mulf %196, %49 : vector<32x32xf32>
    %198 = arith.addf %195, %197 : vector<32x32xf32>
    %199 = vector.extract_strided_slice %165 {offsets = [384, 0], sizes = [32, 32], strides = [1, 1]} : vector<512x32xf32> to vector<32x32xf32>
    %200 = arith.mulf %199, %46 : vector<32x32xf32>
    %201 = vector.extract_strided_slice %165 {offsets = [416, 0], sizes = [32, 32], strides = [1, 1]} : vector<512x32xf32> to vector<32x32xf32>
    %202 = arith.mulf %201, %47 : vector<32x32xf32>
    %203 = arith.addf %200, %202 : vector<32x32xf32>
    %204 = vector.extract_strided_slice %165 {offsets = [448, 0], sizes = [32, 32], strides = [1, 1]} : vector<512x32xf32> to vector<32x32xf32>
    %205 = arith.mulf %204, %48 : vector<32x32xf32>
    %206 = arith.addf %203, %205 : vector<32x32xf32>
    %207 = vector.extract_strided_slice %165 {offsets = [480, 0], sizes = [32, 32], strides = [1, 1]} : vector<512x32xf32> to vector<32x32xf32>
    %208 = arith.mulf %207, %49 : vector<32x32xf32>
    %209 = arith.addf %206, %208 : vector<32x32xf32>
    %210 = tpu.concatenate %176, %187, %198, %209 in 0 : vector<32x32xf32>, vector<32x32xf32>, vector<32x32xf32>, vector<32x32xf32> -> vector<128x32xf32>
    %211 = arith.truncf %210 : vector<128x32xf32> to vector<128x32xbf16>
    %c0_25 = arith.constant 0 : index
    %c0_26 = arith.constant 0 : index
    %c0_27 = arith.constant 0 : index
    %212 = vector.load %arg11[%c0_25, %c0_26, %c0_27] : memref<1x32x32xbf16, #tpu.memory_space<vmem>>, vector<1x32x32xbf16>
    %213 = vector.shape_cast %212 : vector<1x32x32xbf16> to vector<32x32xbf16>
    %cst_28 = arith.constant dense<0.000000e+00> : vector<128x32xf32>
    %214 = tpu.matmul %211, %213, %cst_28 {dimension_numbers = #tpu.dot_dimension_numbers<[1], [0], [0], [1], [0, 0, 1, 1], [], []>} : vector<128x32xbf16>, vector<32x32xbf16>, vector<128x32xf32> -> vector<128x32xf32>
    %215 = arith.addf %3, %214 : vector<128x32xf32>
    %c0_29 = arith.constant 0 : index
    %c0_30 = arith.constant 0 : index
    %c0_31 = arith.constant 0 : index
    %216 = vector.load %arg12[%c0_29, %c0_30, %c0_31] : memref<1x1x32xf32, #tpu.memory_space<vmem>>, vector<1x1x32xf32>
    %217 = vector.shape_cast %216 : vector<1x1x32xf32> to vector<1x32xf32>
    %218 = vector.broadcast %217 : vector<1x32xf32> to vector<128x32xf32>
    %219 = arith.addf %215, %218 : vector<128x32xf32>
    %c0_32 = arith.constant 0 : index
    %c0_33 = arith.constant 0 : index
    %c0_34 = arith.constant 0 : index
    %220 = vector.load %arg13[%c0_32, %c0_33, %c0_34] : memref<1x1x32xf32, #tpu.memory_space<vmem>>, vector<1x1x32xf32>
    %221 = vector.shape_cast %220 : vector<1x1x32xf32> to vector<1x32xf32>
    %c0_35 = arith.constant 0 : index
    %c0_36 = arith.constant 0 : index
    %c0_37 = arith.constant 0 : index
    %222 = vector.load %arg14[%c0_35, %c0_36, %c0_37] : memref<1x1x32xf32, #tpu.memory_space<vmem>>, vector<1x1x32xf32>
    %223 = vector.shape_cast %222 : vector<1x1x32xf32> to vector<1x32xf32>
    %cst_38 = arith.constant dense<0.000000e+00> : vector<128xf32>
    %224 = vector.multi_reduction <add>, %219, %cst_38 [1] : vector<128x32xf32> to vector<128xf32>
    %225 = vector.shape_cast %224 : vector<128xf32> to vector<128x1xf32>
    %cst_39 = arith.constant 3.200000e+01 : f32
    %226 = vector.broadcast %cst_39 : f32 to vector<128x1xf32>
    %227 = arith.divf %225, %226 : vector<128x1xf32>
    %228 = vector.broadcast %227 : vector<128x1xf32> to vector<128x32xf32>
    %229 = arith.subf %219, %228 : vector<128x32xf32>
    %230 = arith.mulf %229, %229 : vector<128x32xf32>
    %cst_40 = arith.constant dense<0.000000e+00> : vector<128xf32>
    %231 = vector.multi_reduction <add>, %230, %cst_40 [1] : vector<128x32xf32> to vector<128xf32>
    %232 = vector.shape_cast %231 : vector<128xf32> to vector<128x1xf32>
    %cst_41 = arith.constant 3.200000e+01 : f32
    %233 = vector.broadcast %cst_41 : f32 to vector<128x1xf32>
    %234 = arith.divf %232, %233 : vector<128x1xf32>
    %235 = vector.broadcast %227 : vector<128x1xf32> to vector<128x32xf32>
    %236 = arith.subf %219, %235 : vector<128x32xf32>
    %cst_42 = arith.constant 9.99999974E-6 : f32
    %237 = vector.broadcast %cst_42 : f32 to vector<128x1xf32>
    %238 = arith.addf %234, %237 : vector<128x1xf32>
    %239 = math.rsqrt %238 : vector<128x1xf32>
    %240 = vector.broadcast %239 : vector<128x1xf32> to vector<128x32xf32>
    %241 = arith.mulf %236, %240 : vector<128x32xf32>
    %242 = vector.broadcast %221 : vector<1x32xf32> to vector<128x32xf32>
    %243 = arith.mulf %241, %242 : vector<128x32xf32>
    %244 = vector.broadcast %223 : vector<1x32xf32> to vector<128x32xf32>
    %245 = arith.addf %243, %244 : vector<128x32xf32>
    %246 = arith.truncf %245 : vector<128x32xf32> to vector<128x32xbf16>
    %c0_43 = arith.constant 0 : index
    %c0_44 = arith.constant 0 : index
    %c0_45 = arith.constant 0 : index
    %247 = vector.load %arg15[%c0_43, %c0_44, %c0_45] : memref<1x32x64xbf16, #tpu.memory_space<vmem>>, vector<1x32x64xbf16>
    %248 = vector.shape_cast %247 : vector<1x32x64xbf16> to vector<32x64xbf16>
    %cst_46 = arith.constant dense<0.000000e+00> : vector<128x64xf32>
    %249 = tpu.matmul %246, %248, %cst_46 {dimension_numbers = #tpu.dot_dimension_numbers<[1], [0], [0], [1], [0, 0, 1, 1], [], []>} : vector<128x32xbf16>, vector<32x64xbf16>, vector<128x64xf32> -> vector<128x64xf32>
    %c0_47 = arith.constant 0 : index
    %c0_48 = arith.constant 0 : index
    %c0_49 = arith.constant 0 : index
    %250 = vector.load %arg16[%c0_47, %c0_48, %c0_49] : memref<1x1x64xf32, #tpu.memory_space<vmem>>, vector<1x1x64xf32>
    %251 = vector.shape_cast %250 : vector<1x1x64xf32> to vector<1x64xf32>
    %252 = vector.broadcast %251 : vector<1x64xf32> to vector<128x64xf32>
    %253 = arith.addf %249, %252 : vector<128x64xf32>
    %cst_50 = arith.constant 5.000000e-01 : f32
    %254 = vector.broadcast %cst_50 : f32 to vector<128x64xf32>
    %255 = arith.mulf %254, %253 : vector<128x64xf32>
    %cst_51 = arith.constant 4.471500e-02 : f32
    %256 = vector.broadcast %cst_51 : f32 to vector<128x64xf32>
    %257 = arith.mulf %256, %253 : vector<128x64xf32>
    %258 = arith.mulf %257, %253 : vector<128x64xf32>
    %259 = arith.mulf %258, %253 : vector<128x64xf32>
    %260 = arith.addf %253, %259 : vector<128x64xf32>
    %cst_52 = arith.constant 0.797884583 : f32
    %261 = vector.broadcast %cst_52 : f32 to vector<128x64xf32>
    %262 = arith.mulf %261, %260 : vector<128x64xf32>
    %263 = math.tanh %262 : vector<128x64xf32>
    %cst_53 = arith.constant 1.000000e+00 : f32
    %264 = vector.broadcast %cst_53 : f32 to vector<128x64xf32>
    %265 = arith.addf %264, %263 : vector<128x64xf32>
    %266 = arith.mulf %255, %265 : vector<128x64xf32>
    %267 = arith.truncf %266 : vector<128x64xf32> to vector<128x64xbf16>
    %c0_54 = arith.constant 0 : index
    %c0_55 = arith.constant 0 : index
    %c0_56 = arith.constant 0 : index
    %268 = vector.load %arg17[%c0_54, %c0_55, %c0_56] : memref<1x64x32xbf16, #tpu.memory_space<vmem>>, vector<1x64x32xbf16>
    %269 = vector.shape_cast %268 : vector<1x64x32xbf16> to vector<64x32xbf16>
    %cst_57 = arith.constant dense<0.000000e+00> : vector<128x32xf32>
    %270 = tpu.matmul %267, %269, %cst_57 {dimension_numbers = #tpu.dot_dimension_numbers<[1], [0], [0], [1], [0, 0, 1, 1], [], []>} : vector<128x64xbf16>, vector<64x32xbf16>, vector<128x32xf32> -> vector<128x32xf32>
    %271 = arith.addf %219, %270 : vector<128x32xf32>
    %c0_58 = arith.constant 0 : index
    %c0_59 = arith.constant 0 : index
    %c0_60 = arith.constant 0 : index
    %272 = vector.load %arg18[%c0_58, %c0_59, %c0_60] : memref<1x1x32xf32, #tpu.memory_space<vmem>>, vector<1x1x32xf32>
    %273 = vector.shape_cast %272 : vector<1x1x32xf32> to vector<1x32xf32>
    %274 = vector.broadcast %273 : vector<1x32xf32> to vector<128x32xf32>
    %275 = arith.addf %271, %274 : vector<128x32xf32>
    %c0_61 = arith.constant 0 : index
    %c0_62 = arith.constant 0 : index
    %276 = vector.load %arg25[%c0_61, %c0_62] : memref<128x32xf32, #tpu.memory_space<vmem>>, vector<128x32xf32>
    tpu.vector_store %arg25[%c0_61, %c0_62], %275 {strides = array<i32>} : memref<128x32xf32, #tpu.memory_space<vmem>>, vector<128x32xf32>,
    %c1_i32 = arith.constant 1 : i32
    %277 = arith.cmpi eq, %arg1, %c1_i32 : i32
    %278 = arith.extui %277 : i1 to i32
    %c0_i32_63 = arith.constant 0 : i32
    %279 = arith.cmpi ne, %278, %c0_i32_63 : i32
    scf.if %279 {
      %c0_64 = arith.constant 0 : index
      %c0_65 = arith.constant 0 : index
      %280 = vector.load %arg19[%c0_64, %c0_65] : memref<1x32xf32, #tpu.memory_space<vmem>>, vector<1x32xf32>
      %c0_66 = arith.constant 0 : index
      %c0_67 = arith.constant 0 : index
      %281 = vector.load %arg20[%c0_66, %c0_67] : memref<1x32xf32, #tpu.memory_space<vmem>>, vector<1x32xf32>
      %cst_68 = arith.constant dense<0.000000e+00> : vector<128xf32>
      %282 = vector.multi_reduction <add>, %275, %cst_68 [1] : vector<128x32xf32> to vector<128xf32>
      %283 = vector.shape_cast %282 : vector<128xf32> to vector<128x1xf32>
      %cst_69 = arith.constant 3.200000e+01 : f32
      %284 = vector.broadcast %cst_69 : f32 to vector<128x1xf32>
      %285 = arith.divf %283, %284 : vector<128x1xf32>
      %286 = vector.broadcast %285 : vector<128x1xf32> to vector<128x32xf32>
      %287 = arith.subf %275, %286 : vector<128x32xf32>
      %288 = arith.mulf %287, %287 : vector<128x32xf32>
      %cst_70 = arith.constant dense<0.000000e+00> : vector<128xf32>
      %289 = vector.multi_reduction <add>, %288, %cst_70 [1] : vector<128x32xf32> to vector<128xf32>
      %290 = vector.shape_cast %289 : vector<128xf32> to vector<128x1xf32>
      %cst_71 = arith.constant 3.200000e+01 : f32
      %291 = vector.broadcast %cst_71 : f32 to vector<128x1xf32>
      %292 = arith.divf %290, %291 : vector<128x1xf32>
      %293 = vector.broadcast %285 : vector<128x1xf32> to vector<128x32xf32>
      %294 = arith.subf %275, %293 : vector<128x32xf32>
      %cst_72 = arith.constant 9.99999974E-6 : f32
      %295 = vector.broadcast %cst_72 : f32 to vector<128x1xf32>
      %296 = arith.addf %292, %295 : vector<128x1xf32>
      %297 = math.rsqrt %296 : vector<128x1xf32>
      %298 = vector.broadcast %297 : vector<128x1xf32> to vector<128x32xf32>
      %299 = arith.mulf %294, %298 : vector<128x32xf32>
      %300 = vector.broadcast %280 : vector<1x32xf32> to vector<128x32xf32>
      %301 = arith.mulf %299, %300 : vector<128x32xf32>
      %302 = vector.broadcast %281 : vector<1x32xf32> to vector<128x32xf32>
      %303 = arith.addf %301, %302 : vector<128x32xf32>
      %304 = vector.extract_strided_slice %303 {offsets = [0, 0], sizes = [32, 32], strides = [1, 1]} : vector<128x32xf32> to vector<32x32xf32>
      %305 = vector.extract_strided_slice %303 {offsets = [32, 0], sizes = [32, 32], strides = [1, 1]} : vector<128x32xf32> to vector<32x32xf32>
      %306 = vector.extract_strided_slice %303 {offsets = [64, 0], sizes = [32, 32], strides = [1, 1]} : vector<128x32xf32> to vector<32x32xf32>
      %307 = vector.extract_strided_slice %303 {offsets = [96, 0], sizes = [32, 32], strides = [1, 1]} : vector<128x32xf32> to vector<32x32xf32>
      %c0_73 = arith.constant 0 : index
      %c0_74 = arith.constant 0 : index
      %308 = vector.load %arg21[%c0_73, %c0_74] : memref<1x32xf32, #tpu.memory_space<vmem>>, vector<1x32xf32>
      %309 = vector.broadcast %308 : vector<1x32xf32> to vector<32x32xf32>
      %310 = arith.mulf %304, %309 : vector<32x32xf32>
      %cst_75 = arith.constant dense<0.000000e+00> : vector<32xf32>
      %311 = vector.multi_reduction <add>, %310, %cst_75 [1] : vector<32x32xf32> to vector<32xf32>
      %312 = vector.shape_cast %311 : vector<32xf32> to vector<32x1xf32>
      %c0_76 = arith.constant 0 : index
      %c0_77 = arith.constant 0 : index
      %313 = vector.load %arg22[%c0_76, %c0_77] : memref<1x32xf32, #tpu.memory_space<vmem>>, vector<1x32xf32>
      %314 = vector.broadcast %313 : vector<1x32xf32> to vector<32x32xf32>
      %315 = arith.mulf %305, %314 : vector<32x32xf32>
      %cst_78 = arith.constant dense<0.000000e+00> : vector<32xf32>
      %316 = vector.multi_reduction <add>, %315, %cst_78 [1] : vector<32x32xf32> to vector<32xf32>
      %317 = vector.shape_cast %316 : vector<32xf32> to vector<32x1xf32>
      %318 = arith.addf %312, %317 : vector<32x1xf32>
      %c0_79 = arith.constant 0 : index
      %c0_80 = arith.constant 0 : index
      %319 = vector.load %arg23[%c0_79, %c0_80] : memref<1x1xf32, #tpu.memory_space<vmem>>, vector<1x1xf32>
      %320 = vector.broadcast %319 : vector<1x1xf32> to vector<32x1xf32>
      %321 = arith.addf %318, %320 : vector<32x1xf32>
      %c0_81 = arith.constant 0 : index
      %c0_82 = arith.constant 0 : index
      %322 = vector.load %arg22[%c0_81, %c0_82] : memref<1x32xf32, #tpu.memory_space<vmem>>, vector<1x32xf32>
      %323 = vector.broadcast %322 : vector<1x32xf32> to vector<32x32xf32>
      %324 = arith.mulf %306, %323 : vector<32x32xf32>
      %cst_83 = arith.constant dense<0.000000e+00> : vector<32xf32>
      %325 = vector.multi_reduction <add>, %324, %cst_83 [1] : vector<32x32xf32> to vector<32xf32>
      %326 = vector.shape_cast %325 : vector<32xf32> to vector<32x1xf32>
      %327 = arith.addf %312, %326 : vector<32x1xf32>
      %c0_84 = arith.constant 0 : index
      %c0_85 = arith.constant 0 : index
      %328 = vector.load %arg23[%c0_84, %c0_85] : memref<1x1xf32, #tpu.memory_space<vmem>>, vector<1x1xf32>
      %329 = vector.broadcast %328 : vector<1x1xf32> to vector<32x1xf32>
      %330 = arith.addf %327, %329 : vector<32x1xf32>
      %c0_86 = arith.constant 0 : index
      %c0_87 = arith.constant 0 : index
      %331 = vector.load %arg22[%c0_86, %c0_87] : memref<1x32xf32, #tpu.memory_space<vmem>>, vector<1x32xf32>
      %332 = vector.broadcast %331 : vector<1x32xf32> to vector<32x32xf32>
      %333 = arith.mulf %307, %332 : vector<32x32xf32>
      %cst_88 = arith.constant dense<0.000000e+00> : vector<32xf32>
      %334 = vector.multi_reduction <add>, %333, %cst_88 [1] : vector<32x32xf32> to vector<32xf32>
      %335 = vector.shape_cast %334 : vector<32xf32> to vector<32x1xf32>
      %336 = arith.addf %312, %335 : vector<32x1xf32>
      %c0_89 = arith.constant 0 : index
      %c0_90 = arith.constant 0 : index
      %337 = vector.load %arg23[%c0_89, %c0_90] : memref<1x1xf32, #tpu.memory_space<vmem>>, vector<1x1xf32>
      %338 = vector.broadcast %337 : vector<1x1xf32> to vector<32x1xf32>
      %339 = arith.addf %336, %338 : vector<32x1xf32>
      %340 = arith.maximumf %321, %330 : vector<32x1xf32>
      %341 = arith.maximumf %340, %339 : vector<32x1xf32>
      %342 = arith.subf %321, %341 : vector<32x1xf32>
      %343 = math.exp %342 : vector<32x1xf32>
      %344 = arith.subf %330, %341 : vector<32x1xf32>
      %345 = math.exp %344 : vector<32x1xf32>
      %346 = arith.subf %339, %341 : vector<32x1xf32>
      %347 = math.exp %346 : vector<32x1xf32>
      %348 = arith.addf %343, %345 : vector<32x1xf32>
      %349 = arith.addf %348, %347 : vector<32x1xf32>
      %350 = tpu.reciprocal %349 {approx = true} : vector<32x1xf32> -> vector<32x1xf32>
      %351 = arith.mulf %343, %350 : vector<32x1xf32>
      %352 = vector.broadcast %351 : vector<32x1xf32> to vector<32x32xf32>
      %353 = arith.mulf %352, %305 : vector<32x32xf32>
      %354 = arith.addf %304, %353 : vector<32x32xf32>
      %355 = arith.mulf %345, %350 : vector<32x1xf32>
      %356 = vector.broadcast %355 : vector<32x1xf32> to vector<32x32xf32>
      %357 = arith.mulf %356, %306 : vector<32x32xf32>
      %358 = arith.addf %354, %357 : vector<32x32xf32>
      %359 = arith.mulf %347, %350 : vector<32x1xf32>
      %360 = vector.broadcast %359 : vector<32x1xf32> to vector<32x32xf32>
      %361 = arith.mulf %360, %307 : vector<32x32xf32>
      %362 = arith.addf %358, %361 : vector<32x32xf32>
      %c0_91 = arith.constant 0 : index
      %c0_92 = arith.constant 0 : index
      %363 = vector.load %arg24[%c0_91, %c0_92] : memref<32x32xf32, #tpu.memory_space<vmem>>, vector<32x32xf32>
      tpu.vector_store %arg24[%c0_91, %c0_92], %362 {strides = array<i32>} : memref<32x32xf32, #tpu.memory_space<vmem>>, vector<32x32xf32>,
    } else {
    }
    return
  }
  func.func @transform_0(%arg0: i32, %arg1: i32) -> (i32, i32, i32) {
    %c0_i32 = arith.constant 0 : i32
    %c0_i32_0 = arith.constant 0 : i32
    %c0_i32_1 = arith.constant 0 : i32
    return %c0_i32, %arg0, %c0_i32_0 : i32, i32, i32
  }
  func.func @transform_1(%arg0: i32, %arg1: i32) -> (i32, i32) {
    %c0_i32 = arith.constant 0 : i32
    %c0_i32_0 = arith.constant 0 : i32
    %c0_i32_1 = arith.constant 0 : i32
    return %c0_i32, %c0_i32_0 : i32, i32
  }
  func.func @transform_2(%arg0: i32, %arg1: i32) -> (i32, i32) {
    %c0_i32 = arith.constant 0 : i32
    %c0_i32_0 = arith.constant 0 : i32
    %c0_i32_1 = arith.constant 0 : i32
    return %c0_i32, %c0_i32_0 : i32, i32
  }
  func.func @transform_3(%arg0: i32, %arg1: i32) -> (i32, i32) {
    %c0_i32 = arith.constant 0 : i32
    %c0_i32_0 = arith.constant 0 : i32
    %c0_i32_1 = arith.constant 0 : i32
    return %c0_i32, %c0_i32_0 : i32, i32
  }
  func.func @transform_4(%arg0: i32, %arg1: i32) -> (i32, i32) {
    %c0_i32 = arith.constant 0 : i32
    %c0_i32_0 = arith.constant 0 : i32
    %c0_i32_1 = arith.constant 0 : i32
    return %c0_i32, %c0_i32_0 : i32, i32
  }
  func.func @transform_5(%arg0: i32, %arg1: i32) -> (i32, i32, i32) {
    %c0_i32 = arith.constant 0 : i32
    %c0_i32_0 = arith.constant 0 : i32
    %c0_i32_1 = arith.constant 0 : i32
    return %arg1, %c0_i32, %c0_i32_0 : i32, i32, i32
  }
  func.func @transform_6(%arg0: i32, %arg1: i32) -> (i32, i32, i32) {
    %c0_i32 = arith.constant 0 : i32
    %c0_i32_0 = arith.constant 0 : i32
    %c0_i32_1 = arith.constant 0 : i32
    return %arg1, %c0_i32, %c0_i32_0 : i32, i32, i32
  }
  func.func @transform_7(%arg0: i32, %arg1: i32) -> (i32, i32, i32) {
    %c0_i32 = arith.constant 0 : i32
    %c0_i32_0 = arith.constant 0 : i32
    %c0_i32_1 = arith.constant 0 : i32
    return %arg1, %c0_i32, %c0_i32_0 : i32, i32, i32
  }
  func.func @transform_8(%arg0: i32, %arg1: i32) -> (i32, i32, i32) {
    %c0_i32 = arith.constant 0 : i32
    %c0_i32_0 = arith.constant 0 : i32
    %c0_i32_1 = arith.constant 0 : i32
    return %arg1, %c0_i32, %c0_i32_0 : i32, i32, i32
  }
  func.func @transform_9(%arg0: i32, %arg1: i32) -> (i32, i32, i32) {
    %c0_i32 = arith.constant 0 : i32
    %c0_i32_0 = arith.constant 0 : i32
    %c0_i32_1 = arith.constant 0 : i32
    return %arg1, %c0_i32, %c0_i32_0 : i32, i32, i32
  }
  func.func @transform_10(%arg0: i32, %arg1: i32) -> (i32, i32, i32) {
    %c0_i32 = arith.constant 0 : i32
    %c0_i32_0 = arith.constant 0 : i32
    %c0_i32_1 = arith.constant 0 : i32
    return %arg1, %c0_i32, %c0_i32_0 : i32, i32, i32
  }
  func.func @transform_11(%arg0: i32, %arg1: i32) -> (i32, i32, i32) {
    %c0_i32 = arith.constant 0 : i32
    %c0_i32_0 = arith.constant 0 : i32
    %c0_i32_1 = arith.constant 0 : i32
    return %arg1, %c0_i32, %c0_i32_0 : i32, i32, i32
  }
  func.func @transform_12(%arg0: i32, %arg1: i32) -> (i32, i32, i32) {
    %c0_i32 = arith.constant 0 : i32
    %c0_i32_0 = arith.constant 0 : i32
    %c0_i32_1 = arith.constant 0 : i32
    return %arg1, %c0_i32, %c0_i32_0 : i32, i32, i32
  }
  func.func @transform_13(%arg0: i32, %arg1: i32) -> (i32, i32, i32) {
    %c0_i32 = arith.constant 0 : i32
    %c0_i32_0 = arith.constant 0 : i32
    %c0_i32_1 = arith.constant 0 : i32
    return %arg1, %c0_i32, %c0_i32_0 : i32, i32, i32
  }
  func.func @transform_14(%arg0: i32, %arg1: i32) -> (i32, i32, i32) {
    %c0_i32 = arith.constant 0 : i32
    %c0_i32_0 = arith.constant 0 : i32
    %c0_i32_1 = arith.constant 0 : i32
    return %arg1, %c0_i32, %c0_i32_0 : i32, i32, i32
  }
  func.func @transform_15(%arg0: i32, %arg1: i32) -> (i32, i32, i32) {
    %c0_i32 = arith.constant 0 : i32
    %c0_i32_0 = arith.constant 0 : i32
    %c0_i32_1 = arith.constant 0 : i32
    return %arg1, %c0_i32, %c0_i32_0 : i32, i32, i32
  }
  func.func @transform_16(%arg0: i32, %arg1: i32) -> (i32, i32, i32) {
    %c0_i32 = arith.constant 0 : i32
    %c0_i32_0 = arith.constant 0 : i32
    %c0_i32_1 = arith.constant 0 : i32
    return %arg1, %c0_i32, %c0_i32_0 : i32, i32, i32
  }
  func.func @transform_17(%arg0: i32, %arg1: i32) -> (i32, i32) {
    %c0_i32 = arith.constant 0 : i32
    %c0_i32_0 = arith.constant 0 : i32
    %c0_i32_1 = arith.constant 0 : i32
    return %c0_i32, %c0_i32_0 : i32, i32
  }
  func.func @transform_18(%arg0: i32, %arg1: i32) -> (i32, i32) {
    %c0_i32 = arith.constant 0 : i32
    %c0_i32_0 = arith.constant 0 : i32
    %c0_i32_1 = arith.constant 0 : i32
    return %c0_i32, %c0_i32_0 : i32, i32
  }
  func.func @transform_19(%arg0: i32, %arg1: i32) -> (i32, i32) {
    %c0_i32 = arith.constant 0 : i32
    %c0_i32_0 = arith.constant 0 : i32
    %c0_i32_1 = arith.constant 0 : i32
    return %c0_i32, %c0_i32_0 : i32, i32
  }
  func.func @transform_20(%arg0: i32, %arg1: i32) -> (i32, i32) {
    %c0_i32 = arith.constant 0 : i32
    %c0_i32_0 = arith.constant 0 : i32
    %c0_i32_1 = arith.constant 0 : i32
    return %c0_i32, %c0_i32_0 : i32, i32
  }
  func.func @transform_21(%arg0: i32, %arg1: i32) -> (i32, i32) {
    %c0_i32 = arith.constant 0 : i32
    %c0_i32_0 = arith.constant 0 : i32
    %c0_i32_1 = arith.constant 0 : i32
    return %c0_i32, %c0_i32_0 : i32, i32
  }
  func.func @transform_22(%arg0: i32, %arg1: i32) -> (i32, i32) {
    %c0_i32 = arith.constant 0 : i32
    %c0_i32_0 = arith.constant 0 : i32
    return %arg0, %c0_i32 : i32, i32
  }
}

</mosaic_0001>

<bundles_post_ra>
// kernel: tpu_custom_call.1
= control target key start
LH: loop header
LB: loop body
LE: loop exit
PB: predicated region body
PF: predicated region fallthrough
CT: control target
= control target key end

     0   :  { %s8134_s0 = inlined_call_operand.vmem [shape: bf16[4,64,16], index: 0, kind: input, shape index: {}]   ;;  %s8135_s1 = inlined_call_operand.vmem [shape: bf16[16,32], index: 1, kind: input, shape index: {}]   ;;  %s8136_s2 = inlined_call_operand.vmem [shape: f32[1,32], index: 2, kind: input, shape index: {}]   ;;  %s8137_s3 = inlined_call_operand.vmem [shape: bf16[32,4], index: 3, kind: input, shape index: {}]   ;;  %s8138_s4 = inlined_call_operand.vmem [shape: bf16[4,32], index: 4, kind: input, shape index: {}]   ;;  %s8139_s5 = inlined_call_operand.vmem [shape: f32[2,1,32], index: 5, kind: input, shape index: {}]   ;;  %s8140_s6 = inlined_call_operand.vmem [shape: f32[2,1,32], index: 6, kind: input, shape index: {}]   ;;  %s8141_s7 = inlined_call_operand.vmem [shape: bf16[2,32,96], index: 7, kind: input, shape index: {}]   ;;  %s8142_s8 = inlined_call_operand.vmem [shape: f32[2,1,96], index: 8, kind: input, shape index: {}]   ;;  %s8143_s9 = inlined_call_operand.vmem [shape: bf16[2,32,32], index: 9, kind: input, shape index: {}]   ;;  %s8144_s10 = inlined_call_operand.vmem [shape: f32[2,1,32], index: 10, kind: input, shape index: {}]   ;;  %s8145_s11 = inlined_call_operand.vmem [shape: f32[2,1,32], index: 11, kind: input, shape index: {}]   ;;  %s8146_s12 = inlined_call_operand.vmem [shape: f32[2,1,32], index: 12, kind: input, shape index: {}]   ;;  %s8147_s13 = inlined_call_operand.vmem [shape: bf16[2,32,64], index: 13, kind: input, shape index: {}]   ;;  %s8148_s14 = inlined_call_operand.vmem [shape: f32[2,1,64], index: 14, kind: input, shape index: {}]   ;;  %s8149_s15 = inlined_call_operand.vmem [shape: bf16[2,64,32], index: 15, kind: input, shape index: {}]   ;;  %s8150_s16 = inlined_call_operand.vmem [shape: f32[2,1,32], index: 16, kind: input, shape index: {}]   ;;  %s8151_s17 = inlined_call_operand.vmem [shape: f32[1,32], index: 17, kind: input, shape index: {}]   ;;  %s8152_s18 = inlined_call_operand.vmem [shape: f32[1,32], index: 18, kind: input, shape index: {}]   ;;  %s8153_s19 = inlined_call_operand.vmem [shape: f32[1,32], index: 19, kind: input, shape index: {}]   ;;  %s8154_s20 = inlined_call_operand.vmem [shape: f32[1,32], index: 20, kind: input, shape index: {}]   ;;  %s8155_s21 = inlined_call_operand.<no memory space> [shape: f32[1,1], index: 21, kind: input, shape index: {}]   ;;  %s8156_s22 = inlined_call_operand.vmem [shape: f32[64,32], index: 22, kind: output, shape index: {}]  }
   0x1   :  { %8165 = sst [smem:[#allocation13_spill]] %s8134_s0  ;;  %v27_v0 = vstv %s8155_s21 }
   0x2   :  { %8166 = sst [smem:[#allocation14_spill]] %s8135_s1  ;;  %28 = vst [vmem:[#allocation3] sm:$0x1] %v27_v0 }
   0x3   :  { %8167 = sst [smem:[#allocation15_spill]] %s8136_s2 }
   0x4   :  { %8168 = sst [smem:[#allocation16_spill]] %s8137_s3 }
   0x5   :  { %8169 = sst [smem:[#allocation17_spill]] %s8138_s4 }
   0x6   :  { %8170 = sst [smem:[#allocation18_spill]] %s8139_s5 }
   0x7   :  { %8171 = sst [smem:[#allocation19_spill]] %s8140_s6 }
   0x8   :  { %8172 = sst [smem:[#allocation20_spill]] %s8141_s7 }
   0x9   :  { %8173 = sst [smem:[#allocation21_spill]] %s8143_s9 }
   0xa   :  { %8174 = sst [smem:[#allocation22_spill]] %s8151_s17 }
   0xb   :  { %8175 = sst [smem:[#allocation23_spill]] %s8152_s18 }
   0xc   :  { %8176 = sst [smem:[#allocation24_spill]] %s8153_s19 }
   0xd   :  { %8177 = sst [smem:[#allocation25_spill]] %s8154_s20 }
   0xe   :  { %8178 = sst [smem:[#allocation26_spill]] %s8156_s22 }
   0xf   :  { %s6109_s29 = smov 0   ;;  %s6111_s30 = smov 0  }
  0x10   :  { %s6113_s4 = smov 0   ;;  %s6115_s0 = smov 0  }
  0x11   :  { %s6117_s23 = smov 0   ;;  %s6119_s1 = smov 0  }
  0x12   :  { %s6121_s5 = smov 0  }
  0x13 LB: > { %8179 = sst [smem:[#allocation5_spill]] %s5966_s30  ;;  %s43_s21 = sadd.s32 1, %s5978_s23  ;;  %s5986_s5 = sphi %s6121_s5, %s34_s5   ;;  %s5982_s1 = sphi %s6119_s1, %s8224_s1   ;;  %s5978_s23 = sphi %s6117_s23, %s8223_s23   ;;  %s5974_s0 = sphi %s6115_s0, %s8222_s0   ;;  %s5970_s4 = sphi %s6113_s4, %s8221_s4   ;;  %s5966_s30 = sphi %s6111_s30, %s8220_s30   ;;  %s5962_s29 = sphi %s6109_s29, %s8219_s29  }
  0x14   : > { %8180 = sst [smem:[#allocation6_spill]] %s5970_s4  ;;  %p44_p0 = scmp.ge.s32.totalorder %s43_s21, 2 }
  0x15   : > { %8181 = sst [smem:[#allocation7_spill]] %s5978_s23  ;;  %s46_s24 = sadd.s32 1, %s5982_s1 }
  0x16   : > { %8182 = sst [smem:[#allocation8_spill]] %s5982_s1  ;;  %p60_p1 = scmp.ne.s32.totalorder %s5966_s30, %s5962_s29 }
  0x17   : > { %8183 = sst [smem:[#allocation9_spill]] %s5986_s5  ;;  %p61_p2 = scmp.eq.s32.totalorder %s5986_s5, 0 }
  0x18   : > { %s8226_s21 = smov (%p44_p0, %s43_s21), 0  ;;  %s8228_s24 = smov (!%p44_p0, %s46_s24), %s5982_s1 }
  0x19   : > { %8184 = sst [smem:[#allocation10_spill]] %s8226_s21  ;;  %p62_p3 = por %p61_p2, %p60_p1 }
  0x1a   : > { %p48_p4 = scmp.ge.s32.totalorder %s8228_s24, 2  ;;  %s53_s25 = sadd.s32 1, %s5966_s30 }
  0x1b   : > { %p4965_p6 = scmp.ge.s32.totalorder %s5986_s5, 4 }
  0x1c   : > { %s8230_s24 = smov (%p48_p4, %s8228_s24), 0 }
  0x1d   : > { %8185 = sst [smem:[#allocation11_spill]] %s8230_s24  ;;  %s50_s6 = ssub.s32 %s5982_s1, %s8230_s24 }
  0x1e   : > { %p51_p5 = scmp.eq.s32.totalorder %s50_s6, 0  ;;  %640 = sbr.rel (%p4965_p6) target bundleno = 49 (0x31), region = 52 }
  0x20   : > { %s6158_s26 = scalar_select %p51_p5, %s5966_s30, %s53_s25  }
  0x22   : > { %8186 = sst [smem:[#allocation12_spill]] %s6158_s26 }
  0x23   : > { %643 = sbr.rel (!%p62_p3) target bundleno = 49 (0x31), region = 56  ;;  %s645_s2 = sand.u32 (%p62_p3), 1, %s5966_s30  }
  0x24   : > { %s5142_s27 = sshll.u32 (%p62_p3), %s5982_s1, 4  ;;  %s4966_s3 = sshll.u32 (%p62_p3), %s645_s2, 6 }
  0x25   : > { %s8187_s23 = sld [smem:[#allocation13_spill]] (%p62_p3)  ;;  %s647_s24 = scalar_lea.vmem (%p62_p3), [#allocation4], %s4966_s3 }
  0x2b   : > { %s650_s20 = scalar_lea.vmem %s8187_s23, %s5142_s27 }
  0x2c   : > { %v667_v1 = vld [vmem:[%s650_s20] sm:$0xff]   ;;  %v671_v2 = vld [vmem:[%s650_s20 + $0x8] sm:$0xff]  }
  0x2d   : > { %v675_v3 = vld [vmem:[%s650_s20 + $0x20] sm:$0xff]   ;;  %668 = vst [vmem:[%s647_s24] sm:$0xff] %v667_v1   ;;  %672 = vst [vmem:[%s647_s24 + $0x8] sm:$0xff] %v671_v2   ;;  %v679_v4 = vld [vmem:[%s650_s20 + $0x28] sm:$0xff]  }
  0x2e   : > { %676 = vst [vmem:[%s647_s24 + $0x10] sm:$0xff] %v675_v3   ;;  %v683_v5 = vld [vmem:[%s650_s20 + $0x40] sm:$0xff]   ;;  %v687_v6 = vld [vmem:[%s650_s20 + $0x48] sm:$0xff]   ;;  %680 = vst [vmem:[%s647_s24 + $0x18] sm:$0xff] %v679_v4  }
  0x2f   : > { %684 = vst [vmem:[%s647_s24 + $0x20] sm:$0xff] %v683_v5   ;;  %688 = vst [vmem:[%s647_s24 + $0x28] sm:$0xff] %v687_v6   ;;  %v691_v7 = vld [vmem:[%s650_s20 + $0x60] sm:$0xff]   ;;  %v695_v8 = vld [vmem:[%s650_s20 + $0x68] sm:$0xff]  }
  0x30   : > { %692 = vst [vmem:[%s647_s24 + $0x30] sm:$0xff] %v691_v7   ;;  %696 = vst [vmem:[%s647_s24 + $0x38] sm:$0xff] %v695_v8  }
  0x31 PF: > { %p4969_p7 = scmp.ge.s32.totalorder %s5986_s5, 1  ;;  %p833_p8 = scmp.lt.s32.totalorder %s5986_s5, 5 }
  0x33   : > { %p834_p9 = pnand %p4969_p7, %p833_p8 }
  0x34   : > { %s840_s23 = sand.u32 (!%p834_p9), 1, %s5962_s29   ;;  %p946_p10 = scmp.lt.s32.totalorder (!%p834_p9), %s5970_s4, 1 }
  0x35   : > { %837 = sbr.rel (%p834_p9) target bundleno = 3176 (0xc68), region = 145  ;;  %s4970_s21 = sshll.u32 (!%p834_p9), %s840_s23, 6 }
  0x36   : > { %s4979_s6 = sshll.u32 (!%p834_p9), %s5974_s0, 2  ;;  %s8190_s7 = sld [smem:[#allocation20_spill]] (!%p834_p9) }
  0x37   : > { %p991_p11 = scmp.lt.s32.totalorder (!%p834_p9), %s4979_s6, 7  ;;  %s8191_s9 = sld [smem:[#allocation21_spill]] (!%p834_p9) }
  0x38   : > { %s8192_s19 = sld [smem:[#allocation26_spill]] (!%p834_p9)  ;;  %s842_s5 = scalar_lea.vmem (!%p834_p9), [#allocation4], %s4970_s21 }
  0x3a   : > { %s6172_s20 = scalar_select %p946_p10, %s5970_s4, 1 }
  0x3b   : > { %s8232_s6 = smov (!%p991_p11, %s4979_s6), 7 }
  0x3c   : > { %s5143_s23 = sshll.u32 %s6172_s20, 4  ;;  %s989_s1 = scalar_lea.vmem %s8150_s16, %s6172_s20 }
  0x3d   : > { %s6190_s18 = scalar_lea.vmem %s8190_s7, %s5143_s23  ;;  %s6195_s22 = scalar_lea.vmem %s8191_s9, %s5143_s23 }
  0x3e   : > { %s6212_s28 = scalar_lea.vmem %s8147_s13, %s5143_s23  ;;  %s5146_s7 = sshll.u32 %s6172_s20, 5 }
  0x3f   : > { %s6222_s29 = scalar_lea.vmem %s8149_s15, %s5146_s7  ;;  %s4980_s26 = sshll.u32 %s8232_s6, 3 }
  0x40   : > { %s6231_s23 = scalar_lea.vmem %s8192_s19, %s4980_s26  ;;  %s8193_s9 = sld [smem:[#allocation6_spill]] }
  0x46   : > { %p4981_p12 = scmp.ne.s32.totalorder %s8193_s9, 0 }
  0x47   : > { %s8194_s2 = sld [smem:[#allocation14_spill]] (!%p4981_p12) }
  0x48   : > { %1000 = sbr.rel (%p4981_p12) target bundleno = 293 (0x125), region = 153  ;;  %s8195_s27 = sld [smem:[#allocation15_spill]] (!%p4981_p12) }
  0x4d   : > { %v5570_v9 = vld [vmem:[%s8194_s2] sm:$0xff]   ;;  %vm1030_vm0 = vcmask 130048   ;;  %v5573_v12 = vld [vmem:[%s842_s5 + $0x10] sm:$0xff]   ;;  %v5574_v13 = vld [vmem:[%s842_s5 + $0x8] sm:$0xff]   ;;  %vm1086_vm1 = vcmask 261120  }
  0x4e   : > { %v5571_v10 = vld [vmem:[%s8194_s2] sm:$0xff]   ;;  %5268 = vmatprep.subr.bf16.mxu0 %v5570_v9  ;;  %5276 = vmatprep.mubr.msk.bf16.mxu1 %vm1030_vm0, %v5573_v12  ;;  %v5579_v18 = vld [vmem:[%s842_s5 + $0x30] sm:$0xff]   ;;  %v5580_v19 = vld [vmem:[%s842_s5 + $0x28] sm:$0xff]  }
  0x4f   : > { %v5572_v11 = vld [vmem:[%s842_s5] sm:$0xff]   ;;  %5274 = vmatprep.subr.bf16.mxu1 %v5571_v10  ;;  %5269 = vmatpush3.bf16.msra.mxu0 %v5570_v9  ;;  %v5575_v14 = vld [vmem:[%s842_s5 + $0x18] sm:$0xff]  }
  0x50   : > { %5275 = vmatpush3.bf16.msra.mxu1 %v5571_v10  ;;  %5270 = vmatprep.mubr.msk.bf16.mxu0 %vm1030_vm0, %v5572_v11  ;;  %v5576_v15 = vld [vmem:[%s8194_s2] sm:$0xff]  }
  0x51   : > { %v5577_v16 = vld [vmem:[%s8194_s2] sm:$0xff]   ;;  %5280 = vmatprep.subr.bf16.mxu0 %v5576_v15 }
  0x52   : > { %5271 = vmatmul.mubr.msk.bf16.vlgmr.msra.gmra.mxu0 %vm1030_vm0, %v5574_v13  ;;  %v5578_v17 = vld [vmem:[%s842_s5 + $0x20] sm:$0xff]   ;;  %5286 = vmatprep.subr.bf16.mxu1 %v5577_v16  ;;  %v5581_v20 = vld [vmem:[%s842_s5 + $0x38] sm:$0xff]  }
  0x53   : > { %5277 = vmatmul.mubr.msk.bf16.vlgmr.msra.gmra.mxu1 %vm1030_vm0, %v5575_v14  ;;  %5281 = vmatpush3.bf16.msra.mxu0 %v5576_v15  ;;  %v4982_v21 = vld [vmem:[%s8195_s27] ss:$0 sm:$0xff] }
  0x54   : > { %5287 = vmatpush3.bf16.msra.mxu1 %v5577_v16  ;;  %5282 = vmatprep.mubr.msk.bf16.mxu0 %vm1030_vm0, %v5578_v17 }
  0x55   : > { %5288 = vmatprep.mubr.msk.bf16.mxu1 %vm1030_vm0, %v5579_v18 }
  0x5a   : > { %5283 = vmatmul.mubr.msk.bf16.vlgmr.msra.gmra.mxu0 %vm1030_vm0, %v5580_v19 }
  0x5b   : > { %5289 = vmatmul.mubr.msk.bf16.vlgmr.msra.gmra.mxu1 %vm1030_vm0, %v5581_v20 }
 0x112   : > { %v5272_v22 = vpop.f32.mrf.mxu0 }
 0x113   : > { %v1080_v23 = vadd.f32 %v5272_v22, %v4982_v21  ;;  %v5278_v24 = vpop.f32.mrf.mxu1 }
 0x114   : > { %v1170_v25 = vadd.f32 %v5278_v24, %v4982_v21  ;;  %v1071_v26 = vpop.f32.mrf.mxu0 }
 0x115   : > { %1089 = vst.msk [vmem:[#allocation2 + $0x10] sm:$0xff] %vm1086_vm1, %v1080_v23  ;;  %v1072_v27 = vadd.f32 %v4982_v21, %v1071_v26  ;;  %v1161_v28 = vpop.f32.mrf.mxu1 }
 0x116   : > { %1178 = vst.msk [vmem:[#allocation2 + $0x30] sm:$0xff] %vm1086_vm1, %v1170_v25  ;;  %v1162_v29 = vadd.f32 %v4982_v21, %v1161_v28  ;;  %v5273_v30 = vpop.f32.mrf.mxu0 }
 0x117   : > { %1087 = vst.msk [vmem:[#allocation2] sm:$0xff] %vm1086_vm1, %v1072_v27  ;;  %v1083_v31 = vadd.f32 %v5273_v30, %v4982_v21  ;;  %v5279_v32 = vpop.f32.mrf.mxu1 }
 0x118   : > { %1176 = vst.msk [vmem:[#allocation2 + $0x20] sm:$0xff] %vm1086_vm1, %v1162_v29  ;;  %v1173_v33 = vadd.f32 %v5279_v32, %v4982_v21  ;;  %v1074_v34 = vpop.f32.mrf.mxu0 }
 0x119   : > { %1090 = vst.msk [vmem:[#allocation2 + $0x18] sm:$0xff] %vm1086_vm1, %v1083_v31  ;;  %v1075_v35 = vadd.f32 %v4982_v21, %v1074_v34  ;;  %v1164_v36 = vpop.f32.mrf.mxu1 }
 0x11a   : > { %1179 = vst.msk [vmem:[#allocation2 + $0x38] sm:$0xff] %vm1086_vm1, %v1173_v33  ;;  %v1165_v37 = vadd.f32 %v4982_v21, %v1164_v36  ;;  %v5284_v38 = vpop.f32.mrf.mxu0 }
 0x11b   : > { %1088 = vst.msk [vmem:[#allocation2 + $0x8] sm:$0xff] %vm1086_vm1, %v1075_v35  ;;  %v1259_v39 = vadd.f32 %v5284_v38, %v4982_v21  ;;  %v5290_v40 = vpop.f32.mrf.mxu1 }
 0x11c   : > { %1177 = vst.msk [vmem:[#allocation2 + $0x28] sm:$0xff] %vm1086_vm1, %v1165_v37  ;;  %v1348_v41 = vadd.f32 %v5290_v40, %v4982_v21  ;;  %v1250_v42 = vpop.f32.mrf.mxu0 }
 0x11d   : > { %1267 = vst.msk [vmem:[#allocation2 + $0x50] sm:$0xff] %vm1086_vm1, %v1259_v39  ;;  %v1251_v43 = vadd.f32 %v4982_v21, %v1250_v42  ;;  %v1339_v44 = vpop.f32.mrf.mxu1 }
 0x11e   : > { %1356 = vst.msk [vmem:[#allocation2 + $0x70] sm:$0xff] %vm1086_vm1, %v1348_v41  ;;  %v1340_v45 = vadd.f32 %v4982_v21, %v1339_v44  ;;  %v5285_v46 = vpop.f32.mrf.mxu0 }
 0x11f   : > { %1265 = vst.msk [vmem:[#allocation2 + $0x40] sm:$0xff] %vm1086_vm1, %v1251_v43  ;;  %v1262_v47 = vadd.f32 %v5285_v46, %v4982_v21  ;;  %v5291_v48 = vpop.f32.mrf.mxu1 }
 0x120   : > { %1354 = vst.msk [vmem:[#allocation2 + $0x60] sm:$0xff] %vm1086_vm1, %v1340_v45  ;;  %v1351_v49 = vadd.f32 %v5291_v48, %v4982_v21  ;;  %v1253_v50 = vpop.f32.mrf.mxu0 }
 0x121   : > { %1268 = vst.msk [vmem:[#allocation2 + $0x58] sm:$0xff] %vm1086_vm1, %v1262_v47  ;;  %v1254_v51 = vadd.f32 %v4982_v21, %v1253_v50  ;;  %v1342_v52 = vpop.f32.mrf.mxu1 }
 0x122   : > { %1357 = vst.msk [vmem:[#allocation2 + $0x78] sm:$0xff] %vm1086_vm1, %v1351_v49  ;;  %v1343_v53 = vadd.f32 %v4982_v21, %v1342_v52 }
 0x123   : > { %1266 = vst.msk [vmem:[#allocation2 + $0x48] sm:$0xff] %vm1086_vm1, %v1254_v51 }
 0x124   : > { %1355 = vst.msk [vmem:[#allocation2 + $0x68] sm:$0xff] %vm1086_vm1, %v1343_v53 }
 0x125 PF: > { %v1358_v54 = vld [vmem:[#allocation2] sm:$0xff]  ;;  %vm1376_vm2 = vcmask 261120   ;;  %v1360_v55 = vld [vmem:[#allocation2 + $0x10] sm:$0xff]  ;;  %v1359_v56 = vld [vmem:[#allocation2 + $0x8] sm:$0xff]  ;;  %s8196_s26 = sld [smem:[#allocation18_spill]]  ;;  %s8202_s25 = scalar_lea.vmem %s8142_s8, %s6172_s20  ;;  %vm2841_vm3 = vcmask 1041408  }
 0x126   : > { %v1377_v57 = vsel %vm1376_vm2, %v1358_v54, 0.0  ;;  %v1383_v58 = vsel %vm1376_vm2, %v1360_v55, 0.0  ;;  %v1361_v59 = vld [vmem:[#allocation2 + $0x18] sm:$0xff]  ;;  %v6275_v60 = vld [vmem:[#allocation2 + $0x20] sm:$0xff]  ;;  %v6277_v61 = vld [vmem:[#allocation2 + $0x28] sm:$0xff]  ;;  %v1380_v62 = vsel %vm1376_vm2, %v1359_v56, 0.0  ;;  %s8210_s9 = scalar_lea.vmem %s8145_s11, %s6172_s20  ;;  %s8211_s3 = scalar_lea.vmem %s8146_s12, %s6172_s20 }
 0x127   : > { %1378 = vadd.xlane.f32.xlu0 %v1377_v57  ;;  %1384 = vadd.xlane.f32.xlu1 %v1383_v58  ;;  %v1386_v63 = vsel %vm1376_vm2, %v1361_v59, 0.0  ;;  %v6281_v0 = vld [vmem:[#allocation2 + $0x30] sm:$0xff]  ;;  %v6283_v1 = vld [vmem:[#allocation2 + $0x38] sm:$0xff]  ;;  %v1389_v2 = vsel %vm1376_vm2, %v6275_v60, 0.0  ;;  %v1392_v3 = vsel %vm1376_vm2, %v6277_v61, 0.0  ;;  %v6293_v6 = vld [vmem:[#allocation2 + $0x40] sm:$0xff] }
 0x128   : > { %v1395_v4 = vsel %vm1376_vm2, %v6281_v0, 0.0  ;;  %v1398_v5 = vsel %vm1376_vm2, %v6283_v1, 0.0  ;;  %v1401_v8 = vsel %vm1376_vm2, %v6293_v6, 0.0  ;;  %v6301_v10 = vld [vmem:[#allocation2 + $0x50] sm:$0xff]  ;;  %v6303_v11 = vld [vmem:[#allocation2 + $0x58] sm:$0xff]  ;;  %v6309_v14 = vld [vmem:[#allocation2 + $0x60] sm:$0xff] }
 0x129   : > { %v1407_v12 = vsel %vm1376_vm2, %v6301_v10, 0.0  ;;  %v1410_v13 = vsel %vm1376_vm2, %v6303_v11, 0.0  ;;  %v1413_v16 = vsel %vm1376_vm2, %v6309_v14, 0.0  ;;  %v6317_v18 = vld [vmem:[#allocation2 + $0x70] sm:$0xff]  ;;  %v6319_v19 = vld [vmem:[#allocation2 + $0x78] sm:$0xff]  ;;  %s8198_s4 = sld [smem:[#allocation19_spill]] }
 0x12a   : > { %v6295_v7 = vld [vmem:[#allocation2 + $0x48] sm:$0xff]  ;;  %v1419_v20 = vsel %vm1376_vm2, %v6317_v18, 0.0  ;;  %v1422_v21 = vsel %vm1376_vm2, %v6319_v19, 0.0  ;;  %s8200_s30 = sld [smem:[#allocation16_spill]]  ;;  %s5988_s0 = smov 96   ;;  %vm2744_vm4 = vcmask 31744  }
 0x12b   : > { %1381 = vadd.xlane.f32.xlu0 %v1380_v62  ;;  %1387 = vadd.xlane.f32.xlu1 %v1386_v63  ;;  %v1404_v9 = vsel %vm1376_vm2, %v6295_v7, 0.0  ;;  %v6311_v15 = vld [vmem:[#allocation2 + $0x68] sm:$0xff]  ;;  %s8197_s19 = scalar_lea.vmem %s8196_s26, %s6172_s20  ;;  %s5989_s26 = smov 64   ;;  %vm4068_vm5 = vcmask 523264  }
 0x12c   : > { %v1416_v17 = vsel %vm1376_vm2, %v6311_v15, 0.0  ;;  %s8208_s17 = sld [smem:[#allocation17_spill]] }
 0x12f   : > { %1390 = vadd.xlane.f32.xlu0 %v1389_v2  ;;  %1393 = vadd.xlane.f32.xlu1 %v1392_v3  ;;  %s8199_s7 = scalar_lea.vmem %s8198_s4, %s6172_s20 }
 0x130   : > { %s8201_s21 = smov %s8200_s30 }
 0x133   : > { %1396 = vadd.xlane.f32.xlu0 %v1395_v4  ;;  %1399 = vadd.xlane.f32.xlu1 %v1398_v5 }
 0x137   : > { %1402 = vadd.xlane.f32.xlu0 %v1401_v8  ;;  %1405 = vadd.xlane.f32.xlu1 %v1404_v9 }
 0x13b   : > { %1408 = vadd.xlane.f32.xlu0 %v1407_v12  ;;  %1411 = vadd.xlane.f32.xlu1 %v1410_v13 }
 0x13f   : > { %1414 = vadd.xlane.f32.xlu0 %v1413_v16  ;;  %1417 = vadd.xlane.f32.xlu1 %v1416_v17 }
 0x143   : > { %1420 = vadd.xlane.f32.xlu0 %v1419_v20  ;;  %1423 = vadd.xlane.f32.xlu1 %v1422_v21 }
 0x1b0   : > { %v1379_v22 = vpop.xlane.xlu0 %1378  ;;  %v1385_v23 = vpop.xlane.xlu1 %1384 }
 0x1b1   : > { %v1426_v24 = vmul.f32 0.03125, %v1379_v22  ;;  %v1428_v25 = vmul.f32 0.03125, %v1385_v23 }
 0x1b3   : > { %v6325_v26 = vsub.f32 %v1358_v54, %v1426_v24  ;;  %v6327_v27 = vsub.f32 %v1360_v55, %v1428_v25 }
 0x1b4   : > { %v1382_v28 = vpop.xlane.xlu0 %1381  ;;  %v1388_v29 = vpop.xlane.xlu1 %1387 }
 0x1b5   : > { %v1427_v30 = vmul.f32 0.03125, %v1382_v28  ;;  %v1429_v31 = vmul.f32 0.03125, %v1388_v29  ;;  %v1458_v32 = vmul.f32 %v6325_v26, %v6325_v26  ;;  %v1460_v33 = vmul.f32 %v6327_v27, %v6327_v27 }
 0x1b7   : > { %v6333_v34 = vsub.f32 %v1359_v56, %v1427_v30  ;;  %v6335_v35 = vsub.f32 %v1361_v59, %v1429_v31  ;;  %v1474_v36 = vsel %vm1376_vm2, %v1458_v32, 0.0  ;;  %v1480_v39 = vsel %vm1376_vm2, %v1460_v33, 0.0 }
 0x1b8   : > { %1475 = vadd.xlane.f32.xlu0 %v1474_v36  ;;  %v1391_v37 = vpop.xlane.xlu0 %1390  ;;  %v1394_v38 = vpop.xlane.xlu1 %1393 }
 0x1b9   : > { %v1430_v40 = vmul.f32 0.03125, %v1391_v37  ;;  %v1431_v41 = vmul.f32 0.03125, %v1394_v38  ;;  %v1459_v42 = vmul.f32 %v6333_v34, %v6333_v34  ;;  %v1461_v43 = vmul.f32 %v6335_v35, %v6335_v35 }
 0x1bb   : > { %v6344_v44 = vsub.f32 %v6275_v60, %v1430_v40  ;;  %v6347_v45 = vsub.f32 %v6277_v61, %v1431_v41  ;;  %v1477_v46 = vsel %vm1376_vm2, %v1459_v42, 0.0  ;;  %v1483_v49 = vsel %vm1376_vm2, %v1461_v43, 0.0  ;;  %v5583_v43 = vld [vmem:[%s6190_s18] sm:$0xff]  }
 0x1bc   : > { %1481 = vadd.xlane.f32.xlu0 %v1480_v39  ;;  %1478 = vadd.xlane.f32.xlu1 %v1477_v46  ;;  %v1397_v47 = vpop.xlane.xlu0 %1396  ;;  %v1400_v48 = vpop.xlane.xlu1 %1399 }
 0x1bd   : > { %v1432_v50 = vmul.f32 0.03125, %v1397_v47  ;;  %v1433_v51 = vmul.f32 0.03125, %v1400_v48  ;;  %v1462_v52 = vmul.f32 %v6344_v44, %v6344_v44  ;;  %v1463_v53 = vmul.f32 %v6347_v45, %v6347_v45 }
 0x1bf   : > { %v6356_v54 = vsub.f32 %v6281_v0, %v1432_v50  ;;  %v6359_v55 = vsub.f32 %v6283_v1, %v1433_v51  ;;  %v1486_v56 = vsel %vm1376_vm2, %v1462_v52, 0.0  ;;  %v1489_v59 = vsel %vm1376_vm2, %v1463_v53, 0.0 }
 0x1c0   : > { %1484 = vadd.xlane.f32.xlu1 %v1483_v49  ;;  %1487 = vadd.xlane.f32.xlu0 %v1486_v56  ;;  %v1403_v57 = vpop.xlane.xlu0 %1402  ;;  %v1406_v58 = vpop.xlane.xlu1 %1405 }
 0x1c1   : > { %v1434_v60 = vmul.f32 0.03125, %v1403_v57  ;;  %v1435_v61 = vmul.f32 0.03125, %v1406_v58  ;;  %v1464_v62 = vmul.f32 %v6356_v54, %v6356_v54  ;;  %v1465_v63 = vmul.f32 %v6359_v55, %v6359_v55 }
 0x1c3   : > { %v6368_v0 = vsub.f32 %v6293_v6, %v1434_v60  ;;  %v6371_v1 = vsub.f32 %v6295_v7, %v1435_v61  ;;  %v1492_v2 = vsel %vm1376_vm2, %v1464_v62, 0.0  ;;  %v1495_v5 = vsel %vm1376_vm2, %v1465_v63, 0.0 }
 0x1c4   : > { %1490 = vadd.xlane.f32.xlu1 %v1489_v59  ;;  %1493 = vadd.xlane.f32.xlu0 %v1492_v2  ;;  %v1409_v3 = vpop.xlane.xlu0 %1408  ;;  %v1412_v4 = vpop.xlane.xlu1 %1411 }
 0x1c5   : > { %v1436_v8 = vmul.f32 0.03125, %v1409_v3  ;;  %v1437_v9 = vmul.f32 0.03125, %v1412_v4  ;;  %v1466_v12 = vmul.f32 %v6368_v0, %v6368_v0  ;;  %v1467_v6 = vmul.f32 %v6371_v1, %v6371_v1 }
 0x1c7   : > { %v6380_v13 = vsub.f32 %v6301_v10, %v1436_v8  ;;  %v6383_v7 = vsub.f32 %v6303_v11, %v1437_v9  ;;  %v1498_v16 = vsel %vm1376_vm2, %v1466_v12, 0.0  ;;  %v1501_v21 = vsel %vm1376_vm2, %v1467_v6, 0.0 }
 0x1c8   : > { %1496 = vadd.xlane.f32.xlu1 %v1495_v5  ;;  %1499 = vadd.xlane.f32.xlu0 %v1498_v16  ;;  %v1415_v17 = vpop.xlane.xlu0 %1414  ;;  %v1418_v20 = vpop.xlane.xlu1 %1417 }
 0x1c9   : > { %v1438_v22 = vmul.f32 0.03125, %v1415_v17  ;;  %v1439_v23 = vmul.f32 0.03125, %v1418_v20  ;;  %v1468_v24 = vmul.f32 %v6380_v13, %v6380_v13  ;;  %v1469_v10 = vmul.f32 %v6383_v7, %v6383_v7 }
 0x1cb   : > { %v6392_v25 = vsub.f32 %v6309_v14, %v1438_v22  ;;  %v6395_v11 = vsub.f32 %v6311_v15, %v1439_v23  ;;  %v1504_v28 = vsel %vm1376_vm2, %v1468_v24, 0.0  ;;  %v1507_v31 = vsel %vm1376_vm2, %v1469_v10, 0.0  ;;  %v6424_v22 = vld [vmem:[%s8197_s19] ss:$0 sm:$0xff] }
 0x1cc   : > { %1502 = vadd.xlane.f32.xlu1 %v1501_v21  ;;  %1505 = vadd.xlane.f32.xlu0 %v1504_v28  ;;  %v1421_v29 = vpop.xlane.xlu0 %1420  ;;  %v1424_v30 = vpop.xlane.xlu1 %1423 }
 0x1cd   : > { %v1440_v32 = vmul.f32 0.03125, %v1421_v29  ;;  %v1441_v33 = vmul.f32 0.03125, %v1424_v30  ;;  %v1470_v36 = vmul.f32 %v6392_v25, %v6392_v25  ;;  %v1471_v14 = vmul.f32 %v6395_v11, %v6395_v11 }
 0x1cf   : > { %v6404_v15 = vsub.f32 %v6317_v18, %v1440_v32  ;;  %v6407_v37 = vsub.f32 %v6319_v19, %v1441_v33  ;;  %v1510_v38 = vsel %vm1376_vm2, %v1470_v36, 0.0  ;;  %v1513_v39 = vsel %vm1376_vm2, %v1471_v14, 0.0  ;;  %v5582_v19 = vld [vmem:[%s6190_s18 + $0x8] sm:$0xff]   ;;  %v6433_v14 = vld [vmem:[%s8199_s7] ss:$0 sm:$0xff]  ;;  %s8209_s7 = scalar_lea.vmem %s8144_s10, %s6172_s20  ;;  %s8212_s18 = scalar_lea.vmem %s8148_s14, %s6172_s20 }
 0x1d0   : > { %1508 = vadd.xlane.f32.xlu1 %v1507_v31  ;;  %1511 = vadd.xlane.f32.xlu0 %v1510_v38  ;;  %s8213_s20 = sld [smem:[#allocation6_spill]] }
 0x1d1   : > { %v1472_v40 = vmul.f32 %v6404_v15, %v6404_v15  ;;  %v1473_v41 = vmul.f32 %v6407_v37, %v6407_v37  ;;  %5292 = vmatprep.subr.bf16.mxu0 %v5582_v19 }
 0x1d2   : > { %5293 = vmatpush3.bf16.msra.mxu0 %v5582_v19 }
 0x1d3   : > { %v1516_v42 = vsel %vm1376_vm2, %v1472_v40, 0.0  ;;  %v1519_v18 = vsel %vm1376_vm2, %v1473_v41, 0.0  ;;  %5294 = vmatprep.subr.bf16.mxu0 %v5583_v43 }
 0x1d4   : > { %1514 = vadd.xlane.f32.xlu1 %v1513_v39  ;;  %1517 = vadd.xlane.f32.xlu0 %v1516_v42 }
 0x1d6   : > { %5295 = vmatpush3.bf16.msra.mxu0 %v5583_v43  ;;  %p5134_p13 = scmp.ne.s32.totalorder %s8213_s20, 1 }
 0x1d7   : > { %s8214_s19 = sld [smem:[#allocation22_spill]] (!%p5134_p13) }
 0x1d8   : > { %1520 = vadd.xlane.f32.xlu1 %v1519_v18 }
 0x241   : > { %v1476_v46 = vpop.xlane.xlu0 %1475 }
 0x242   : > { %v1522_v47 = vmul.f32 0.03125, %v1476_v46 }
 0x244   : > { %v1538_v48 = vadd.f32 1e-05, %v1522_v47 }
 0x245   : > { %v1479_v49 = vpop.xlane.xlu1 %1478  ;;  %v1482_v50 = vpop.xlane.xlu0 %1481 }
 0x246   : > { %5594 = vrsqrt.f32 %v1538_v48  ;;  %v1523_v51 = vmul.f32 0.03125, %v1479_v49  ;;  %v1524_v52 = vmul.f32 0.03125, %v1482_v50 }
 0x248   : > { %v1539_v53 = vadd.f32 1e-05, %v1523_v51  ;;  %v1540_v56 = vadd.f32 1e-05, %v1524_v52 }
 0x249   : > { %v1485_v57 = vpop.xlane.xlu1 %1484  ;;  %v1488_v58 = vpop.xlane.xlu0 %1487 }
 0x24a   : > { %5596 = vrsqrt.f32 %v1539_v53  ;;  %v1525_v59 = vmul.f32 0.03125, %v1485_v57  ;;  %v1526_v60 = vmul.f32 0.03125, %v1488_v58 }
 0x24b   : > { %5598 = vrsqrt.f32 %v1540_v56 }
 0x24c   : > { %v1541_v61 = vadd.f32 1e-05, %v1525_v59  ;;  %v1542_v62 = vadd.f32 1e-05, %v1526_v60 }
 0x24d   : > { %v1491_v63 = vpop.xlane.xlu1 %1490  ;;  %v1494_v2 = vpop.xlane.xlu0 %1493 }
 0x24e   : > { %5600 = vrsqrt.f32 %v1541_v61  ;;  %v1527_v3 = vmul.f32 0.03125, %v1491_v63  ;;  %v1528_v4 = vmul.f32 0.03125, %v1494_v2 }
 0x24f   : > { %5602 = vrsqrt.f32 %v1542_v62 }
 0x250   : > { %v1543_v5 = vadd.f32 1e-05, %v1527_v3  ;;  %v1544_v8 = vadd.f32 1e-05, %v1528_v4 }
 0x251   : > { %v1497_v9 = vpop.xlane.xlu1 %1496  ;;  %v1500_v12 = vpop.xlane.xlu0 %1499 }
 0x252   : > { %5604 = vrsqrt.f32 %v1543_v5  ;;  %v1529_v6 = vmul.f32 0.03125, %v1497_v9  ;;  %v1530_v16 = vmul.f32 0.03125, %v1500_v12 }
 0x253   : > { %v5595_v17 = vpop.eup %5594  ;;  %5606 = vrsqrt.f32 %v1544_v8 }
 0x254   : > { %v1545_v20 = vadd.f32 1e-05, %v1529_v6  ;;  %v1546_v21 = vadd.f32 1e-05, %v1530_v16  ;;  %v1570_v23 = vmul.f32 %v5595_v17, %v6325_v26 }
 0x255   : > { %v1503_v24 = vpop.xlane.xlu1 %1502  ;;  %v1506_v10 = vpop.xlane.xlu0 %1505 }
 0x256   : > { %5608 = vrsqrt.f32 %v1545_v20  ;;  %v1531_v28 = vmul.f32 0.03125, %v1503_v24  ;;  %v1532_v29 = vmul.f32 0.03125, %v1506_v10  ;;  %v1592_v31 = vmul.f32 %v6424_v22, %v1570_v23 }
 0x257   : > { %v5597_v30 = vpop.eup %5596  ;;  %5610 = vrsqrt.f32 %v1546_v21 }
 0x258   : > { %v5599_v32 = vpop.eup %5598  ;;  %v1547_v33 = vadd.f32 1e-05, %v1531_v28  ;;  %v1548_v36 = vadd.f32 1e-05, %v1532_v29  ;;  %v1571_v26 = vmul.f32 %v5597_v30, %v6333_v34  ;;  %v1614_v43 = vadd.f32 %v6433_v14, %v1592_v31 }
 0x259   : > { %v1509_v38 = vpop.xlane.xlu1 %1508  ;;  %v1512_v39 = vpop.xlane.xlu0 %1511  ;;  %v1572_v40 = vmul.f32 %v5599_v32, %v6327_v27 }
 0x25a   : > { %5612 = vrsqrt.f32 %v1547_v33  ;;  %v1533_v41 = vmul.f32 0.03125, %v1509_v38  ;;  %v1534_v42 = vmul.f32 0.03125, %v1512_v39  ;;  %v1593_v18 = vmul.f32 %v6424_v22, %v1571_v26 }
 0x25b   : > { %v5601_v19 = vpop.eup %5600  ;;  %5614 = vrsqrt.f32 %v1548_v36  ;;  %v1594_v27 = vmul.f32 %v6424_v22, %v1572_v40 }
 0x25c   : > { %v5603_v46 = vpop.eup %5602  ;;  %v1549_v47 = vadd.f32 1e-05, %v1533_v41  ;;  %v1550_v48 = vadd.f32 1e-05, %v1534_v42  ;;  %v1615_v49 = vadd.f32 %v6433_v14, %v1593_v18  ;;  %v1573_v34 = vmul.f32 %v5601_v19, %v6335_v35 }
 0x25d   : > { %v1515_v50 = vpop.xlane.xlu1 %1514  ;;  %v1518_v51 = vpop.xlane.xlu0 %1517  ;;  %v1574_v52 = vmul.f32 %v5603_v46, %v6344_v44  ;;  %v1616_v44 = vadd.f32 %v6433_v14, %v1594_v27 }
 0x25e   : > { %5616 = vrsqrt.f32 %v1549_v47  ;;  %v1535_v53 = vmul.f32 0.03125, %v1515_v50  ;;  %v1536_v56 = vmul.f32 0.03125, %v1518_v51  ;;  %v1630_v57 = vpack.c.bf16 %v1615_v49, %v1614_v43 }
 0x25f   : > { %v5605_v58 = vpop.eup %5604  ;;  %5618 = vrsqrt.f32 %v1550_v48  ;;  %v1595_v59 = vmul.f32 %v6424_v22, %v1573_v34  ;;  %v1596_v60 = vmul.f32 %v6424_v22, %v1574_v52 }
 0x260   : > { %v5607_v61 = vpop.eup %5606  ;;  %v1551_v62 = vadd.f32 1e-05, %v1535_v53  ;;  %v1552_v63 = vadd.f32 1e-05, %v1536_v56  ;;  %5296 = vmatprep.mubr.msk.bf16.mxu0 %vm1376_vm2, %v1630_v57  ;;  %v1575_v35 = vmul.f32 %v5605_v58, %v6347_v45  ;;  %v5585_v58 = vld [vmem:[%s8201_s21] sm:$0xff]  }
 0x261   : > { %v1521_v2 = vpop.xlane.xlu1 %1520  ;;  %v1617_v3 = vadd.f32 %v6433_v14, %v1595_v59  ;;  %v1576_v4 = vmul.f32 %v5607_v61, %v6356_v54  ;;  %v1618_v6 = vadd.f32 %v6433_v14, %v1596_v60 }
 0x262   : > { %5620 = vrsqrt.f32 %v1551_v62  ;;  %v1537_v5 = vmul.f32 0.03125, %v1521_v2  ;;  %v1597_v8 = vmul.f32 %v6424_v22, %v1575_v35 }
 0x263   : > { %v5609_v9 = vpop.eup %5608  ;;  %5622 = vrsqrt.f32 %v1552_v63  ;;  %v1631_v12 = vpack.c.bf16 %v1617_v3, %v1616_v44  ;;  %v1598_v21 = vmul.f32 %v6424_v22, %v1576_v4 }
 0x264   : > { %v5611_v16 = vpop.eup %5610  ;;  %v1553_v17 = vadd.f32 1e-05, %v1537_v5  ;;  %v1619_v45 = vadd.f32 %v6433_v14, %v1597_v8  ;;  %v1577_v20 = vmul.f32 %v5609_v9, %v6359_v55 }
 0x265   : > { %5297 = vmatmul.mubr.msk.bf16.vlgmr.msra.gmra.mxu0 %vm1376_vm2, %v1631_v12  ;;  %v1578_v54 = vmul.f32 %v5611_v16, %v6368_v0  ;;  %v1620_v29 = vadd.f32 %v6433_v14, %v1598_v21 }
 0x266   : > { %5624 = vrsqrt.f32 %v1553_v17  ;;  %v1632_v23 = vpack.c.bf16 %v1619_v45, %v1618_v6  ;;  %v1599_v24 = vmul.f32 %v6424_v22, %v1577_v20 }
 0x267   : > { %v5613_v10 = vpop.eup %5612  ;;  %v1600_v31 = vmul.f32 %v6424_v22, %v1578_v54 }
 0x268   : > { %v5615_v28 = vpop.eup %5614  ;;  %5300 = vmatprep.mubr.msk.bf16.mxu0 %vm1376_vm2, %v1632_v23  ;;  %v1621_v30 = vadd.f32 %v6433_v14, %v1599_v24  ;;  %v1579_v55 = vmul.f32 %v5613_v10, %v6371_v1 }
 0x269   : > { %v1580_v32 = vmul.f32 %v5615_v28, %v6380_v13  ;;  %v1622_v38 = vadd.f32 %v6433_v14, %v1600_v31 }
 0x26a   : > { %v1633_v33 = vpack.c.bf16 %v1621_v30, %v1620_v29  ;;  %v1601_v0 = vmul.f32 %v6424_v22, %v1579_v55 }
 0x26b   : > { %v5617_v36 = vpop.eup %5616  ;;  %v1602_v41 = vmul.f32 %v6424_v22, %v1580_v32 }
 0x26c   : > { %v5619_v26 = vpop.eup %5618  ;;  %v1623_v39 = vadd.f32 %v6433_v14, %v1601_v0  ;;  %v1581_v40 = vmul.f32 %v5617_v36, %v6383_v7 }
 0x26d   : > { %5301 = vmatmul.mubr.msk.bf16.gmra.mxu0 %vm1376_vm2, %v1633_v33  ;;  %v1582_v1 = vmul.f32 %v5619_v26, %v6392_v25  ;;  %v1624_v43 = vadd.f32 %v6433_v14, %v1602_v41 }
 0x26e   : > { %v1634_v42 = vpack.c.bf16 %v1623_v39, %v1622_v38  ;;  %v1603_v13 = vmul.f32 %v6424_v22, %v1581_v40 }
 0x26f   : > { %v5621_v18 = vpop.eup %5620  ;;  %v1604_v7 = vmul.f32 %v6424_v22, %v1582_v1 }
 0x270   : > { %v5623_v19 = vpop.eup %5622  ;;  %5304 = vmatprep.mubr.msk.bf16.mxu0 %vm1376_vm2, %v1634_v42  ;;  %v1625_v46 = vadd.f32 %v6433_v14, %v1603_v13  ;;  %v1583_v47 = vmul.f32 %v5621_v18, %v6395_v11 }
 0x271   : > { %v1584_v48 = vmul.f32 %v5623_v19, %v6404_v15  ;;  %v1626_v50 = vadd.f32 %v6433_v14, %v1604_v7 }
 0x272   : > { %v1635_v49 = vpack.c.bf16 %v1625_v46, %v1624_v43  ;;  %v1605_v25 = vmul.f32 %v6424_v22, %v1583_v47 }
 0x273   : > { %v5625_v34 = vpop.eup %5624  ;;  %v1606_v52 = vmul.f32 %v6424_v22, %v1584_v48 }
 0x274   : > { %v1627_v51 = vadd.f32 %v6433_v14, %v1605_v25  ;;  %v1585_v27 = vmul.f32 %v5625_v34, %v6407_v37  ;;  %v5584_v37 = vld [vmem:[%s8200_s30 + $0x8] sm:$0xff]   ;;  %s8217_s30 = sld [smem:[#allocation25_spill]] (!%p5134_p13) }
 0x275   : > { %5305 = vmatmul.mubr.msk.bf16.gmra.mxu0 %vm1376_vm2, %v1635_v49  ;;  %v1628_v15 = vadd.f32 %v6433_v14, %v1606_v52  ;;  %5312 = vmatprep.subr.bf16.mxu1 %v5584_v37 }
 0x276   : > { %v1636_v11 = vpack.c.bf16 %v1627_v51, %v1626_v50  ;;  %v1607_v53 = vmul.f32 %v6424_v22, %v1585_v27  ;;  %5313 = vmatpush3.bf16.msra.mxu1 %v5584_v37  ;;  %v5020_v22 = vld [vmem:[%s8202_s25] ss:$0 sm:$0xff] }
 0x277   : > { %5314 = vmatprep.subr.bf16.mxu1 %v5585_v58 }
 0x278   : > { %5308 = vmatprep.mubr.msk.bf16.mxu0 %vm1376_vm2, %v1636_v11  ;;  %v1629_v56 = vadd.f32 %v6433_v14, %v1607_v53 }
 0x27a   : > { %v1637_v57 = vpack.c.bf16 %v1629_v56, %v1628_v15  ;;  %5315 = vmatpush3.bf16.msra.mxu1 %v5585_v58 }
 0x27d   : > { %5309 = vmatmul.mubr.msk.bf16.gmra.mxu0 %vm1376_vm2, %v1637_v57 }
 0x325   : > { %v5298_v59 = vpop.f32.mrf.mxu0 }
 0x326   : > { %v6500_v14 = vadd.f32 %v5298_v59, %v5020_v22 }
 0x327   : > { %v1719_v60 = vpop.f32.mrf.mxu0 }
 0x328   : > { %v6502_v61 = vadd.f32 %v5020_v22, %v1719_v60  ;;  %1790 = vrot.lane.b32.xlu1 %v6500_v14, %s5988_s0 }
 0x329   : > { %v5299_v62 = vpop.f32.mrf.mxu0 }
 0x32a   : > { %1786 = vrot.lane.b32.xlu0 %v6502_v61, %s5988_s0  ;;  %v6512_v3 = vadd.f32 %v5299_v62, %v5020_v22 }
 0x32b   : > { %v1722_v63 = vpop.f32.mrf.mxu0 }
 0x32c   : > { %v6508_v35 = vadd.f32 %v5020_v22, %v1722_v63 }
 0x32d   : > { %v5302_v2 = vpop.f32.mrf.mxu0 }
 0x32e   : > { %1788 = vrot.lane.b32.xlu1 %v6508_v35, %s5988_s0  ;;  %v6520_v9 = vadd.f32 %v5302_v2, %v5020_v22 }
 0x32f   : > { %v1735_v44 = vpop.f32.mrf.mxu0 }
 0x330   : > { %v6514_v4 = vadd.f32 %v5020_v22, %v1735_v44 }
 0x331   : > { %v5303_v5 = vpop.f32.mrf.mxu0 }
 0x332   : > { %1792 = vrot.lane.b32.xlu1 %v6512_v3, %s5988_s0  ;;  %1806 = vrot.lane.b32.xlu0 %v6514_v4, %s5988_s0  ;;  %v6528_v17 = vadd.f32 %v5303_v5, %v5020_v22 }
 0x333   : > { %v1738_v8 = vpop.f32.mrf.mxu0 }
 0x334   : > { %v6522_v12 = vadd.f32 %v5020_v22, %v1738_v8 }
 0x335   : > { %v5306_v6 = vpop.f32.mrf.mxu0 }
 0x336   : > { %1808 = vrot.lane.b32.xlu1 %v6522_v12, %s5988_s0  ;;  %1810 = vrot.lane.b32.xlu0 %v6520_v9, %s5988_s0  ;;  %v6536_v54 = vadd.f32 %v5306_v6, %v5020_v22 }
 0x337   : > { %v1751_v16 = vpop.f32.mrf.mxu0 }
 0x338   : > { %v6530_v45 = vadd.f32 %v5020_v22, %v1751_v16 }
 0x339   : > { %v5307_v20 = vpop.f32.mrf.mxu0 }
 0x33a   : > { %1812 = vrot.lane.b32.xlu1 %v6528_v17, %s5988_s0  ;;  %1826 = vrot.lane.b32.xlu0 %v6530_v45, %s5988_s0  ;;  %v6544_v28 = vadd.f32 %v5307_v20, %v5020_v22 }
 0x33b   : > { %v1754_v21 = vpop.f32.mrf.mxu0 }
 0x33c   : > { %v6538_v23 = vadd.f32 %v5020_v22, %v1754_v21 }
 0x33d   : > { %v5310_v24 = vpop.f32.mrf.mxu0 }
 0x33e   : > { %1828 = vrot.lane.b32.xlu1 %v6538_v23, %s5988_s0  ;;  %1830 = vrot.lane.b32.xlu0 %v6536_v54, %s5988_s0  ;;  %v6552_v31 = vadd.f32 %v5310_v24, %v5020_v22 }
 0x33f   : > { %v1767_v10 = vpop.f32.mrf.mxu0 }
 0x340   : > { %v6546_v29 = vadd.f32 %v5020_v22, %v1767_v10 }
 0x341   : > { %v5311_v30 = vpop.f32.mrf.mxu0 }
 0x342   : > { %1832 = vrot.lane.b32.xlu1 %v6544_v28, %s5988_s0  ;;  %1846 = vrot.lane.b32.xlu0 %v6546_v29, %s5988_s0  ;;  %v6560_v33 = vadd.f32 %v5311_v30, %v5020_v22 }
 0x343   : > { %v1770_v55 = vpop.f32.mrf.mxu0 }
 0x344   : > { %v6554_v32 = vadd.f32 %v5020_v22, %v1770_v55 }
 0x346   : > { %1848 = vrot.lane.b32.xlu1 %v6554_v32, %s5988_s0  ;;  %1850 = vrot.lane.b32.xlu0 %v6552_v31, %s5988_s0 }
 0x34a   : > { %1852 = vrot.lane.b32.xlu1 %v6560_v33, %s5988_s0  ;;  %3134 = vrot.lane.b32.xlu0 %v6502_v61, %s5989_s26 }
 0x34e   : > { %3136 = vrot.lane.b32.xlu1 %v6508_v35, %s5989_s26  ;;  %3150 = vrot.lane.b32.xlu0 %v6514_v4, %s5989_s26 }
 0x352   : > { %3152 = vrot.lane.b32.xlu1 %v6522_v12, %s5989_s26  ;;  %3138 = vrot.lane.b32.xlu0 %v6500_v14, %s5989_s26 }
 0x356   : > { %3140 = vrot.lane.b32.xlu1 %v6512_v3, %s5989_s26  ;;  %3154 = vrot.lane.b32.xlu0 %v6520_v9, %s5989_s26 }
 0x35a   : > { %3156 = vrot.lane.b32.xlu1 %v6528_v17, %s5989_s26  ;;  %3170 = vrot.lane.b32.xlu0 %v6530_v45, %s5989_s26 }
 0x35e   : > { %3172 = vrot.lane.b32.xlu1 %v6538_v23, %s5989_s26  ;;  %3174 = vrot.lane.b32.xlu0 %v6536_v54, %s5989_s26 }
 0x362   : > { %3176 = vrot.lane.b32.xlu1 %v6544_v28, %s5989_s26  ;;  %3190 = vrot.lane.b32.xlu0 %v6546_v29, %s5989_s26 }
 0x366   : > { %3192 = vrot.lane.b32.xlu1 %v6554_v32, %s5989_s26  ;;  %3194 = vrot.lane.b32.xlu0 %v6552_v31, %s5989_s26 }
 0x36a   : > { %3196 = vrot.lane.b32.xlu1 %v6560_v33, %s5989_s26 }
 0x39a   : > { %v6580_v0 = vpop.permute.xlu1 %1790 }
 0x39b   : > { %v1800_v13 = vmul.f32 %v6580_v0, %v6500_v14  ;;  %v6604_v18 = vmul.f32 %v6580_v0, %v6536_v54  ;;  %v6612_v46 = vmul.f32 %v6580_v0, %v6552_v31 }
 0x39c   : > { %v6582_v36 = vpop.permute.xlu0 %1786 }
 0x39d   : > { %v6588_v38 = vmul.f32 %v6582_v36, %v6546_v29  ;;  %v1798_v40 = vmul.f32 %v6582_v36, %v6502_v61 }
 0x3a0   : > { %v6584_v26 = vpop.permute.xlu1 %1788 }
 0x3a1   : > { %v6592_v39 = vmul.f32 %v6584_v26, %v6554_v32  ;;  %v1799_v41 = vmul.f32 %v6584_v26, %v6508_v35 }
 0x3a3   : > { %v1910_v1 = vpack.c.bf16 %v1799_v41, %v1798_v40  ;;  %v1934_v42 = vpack.c.bf16 %v6592_v39, %v6588_v38 }
 0x3a4   : > { %v6606_v19 = vpop.permute.xlu1 %1792  ;;  %v6608_v43 = vpop.permute.xlu0 %1806 }
 0x3a5   : > { %v1801_v47 = vmul.f32 %v6606_v19, %v6512_v3  ;;  %v6618_v7 = vmul.f32 %v6606_v19, %v6544_v28  ;;  %v6622_v48 = vmul.f32 %v6606_v19, %v6560_v33  ;;  %5316 = vmatprep.mubr.msk.bf16.mxu1 %vm1376_vm2, %v1910_v1  ;;  %v1818_v27 = vmul.f32 %v6608_v43, %v6502_v61 }
 0x3a6   : > { %v6637_v52 = vmul.f32 %v6608_v43, %v6546_v29 }
 0x3a7   : > { %v1911_v49 = vpack.c.bf16 %v1801_v47, %v1800_v13  ;;  %v1927_v25 = vpack.c.bf16 %v6618_v7, %v6604_v18  ;;  %v1935_v34 = vpack.c.bf16 %v6622_v48, %v6612_v46  ;;  %v2743_v46 = vld [vmem:[%s8208_s17] sm:$0x3] }
 0x3a8   : > { %v6629_v50 = vpop.permute.xlu1 %1808  ;;  %v6631_v51 = vpop.permute.xlu0 %1810  ;;  %5510 = vmatprep.subr.msk.bf16.mxu0 %vm2841_vm3, %v2743_v46  ;;  %v2843_v48 = vsel %vm2841_vm3, %v2743_v46, 0 }
 0x3a9   : > { %v1819_v11 = vmul.f32 %v6629_v50, %v6508_v35  ;;  %v6643_v53 = vmul.f32 %v6629_v50, %v6554_v32  ;;  %5317 = vmatmul.mubr.msk.bf16.vlgmr.msra.gmra.mxu1 %vm1376_vm2, %v1911_v49  ;;  %v1820_v57 = vmul.f32 %v6631_v51, %v6500_v14  ;;  %v6652_v37 = vmul.f32 %v6631_v51, %v6536_v54 }
 0x3aa   : > { %v6660_v59 = vmul.f32 %v6631_v51, %v6552_v31  ;;  %5381 = vmatpush3.bf16.msra.mxu0 %v2843_v48 }
 0x3ab   : > { %v1912_v15 = vpack.c.bf16 %v1819_v11, %v1818_v27 }
 0x3ac   : > { %v6654_v22 = vpop.permute.xlu1 %1812  ;;  %v6656_v58 = vpop.permute.xlu0 %1826 }
 0x3ad   : > { %v1821_v60 = vmul.f32 %v6654_v22, %v6512_v3  ;;  %v6666_v62 = vmul.f32 %v6654_v22, %v6544_v28  ;;  %v6670_v63 = vmul.f32 %v6654_v22, %v6560_v33  ;;  %5320 = vmatprep.mubr.msk.bf16.mxu1 %vm1376_vm2, %v1912_v15  ;;  %v1838_v16 = vmul.f32 %v6656_v58, %v6502_v61 }
 0x3ae   : > { %v6685_v20 = vmul.f32 %v6656_v58, %v6546_v29 }
 0x3af   : > { %v1913_v2 = vpack.c.bf16 %v1821_v60, %v1820_v57  ;;  %v1929_v44 = vpack.c.bf16 %v6666_v62, %v6652_v37 }
 0x3b0   : > { %v6677_v8 = vpop.permute.xlu1 %1828  ;;  %v6679_v6 = vpop.permute.xlu0 %1830 }
 0x3b1   : > { %v1839_v21 = vmul.f32 %v6677_v8, %v6508_v35  ;;  %v6691_v24 = vmul.f32 %v6677_v8, %v6554_v32  ;;  %5321 = vmatmul.mubr.msk.bf16.gmra.mxu1 %vm1376_vm2, %v1913_v2  ;;  %v1840_v55 = vmul.f32 %v6679_v6, %v6500_v14  ;;  %v6700_v40 = vmul.f32 %v6679_v6, %v6536_v54 }
 0x3b2   : > { %v6706_v13 = vmul.f32 %v6679_v6, %v6552_v31 }
 0x3b3   : > { %v1914_v10 = vpack.c.bf16 %v1839_v21, %v1838_v16  ;;  %v8205_v38 = vpack.c.bf16 %v6691_v24, %v6685_v20 }
 0x3b4   : > { %v1833_v41 = vpop.permute.xlu1 %1832  ;;  %v6702_v1 = vpop.permute.xlu0 %1846 }
 0x3b5   : > { %v1841_v47 = vmul.f32 %v1833_v41, %v6512_v3  ;;  %v6710_v49 = vmul.f32 %v1833_v41, %v6544_v28  ;;  %v6713_v27 = vmul.f32 %v1833_v41, %v6560_v33  ;;  %5324 = vmatprep.mubr.msk.bf16.mxu1 %vm1376_vm2, %v1914_v10  ;;  %v1858_v2 = vmul.f32 %v6702_v1, %v6502_v61 }
 0x3b6   : > { %v6726_v16 = vmul.f32 %v6702_v1, %v6546_v29  ;;  %v1863_v61 = vmul.f32 %v6584_v26, %v6522_v12 }
 0x3b7   : > { %v1915_v11 = vpack.c.bf16 %v1841_v47, %v1840_v55  ;;  %v1931_v15 = vpack.c.bf16 %v6710_v49, %v6700_v40  ;;  %v8206_v39 = vpack.c.bf16 %v6713_v27, %v6706_v13 }
 0x3b8   : > { %v6720_v60 = vpop.permute.xlu1 %1848  ;;  %v1851_v55 = vpop.permute.xlu0 %1850 }
 0x3b9   : > { %v1859_v21 = vmul.f32 %v6720_v60, %v6508_v35  ;;  %v6732_v10 = vmul.f32 %v6720_v60, %v6554_v32  ;;  %5325 = vmatmul.mubr.msk.bf16.gmra.mxu1 %vm1376_vm2, %v1915_v11  ;;  %v1860_v29 = vmul.f32 %v1851_v55, %v6500_v14  ;;  %v1892_v30 = vmul.f32 %v1851_v55, %v6536_v54 }
 0x3ba   : > { %v6742_v35 = vmul.f32 %v1851_v55, %v6552_v31  ;;  %v1864_v31 = vmul.f32 %v6580_v0, %v6520_v9  ;;  %v1870_v0 = vmul.f32 %v6656_v58, %v6514_v4  ;;  %v1891_v18 = vmul.f32 %v6720_v60, %v6538_v23 }
 0x3bb   : > { %v1916_v47 = vpack.c.bf16 %v1859_v21, %v1858_v2  ;;  %v1862_v2 = vmul.f32 %v6582_v36, %v6514_v4 }
 0x3bc   : > { %v1853_v5 = vpop.permute.xlu1 %1852 }
 0x3bd   : > { %v1861_v32 = vmul.f32 %v1853_v5, %v6512_v3  ;;  %v1893_v56 = vmul.f32 %v1853_v5, %v6544_v28  ;;  %v6747_v11 = vmul.f32 %v1853_v5, %v6560_v33  ;;  %5328 = vmatprep.mubr.msk.bf16.mxu1 %vm1376_vm2, %v1916_v47  ;;  %v1918_v57 = vpack.c.bf16 %v1863_v61, %v1862_v2 }
 0x3be   : > { %v1865_v3 = vmul.f32 %v6606_v19, %v6528_v17  ;;  %v1867_v28 = vmul.f32 %v6629_v50, %v6522_v12  ;;  %v1866_v33 = vmul.f32 %v6608_v43, %v6514_v4  ;;  %v1871_v19 = vmul.f32 %v6677_v8, %v6522_v12 }
 0x3bf   : > { %v1917_v21 = vpack.c.bf16 %v1861_v32, %v1860_v29  ;;  %v1933_v14 = vpack.c.bf16 %v1893_v56, %v1892_v30  ;;  %v1941_v54 = vpack.c.bf16 %v6747_v11, %v6742_v35  ;;  %v1868_v47 = vmul.f32 %v6631_v51, %v6520_v9 }
 0x3c0   : > { %v1919_v56 = vpack.c.bf16 %v1865_v3, %v1864_v31  ;;  %v1920_v30 = vpack.c.bf16 %v1867_v28, %v1866_v33  ;;  %v1922_v29 = vpack.c.bf16 %v1871_v19, %v1870_v0  ;;  %v1873_v35 = vmul.f32 %v1833_v41, %v6528_v17 }
 0x3c1   : > { %5329 = vmatmul.mubr.msk.bf16.gmra.mxu1 %vm1376_vm2, %v1917_v21  ;;  %v1872_v32 = vmul.f32 %v6679_v6, %v6520_v9  ;;  %v1874_v51 = vmul.f32 %v6702_v1, %v6514_v4  ;;  %v1877_v21 = vmul.f32 %v1853_v5, %v6528_v17  ;;  %v1879_v41 = vmul.f32 %v6584_v26, %v6538_v23 }
 0x3c2   : > { %5332 = vmatprep.mubr.msk.bf16.mxu1 %vm1376_vm2, %v1918_v57  ;;  %v1869_v57 = vmul.f32 %v6654_v22, %v6528_v17  ;;  %v1875_v22 = vmul.f32 %v6720_v60, %v6522_v12  ;;  %v1876_v3 = vmul.f32 %v1851_v55, %v6520_v9  ;;  %v1878_v12 = vmul.f32 %v6582_v36, %v6530_v45 }
 0x3c3   : > { %v1923_v11 = vpack.c.bf16 %v1873_v35, %v1872_v32  ;;  %v1883_v4 = vmul.f32 %v6629_v50, %v6538_v23  ;;  %v1882_v17 = vmul.f32 %v6608_v43, %v6530_v45  ;;  %v1887_v9 = vmul.f32 %v6677_v8, %v6538_v23 }
 0x3c4   : > { %v1921_v61 = vpack.c.bf16 %v1869_v57, %v1868_v47  ;;  %v1924_v2 = vpack.c.bf16 %v1875_v22, %v1874_v51  ;;  %v1925_v6 = vpack.c.bf16 %v1877_v21, %v1876_v3  ;;  %v1926_v28 = vpack.c.bf16 %v1879_v41, %v1878_v12 }
 0x3c5   : > { %v1928_v5 = vpack.c.bf16 %v1883_v4, %v1882_v17  ;;  %v1886_v36 = vmul.f32 %v6656_v58, %v6530_v45  ;;  %v1890_v43 = vmul.f32 %v6702_v1, %v6530_v45  ;;  %v8203_v45 = vpack.c.bf16 %v6643_v53, %v6637_v52 }
 0x3c6   : > { %v8204_v23 = vpack.c.bf16 %v6670_v63, %v6660_v59 }
 0x3c7   : > { %v1930_v26 = vpack.c.bf16 %v1887_v9, %v1886_v36  ;;  %v1932_v7 = vpack.c.bf16 %v1891_v18, %v1890_v43 }
 0x3c9   : > { %5333 = vmatmul.mubr.msk.bf16.gmra.mxu1 %vm1376_vm2, %v1919_v56 }
 0x3ca   : > { %5336 = vmatprep.mubr.msk.bf16.mxu1 %vm1376_vm2, %v1920_v30 }
 0x3d1   : > { %5337 = vmatmul.mubr.msk.bf16.gmra.mxu1 %vm1376_vm2, %v1921_v61 }
 0x3d2   : > { %5340 = vmatprep.mubr.msk.bf16.mxu1 %vm1376_vm2, %v1922_v29 }
 0x3d9   : > { %5341 = vmatmul.mubr.msk.bf16.gmra.mxu1 %vm1376_vm2, %v1923_v11 }
 0x3da   : > { %5344 = vmatprep.mubr.msk.bf16.mxu1 %vm1376_vm2, %v1924_v2 }
 0x3e1   : > { %5345 = vmatmul.mubr.msk.bf16.gmra.mxu1 %vm1376_vm2, %v1925_v6 }
 0x3e2   : > { %5348 = vmatprep.mubr.msk.bf16.mxu1 %vm1376_vm2, %v1926_v28 }
 0x3e9   : > { %5349 = vmatmul.mubr.msk.bf16.gmra.mxu1 %vm1376_vm2, %v1927_v25 }
 0x3ea   : > { %5352 = vmatprep.mubr.msk.bf16.mxu1 %vm1376_vm2, %v1928_v5 }
 0x3f1   : > { %5353 = vmatmul.mubr.msk.bf16.gmra.mxu1 %vm1376_vm2, %v1929_v44 }
 0x3f2   : > { %5356 = vmatprep.mubr.msk.bf16.mxu1 %vm1376_vm2, %v1930_v26 }
 0x3f9   : > { %5357 = vmatmul.mubr.msk.bf16.gmra.mxu1 %vm1376_vm2, %v1931_v15 }
 0x3fa   : > { %5360 = vmatprep.mubr.msk.bf16.mxu1 %vm1376_vm2, %v1932_v7 }
 0x401   : > { %5361 = vmatmul.mubr.msk.bf16.gmra.mxu1 %vm1376_vm2, %v1933_v14 }
 0x402   : > { %5364 = vmatprep.mubr.msk.bf16.mxu1 %vm1376_vm2, %v1934_v42  ;;  %v8207_v42 = vpack.c.bf16 %v6732_v10, %v6726_v16 }
 0x409   : > { %5365 = vmatmul.mubr.msk.bf16.gmra.mxu1 %vm1376_vm2, %v1935_v34 }
 0x40a   : > { %5368 = vmatprep.mubr.msk.bf16.mxu1 %vm1376_vm2, %v8203_v45 }
 0x411   : > { %5369 = vmatmul.mubr.msk.bf16.gmra.mxu1 %vm1376_vm2, %v8204_v23 }
 0x412   : > { %5372 = vmatprep.mubr.msk.bf16.mxu1 %vm1376_vm2, %v8205_v38 }
 0x419   : > { %5373 = vmatmul.mubr.msk.bf16.gmra.mxu1 %vm1376_vm2, %v8206_v39 }
 0x41a   : > { %5376 = vmatprep.mubr.msk.bf16.mxu1 %vm1376_vm2, %v8207_v42 }
 0x421   : > { %5377 = vmatmul.mubr.msk.bf16.gmra.mxu1 %vm1376_vm2, %v1941_v54 }
 0x469   : > { %v5318_v25 = vpop.f32.mrf.mxu1 }
 0x46b   : > { %v2088_v34 = vpop.f32.mrf.mxu1 }
 0x46d   : > { %v5319_v50 = vpop.f32.mrf.mxu1 }
 0x46f   : > { %v6853_v52 = vpop.f32.mrf.mxu1 }
 0x471   : > { %v5322_v53 = vpop.f32.mrf.mxu1 }
 0x472   : > { %v2345_v8 = vmax.f32 %v5318_v25, %v5322_v53 }
 0x473   : > { %v2104_v37 = vpop.f32.mrf.mxu1 }
 0x474   : > { %v2343_v40 = vmax.f32 %v2088_v34, %v2104_v37 }
 0x475   : > { %v5323_v58 = vpop.f32.mrf.mxu1 }
 0x476   : > { %v2346_v1 = vmax.f32 %v5319_v50, %v5323_v58 }
 0x477   : > { %v6855_v59 = vpop.f32.mrf.mxu1 }
 0x478   : > { %v2344_v54 = vmax.f32 %v6853_v52, %v6855_v59 }
 0x479   : > { %v5326_v62 = vpop.f32.mrf.mxu1 }
 0x47a   : > { %v2349_v24 = vmax.f32 %v2345_v8, %v5326_v62 }
 0x47b   : > { %v2120_v63 = vpop.f32.mrf.mxu1 }
 0x47c   : > { %v2347_v27 = vmax.f32 %v2343_v40, %v2120_v63 }
 0x47d   : > { %v5327_v44 = vpop.f32.mrf.mxu1 }
 0x47e   : > { %v2350_v15 = vmax.f32 %v2346_v1, %v5327_v44 }
 0x47f   : > { %v6857_v20 = vpop.f32.mrf.mxu1 }
 0x480   : > { %v2348_v22 = vmax.f32 %v2344_v54, %v6857_v20 }
 0x481   : > { %v5330_v13 = vpop.f32.mrf.mxu1 }
 0x482   : > { %v2353_v49 = vmax.f32 %v2349_v24, %v5330_v13 }
 0x483   : > { %v2136_v60 = vpop.f32.mrf.mxu1 }
 0x484   : > { %v2357_v16 = vsub.f32 %v5318_v25, %v2353_v49  ;;  %v2369_v10 = vsub.f32 %v5322_v53, %v2353_v49  ;;  %v2381_v55 = vsub.f32 %v5326_v62, %v2353_v49  ;;  %v2393_v14 = vsub.f32 %v5330_v13, %v2353_v49 }
 0x485   : > { %v2351_v31 = vmax.f32 %v2347_v27, %v2136_v60  ;;  %v5331_v33 = vpop.f32.mrf.mxu1 }
 0x486   : > { %v2363_v56 = vmul.f32 1.442695, %v2357_v16  ;;  %v2375_v30 = vmul.f32 1.442695, %v2369_v10  ;;  %v2387_v57 = vmul.f32 1.442695, %v2381_v55  ;;  %v2354_v19 = vmax.f32 %v2350_v15, %v5331_v33 }
 0x487   : > { %v2399_v47 = vmul.f32 1.442695, %v2393_v14  ;;  %v2355_v0 = vsub.f32 %v2088_v34, %v2351_v31  ;;  %v2367_v61 = vsub.f32 %v2104_v37, %v2351_v31  ;;  %v2379_v29 = vsub.f32 %v2120_v63, %v2351_v31  ;;  %v2139_v35 = vpop.f32.mrf.mxu1 }
 0x488   : > { %5626 = vpow2.f32 %v2363_v56  ;;  %v2391_v32 = vsub.f32 %v2136_v60, %v2351_v31  ;;  %v2358_v51 = vsub.f32 %v5319_v50, %v2354_v19  ;;  %v2370_v21 = vsub.f32 %v5323_v58, %v2354_v19 }
 0x489   : > { %5628 = vpow2.f32 %v2375_v30  ;;  %v2359_v11 = vmul.f32 1.442695, %v2355_v0  ;;  %v2371_v2 = vmul.f32 1.442695, %v2367_v61  ;;  %v6862_v41 = vpop.f32.mrf.mxu1  ;;  %v2383_v3 = vmul.f32 1.442695, %v2379_v29 }
 0x48a   : > { %5630 = vpow2.f32 %v2387_v57  ;;  %v2395_v12 = vmul.f32 1.442695, %v2391_v32  ;;  %v2382_v6 = vsub.f32 %v5327_v44, %v2354_v19  ;;  %v2394_v28 = vsub.f32 %v5331_v33, %v2354_v19 }
 0x48b   : > { %5632 = vpow2.f32 %v2399_v47  ;;  %v2352_v4 = vmax.f32 %v2348_v22, %v2139_v35  ;;  %v6864_v17 = vpop.f32.mrf.mxu1  ;;  %v2365_v5 = vmul.f32 1.442695, %v2358_v51  ;;  %v2377_v9 = vmul.f32 1.442695, %v2370_v21 }
 0x48c   : > { %5634 = vpow2.f32 %v2359_v11  ;;  %v2389_v18 = vmul.f32 1.442695, %v2382_v6  ;;  %v2401_v7 = vmul.f32 1.442695, %v2394_v28 }
 0x48d   : > { %5636 = vpow2.f32 %v2371_v2  ;;  %v2356_v36 = vsub.f32 %v6853_v52, %v2352_v4  ;;  %v6867_v26 = vpop.f32.mrf.mxu1  ;;  %v2368_v43 = vsub.f32 %v6855_v59, %v2352_v4  ;;  %v2380_v45 = vsub.f32 %v6857_v20, %v2352_v4 }
 0x48e   : > { %5638 = vpow2.f32 %v2383_v3  ;;  %v2392_v42 = vsub.f32 %v2139_v35, %v2352_v4 }
 0x48f   : > { %5640 = vpow2.f32 %v2395_v12  ;;  %v6871_v23 = vpop.f32.mrf.mxu1  ;;  %v2361_v38 = vmul.f32 1.442695, %v2356_v36  ;;  %v2373_v39 = vmul.f32 1.442695, %v2368_v43  ;;  %v2385_v48 = vmul.f32 1.442695, %v2380_v45 }
 0x490   : > { %5642 = vpow2.f32 %v2365_v5  ;;  %v2397_v50 = vmul.f32 1.442695, %v2392_v42 }
 0x491   : > { %5644 = vpow2.f32 %v2377_v9  ;;  %v6873_v46 = vpop.f32.mrf.mxu1 }
 0x492   : > { %5646 = vpow2.f32 %v2389_v18  ;;  %v2437_v16 = vmax.f32 %v6862_v41, %v6873_v46 }
 0x493   : > { %5648 = vpow2.f32 %v2401_v7  ;;  %v6875_v25 = vpop.f32.mrf.mxu1 }
 0x494   : > { %5650 = vpow2.f32 %v2361_v38  ;;  %v2435_v33 = vmax.f32 %v6864_v17, %v6875_v25 }
 0x495   : > { %v6877_v34 = vpop.eup %5626  ;;  %5652 = vpow2.f32 %v2373_v39  ;;  %v6879_v52 = vpop.f32.mrf.mxu1 }
 0x496   : > { %v6881_v53 = vpop.eup %5628  ;;  %5654 = vpow2.f32 %v2385_v48  ;;  %v2438_v47 = vmax.f32 %v6867_v26, %v6879_v52 }
 0x497   : > { %v6883_v37 = vpop.eup %5630  ;;  %v2405_v58 = vadd.f32 %v6881_v53, %v6877_v34  ;;  %v6887_v59 = vpop.f32.mrf.mxu1  ;;  %5656 = vpow2.f32 %v2397_v50 }
 0x498   : > { %v6889_v62 = vpop.eup %5632  ;;  %v2436_v4 = vmax.f32 %v6871_v23, %v6887_v59 }
 0x499   : > { %v6891_v63 = vpop.eup %5634  ;;  %v5342_v44 = vpop.f32.mrf.mxu1  ;;  %v2409_v24 = vadd.f32 %v6883_v37, %v2405_v58 }
 0x49a   : > { %v6893_v8 = vpop.eup %5636  ;;  %v2441_v56 = vmax.f32 %v2437_v16, %v5342_v44 }
 0x49b   : > { %v6895_v20 = vpop.eup %5638  ;;  %v2403_v40 = vadd.f32 %v6893_v8, %v6891_v63  ;;  %v2184_v1 = vpop.f32.mrf.mxu1  ;;  %v2413_v55 = vadd.f32 %v6889_v62, %v2409_v24 }
 0x49c   : > { %v6900_v13 = vpop.eup %5640  ;;  %v2439_v29 = vmax.f32 %v2435_v33, %v2184_v1 }
 0x49d   : > { %v6902_v49 = vpop.eup %5642  ;;  %v2407_v27 = vadd.f32 %v6895_v20, %v2403_v40  ;;  %v6905_v15 = vpop.f32.mrf.mxu1  ;;  %5658 = vrcp.f32 %v2413_v55 }
 0x49e   : > { %v6907_v60 = vpop.eup %5644  ;;  %v2442_v51 = vmax.f32 %v2438_v47, %v6905_v15 }
 0x49f   : > { %v6911_v10 = vpop.eup %5646  ;;  %v2406_v14 = vadd.f32 %v6907_v60, %v6902_v49  ;;  %v6916_v54 = vpop.f32.mrf.mxu1  ;;  %v2411_v57 = vadd.f32 %v6900_v13, %v2407_v27 }
 0x4a0   : > { %v6918_v31 = vpop.eup %5648  ;;  %v2440_v40 = vmax.f32 %v2436_v4, %v6916_v54 }
 0x4a1   : > { %v6922_v30 = vpop.eup %5650  ;;  %v2410_v19 = vadd.f32 %v6911_v10, %v2406_v14  ;;  %v5346_v0 = vpop.f32.mrf.mxu1  ;;  %5660 = vrcp.f32 %v2411_v57 }
 0x4a2   : > { %v6928_v61 = vpop.eup %5652  ;;  %v2445_v35 = vmax.f32 %v2441_v56, %v5346_v0 }
 0x4a3   : > { %v2414_v22 = vadd.f32 %v6918_v31, %v2410_v19  ;;  %v2404_v32 = vadd.f32 %v6928_v61, %v6922_v30  ;;  %v2200_v11 = vpop.f32.mrf.mxu1  ;;  %v6934_v2 = vpop.eup %5654 }
 0x4a4   : > { %v2449_v21 = vsub.f32 %v6862_v41, %v2445_v35  ;;  %v2461_v3 = vsub.f32 %v6873_v46, %v2445_v35  ;;  %v2473_v12 = vsub.f32 %v5342_v44, %v2445_v35  ;;  %v2485_v6 = vsub.f32 %v5346_v0, %v2445_v35  ;;  %v6941_v36 = vpop.eup %5656 }
 0x4a5   : > { %v2408_v28 = vadd.f32 %v6934_v2, %v2404_v32  ;;  %v2443_v5 = vmax.f32 %v2439_v29, %v2200_v11  ;;  %v5347_v9 = vpop.f32.mrf.mxu1  ;;  %5662 = vrcp.f32 %v2414_v22 }
 0x4a6   : > { %v2455_v18 = vmul.f32 1.442695, %v2449_v21  ;;  %v2467_v43 = vmul.f32 1.442695, %v2461_v3  ;;  %v2446_v7 = vmax.f32 %v2442_v51, %v5347_v9  ;;  %v2479_v45 = vmul.f32 1.442695, %v2473_v12 }
 0x4a7   : > { %v2412_v41 = vadd.f32 %v6941_v36, %v2408_v28  ;;  %v2447_v38 = vsub.f32 %v6864_v17, %v2443_v5  ;;  %v2459_v39 = vsub.f32 %v6875_v25, %v2443_v5  ;;  %v2203_v42 = vpop.f32.mrf.mxu1  ;;  %v2491_v46 = vmul.f32 1.442695, %v2485_v6  ;;  %v5586_v6 = vld [vmem:[%s6195_s22 + $0x8] sm:$0xff]  }
 0x4a8   : > { %5664 = vpow2.f32 %v2455_v18  ;;  %v2471_v48 = vsub.f32 %v2184_v1, %v2443_v5  ;;  %v2483_v50 = vsub.f32 %v2200_v11, %v2443_v5  ;;  %v2450_v44 = vsub.f32 %v6867_v26, %v2446_v7  ;;  %5446 = vmatprep.subr.bf16.mxu1 %v5586_v6 }
 0x4a9   : > { %5666 = vrcp.f32 %v2412_v41  ;;  %v2451_v58 = vmul.f32 1.442695, %v2447_v38  ;;  %v6947_v24 = vpop.f32.mrf.mxu1  ;;  %v2463_v27 = vmul.f32 1.442695, %v2459_v39  ;;  %v2462_v16 = vsub.f32 %v6879_v52, %v2446_v7  ;;  %5447 = vmatpush3.bf16.msra.mxu1 %v5586_v6 }
 0x4aa   : > { %5668 = vpow2.f32 %v2467_v43  ;;  %v2475_v17 = vmul.f32 1.442695, %v2471_v48  ;;  %v2474_v25 = vsub.f32 %v6905_v15, %v2446_v7  ;;  %v2487_v1 = vmul.f32 1.442695, %v2483_v50  ;;  %v6960_v15 = vpop.eup %5658 }
 0x4ab   : > { %5670 = vpow2.f32 %v2479_v45  ;;  %v6952_v55 = vpop.f32.mrf.mxu1  ;;  %v2486_v14 = vsub.f32 %v5347_v9, %v2446_v7  ;;  %v2444_v33 = vmax.f32 %v2440_v40, %v2203_v42  ;;  %v2457_v26 = vmul.f32 1.442695, %v2450_v44 }
 0x4ac   : > { %5672 = vpow2.f32 %v2491_v46  ;;  %v2469_v57 = vmul.f32 1.442695, %v2462_v16  ;;  %v2481_v47 = vmul.f32 1.442695, %v2474_v25 }
 0x4ad   : > { %5674 = vpow2.f32 %v2451_v58  ;;  %v6954_v56 = vpop.f32.mrf.mxu1  ;;  %v2448_v19 = vsub.f32 %v6871_v23, %v2444_v33  ;;  %v2460_v52 = vsub.f32 %v6887_v59, %v2444_v33  ;;  %v2493_v29 = vmul.f32 1.442695, %v2486_v14 }
 0x4ae   : > { %5676 = vpow2.f32 %v2463_v27  ;;  %v2472_v35 = vsub.f32 %v6916_v54, %v2444_v33  ;;  %v5661_v51 = vpop.eup %5660  ;;  %v2484_v11 = vsub.f32 %v2203_v42, %v2444_v33 }
 0x4af   : > { %5678 = vpow2.f32 %v2475_v17  ;;  %v6958_v0 = vpop.f32.mrf.mxu1  ;;  %v2453_v22 = vmul.f32 1.442695, %v2448_v19  ;;  %v2465_v23 = vmul.f32 1.442695, %v2460_v52  ;;  %v2419_v18 = vmul.f32 %v5661_v51, %v6891_v63 }
 0x4b0   : > { %5680 = vpow2.f32 %v2487_v1  ;;  %v2477_v3 = vmul.f32 1.442695, %v2472_v35  ;;  %v2489_v4 = vmul.f32 1.442695, %v2484_v11  ;;  %v2427_v19 = vmul.f32 %v5661_v51, %v6895_v20 }
 0x4b1   : > { %5682 = vpow2.f32 %v2457_v26  ;;  %v6963_v32 = vpop.f32.mrf.mxu1  ;;  %v7034_v52 = vmul.f32 %v6960_v15, %v6883_v37 }
 0x4b2   : > { %5684 = vpow2.f32 %v2469_v57  ;;  %v6965_v59 = vpop.eup %5662  ;;  %v2529_v14 = vmax.f32 %v6947_v24, %v6963_v32 }
 0x4b3   : > { %5686 = vpow2.f32 %v2481_v47  ;;  %v6967_v21 = vpop.f32.mrf.mxu1  ;;  %v2422_v5 = vmul.f32 %v6965_v59, %v6902_v49  ;;  %v2421_v49 = vmul.f32 %v6960_v15, %v6877_v34  ;;  %v2426_v40 = vmul.f32 %v6965_v59, %v6907_v60 }
 0x4b4   : > { %5688 = vpow2.f32 %v2493_v29  ;;  %v7016_v17 = vmul.f32 %v6965_v59, %v6911_v10  ;;  %v2425_v60 = vmul.f32 %v6960_v15, %v6881_v53  ;;  %v7037_v47 = vmul.f32 %v5661_v51, %v6900_v13 }
 0x4b5   : > { %v6969_v12 = vpop.eup %5664  ;;  %5690 = vpow2.f32 %v2453_v22  ;;  %v6971_v54 = vpop.f32.mrf.mxu1  ;;  %v2712_v46 = vpack.c.bf16 %v2422_v5, %v2421_v49 }
 0x4b6   : > { %v5667_v28 = vpop.eup %5666  ;;  %5692 = vpow2.f32 %v2465_v23  ;;  %v2714_v20 = vpack.c.bf16 %v2426_v40, %v2425_v60  ;;  %v2530_v37 = vmax.f32 %v6954_v56, %v6971_v54  ;;  %v2716_v11 = vpack.c.bf16 %v7016_v17, %v7034_v52 }
 0x4b7   : > { %v6976_v9 = vpop.eup %5668  ;;  %v2420_v43 = vmul.f32 %v5667_v28, %v6922_v30  ;;  %v2424_v7 = vmul.f32 %v5667_v28, %v6928_v61  ;;  %v6981_v41 = vpop.f32.mrf.mxu1  ;;  %5694 = vpow2.f32 %v2477_v3  ;;  %v2423_v30 = vmul.f32 %v5661_v51, %v6893_v8 }
 0x4b8   : > { %v6983_v45 = vpop.eup %5670  ;;  %v2497_v38 = vadd.f32 %v6976_v9, %v6969_v12  ;;  %5696 = vpow2.f32 %v2489_v4  ;;  %v2428_v33 = vmul.f32 %v5667_v28, %v6934_v2  ;;  %v2527_v2 = vmax.f32 %v6952_v55, %v6967_v21 }
 0x4b9   : > { %v6989_v39 = vpop.eup %5672  ;;  %v2711_v63 = vpack.c.bf16 %v2420_v43, %v2419_v18  ;;  %v6992_v61 = vpop.f32.mrf.mxu1  ;;  %v2713_v58 = vpack.c.bf16 %v2424_v7, %v2423_v30  ;;  %v2528_v13 = vmax.f32 %v6958_v0, %v6981_v41  ;;  %v2432_v18 = vmul.f32 %v5667_v28, %v6941_v36 }
 0x4ba   : > { %v6994_v42 = vpop.eup %5674  ;;  %v2501_v50 = vadd.f32 %v6983_v45, %v2497_v38  ;;  %v2533_v35 = vmax.f32 %v2529_v14, %v6992_v61  ;;  %v2715_v4 = vpack.c.bf16 %v2428_v33, %v2427_v19 }
 0x4bb   : > { %v6996_v48 = vpop.eup %5676  ;;  %5382 = vmatprep.mubr.msk.bf16.mxu0 %vm2744_vm4, %v2711_v63  ;;  %v7000_v34 = vpop.f32.mrf.mxu1 }
 0x4bc   : > { %v7002_v44 = vpop.eup %5678  ;;  %v2495_v8 = vadd.f32 %v6996_v48, %v6994_v42  ;;  %5383 = vmatmul.mubr.msk.bf16.vlgmr.msra.gmra.mxu0 %vm2744_vm4, %v2712_v46  ;;  %v2505_v57 = vadd.f32 %v6989_v39, %v2501_v50  ;;  %v2531_v7 = vmax.f32 %v2527_v2, %v7000_v34 }
 0x4bd   : > { %v7009_v27 = vpop.eup %5680  ;;  %5386 = vmatprep.mubr.msk.bf16.mxu0 %vm2744_vm4, %v2713_v58  ;;  %v7012_v16 = vpop.f32.mrf.mxu1 }
 0x4be   : > { %v7018_v25 = vpop.eup %5682  ;;  %v2499_v1 = vadd.f32 %v7002_v44, %v2495_v8  ;;  %5698 = vrcp.f32 %v2505_v57  ;;  %v2534_v38 = vmax.f32 %v2530_v37, %v7012_v16 }
 0x4bf   : > { %v7026_v26 = vpop.eup %5684  ;;  %v7030_v10 = vpop.f32.mrf.mxu1 }
 0x4c0   : > { %v7039_v29 = vpop.eup %5686  ;;  %v2498_v53 = vadd.f32 %v7026_v26, %v7018_v25  ;;  %v2503_v23 = vadd.f32 %v7009_v27, %v2499_v1  ;;  %v2532_v49 = vmax.f32 %v2528_v13, %v7030_v10 }
 0x4c1   : > { %v7046_v22 = vpop.eup %5688  ;;  %v5362_v51 = vpop.f32.mrf.mxu1 }
 0x4c2   : > { %v7055_v3 = vpop.eup %5690  ;;  %v2502_v6 = vadd.f32 %v7039_v29, %v2498_v53  ;;  %v2537_v5 = vmax.f32 %v2533_v35, %v5362_v51  ;;  %5700 = vrcp.f32 %v2503_v23  ;;  %v2717_v23 = vpack.c.bf16 %v2432_v18, %v7037_v47 }
 0x4c3   : > { %v7059_v43 = vpop.eup %5692  ;;  %v2264_v63 = vpop.f32.mrf.mxu1 }
 0x4c4   : > { %v2506_v30 = vadd.f32 %v7046_v22, %v2502_v6  ;;  %v2496_v46 = vadd.f32 %v7059_v43, %v7055_v3  ;;  %5387 = vmatmul.mubr.msk.bf16.gmra.mxu0 %vm2744_vm4, %v2714_v20  ;;  %v2541_v50 = vsub.f32 %v6947_v24, %v2537_v5  ;;  %v2553_v36 = vsub.f32 %v6963_v32, %v2537_v5  ;;  %v7070_v28 = vpop.eup %5694 }
 0x4c5   : > { %5390 = vmatprep.mubr.msk.bf16.mxu0 %vm2744_vm4, %v2715_v4  ;;  %v2565_v58 = vsub.f32 %v6992_v61, %v2537_v5  ;;  %v2577_v8 = vsub.f32 %v5362_v51, %v2537_v5  ;;  %v2535_v40 = vmax.f32 %v2531_v7, %v2264_v63  ;;  %v5363_v17 = vpop.f32.mrf.mxu1  ;;  %v7075_v33 = vpop.eup %5696 }
 0x4c6   : > { %5702 = vrcp.f32 %v2506_v30  ;;  %v2500_v1 = vadd.f32 %v7070_v28, %v2496_v46  ;;  %v2547_v14 = vmul.f32 1.442695, %v2541_v50  ;;  %v2559_v60 = vmul.f32 1.442695, %v2553_v36 }
 0x4c7   : > { %v2571_v24 = vmul.f32 1.442695, %v2565_v58  ;;  %v2583_v57 = vmul.f32 1.442695, %v2577_v8  ;;  %v2539_v32 = vsub.f32 %v6952_v55, %v2535_v40  ;;  %v2551_v19 = vsub.f32 %v6967_v21, %v2535_v40  ;;  %v2267_v52 = vpop.f32.mrf.mxu1 }
 0x4c8   : > { %v2504_v53 = vadd.f32 %v7075_v33, %v2500_v1  ;;  %5704 = vpow2.f32 %v2547_v14  ;;  %v2563_v61 = vsub.f32 %v7000_v34, %v2535_v40  ;;  %v2575_v2 = vsub.f32 %v2264_v63, %v2535_v40 }
 0x4c9   : > { %5706 = vpow2.f32 %v2559_v60  ;;  %v2543_v35 = vmul.f32 1.442695, %v2539_v32  ;;  %v2538_v20 = vmax.f32 %v2534_v38, %v5363_v17  ;;  %v7082_v37 = vpop.f32.mrf.mxu1  ;;  %v2555_v13 = vmul.f32 1.442695, %v2551_v19 }
 0x4ca   : > { %5708 = vrcp.f32 %v2504_v53  ;;  %v2567_v51 = vmul.f32 1.442695, %v2563_v61  ;;  %v2536_v55 = vmax.f32 %v2532_v49, %v2267_v52  ;;  %v2579_v5 = vmul.f32 1.442695, %v2575_v2 }
 0x4cb   : > { %5710 = vpow2.f32 %v2571_v24  ;;  %v2542_v21 = vsub.f32 %v6954_v56, %v2538_v20  ;;  %v2554_v6 = vsub.f32 %v6971_v54, %v2538_v20  ;;  %v2566_v4 = vsub.f32 %v7012_v16, %v2538_v20  ;;  %v7087_v34 = vpop.f32.mrf.mxu1 }
 0x4cc   : > { %5712 = vpow2.f32 %v2583_v57  ;;  %v2578_v7 = vsub.f32 %v5363_v17, %v2538_v20  ;;  %5391 = vmatmul.mubr.msk.bf16.gmra.mxu0 %vm2744_vm4, %v2716_v11  ;;  %v2540_v18 = vsub.f32 %v6958_v0, %v2536_v55  ;;  %v2552_v54 = vsub.f32 %v6981_v41, %v2536_v55  ;;  %v7099_v11 = vpop.eup %5698 }
 0x4cd   : > { %5714 = vpow2.f32 %v2543_v35  ;;  %v2549_v47 = vmul.f32 1.442695, %v2542_v21  ;;  %5394 = vmatprep.mubr.msk.bf16.mxu0 %vm2744_vm4, %v2717_v23  ;;  %v7092_v38 = vpop.f32.mrf.mxu1  ;;  %v2561_v56 = vmul.f32 1.442695, %v2554_v6  ;;  %v2434_v16 = vmul.f32 %v6965_v59, %v6918_v31 }
 0x4ce   : > { %5716 = vpow2.f32 %v2555_v13  ;;  %v2573_v49 = vmul.f32 1.442695, %v2566_v4  ;;  %v2585_v30 = vmul.f32 1.442695, %v2578_v7  ;;  %v2564_v46 = vsub.f32 %v7030_v10, %v2536_v55 }
 0x4cf   : > { %5718 = vpow2.f32 %v2567_v51  ;;  %v7097_v63 = vpop.f32.mrf.mxu1  ;;  %v2433_v0 = vmul.f32 %v6960_v15, %v6889_v62  ;;  %v2545_v50 = vmul.f32 1.442695, %v2540_v18  ;;  %v7106_v41 = vpop.eup %5700  ;;  %v2557_v31 = vmul.f32 1.442695, %v2552_v54 }
 0x4d0   : > { %5720 = vpow2.f32 %v2579_v5  ;;  %v2576_v59 = vsub.f32 %v2267_v52, %v2536_v55  ;;  %v2569_v10 = vmul.f32 1.442695, %v2564_v46  ;;  %v2511_v19 = vmul.f32 %v7106_v41, %v6994_v42 }
 0x4d1   : > { %5722 = vpow2.f32 %v2549_v47  ;;  %v7104_v36 = vpop.f32.mrf.mxu1  ;;  %v2718_v58 = vpack.c.bf16 %v2434_v16, %v2433_v0  ;;  %v2513_v2 = vmul.f32 %v7099_v11, %v6969_v12  ;;  %v2515_v23 = vmul.f32 %v7106_v41, %v6996_v48 }
 0x4d2   : > { %5724 = vpow2.f32 %v2561_v56  ;;  %v2581_v1 = vmul.f32 1.442695, %v2576_v59  ;;  %v2621_v7 = vmax.f32 %v7082_v37, %v7104_v36  ;;  %v2517_v56 = vmul.f32 %v7099_v11, %v6976_v9 }
 0x4d3   : > { %v7108_v8 = vpop.eup %5702  ;;  %5726 = vpow2.f32 %v2573_v49  ;;  %v7110_v40 = vpop.f32.mrf.mxu1  ;;  %v2519_v46 = vmul.f32 %v7106_v41, %v7002_v44  ;;  %v7181_v0 = vmul.f32 %v7099_v11, %v6983_v45 }
 0x4d4   : > { %5728 = vpow2.f32 %v2585_v30  ;;  %5395 = vmatmul.mubr.msk.bf16.gmra.mxu0 %vm2744_vm4, %v2718_v58  ;;  %v2514_v24 = vmul.f32 %v7108_v8, %v7018_v25  ;;  %v2518_v6 = vmul.f32 %v7108_v8, %v7026_v26  ;;  %v2619_v9 = vmax.f32 %v7087_v34, %v7110_v40 }
 0x4d5   : > { %v7113_v62 = vpop.eup %5704  ;;  %5730 = vpow2.f32 %v2545_v50  ;;  %v7115_v15 = vpop.f32.mrf.mxu1  ;;  %v2522_v58 = vmul.f32 %v7108_v8, %v7039_v29 }
 0x4d6   : > { %v7117_v17 = vpop.eup %5706  ;;  %5732 = vpow2.f32 %v2557_v31  ;;  %v2722_v31 = vpack.c.bf16 %v2518_v6, %v2517_v56 }
 0x4d7   : > { %v5709_v14 = vpop.eup %5708  ;;  %v2589_v60 = vadd.f32 %v7117_v17, %v7113_v62  ;;  %v7123_v57 = vpop.f32.mrf.mxu1  ;;  %5734 = vpow2.f32 %v2569_v10 }
 0x4d8   : > { %v7125_v32 = vpop.eup %5710  ;;  %v2512_v52 = vmul.f32 %v5709_v14, %v7055_v3  ;;  %v2516_v53 = vmul.f32 %v5709_v14, %v7059_v43  ;;  %5736 = vpow2.f32 %v2581_v1  ;;  %v2720_v3 = vpack.c.bf16 %v2514_v24, %v2513_v2 }
 0x4d9   : > { %v7131_v61 = vpop.eup %5712  ;;  %v7135_v35 = vpop.f32.mrf.mxu1  ;;  %v2593_v42 = vadd.f32 %v7125_v32, %v2589_v60  ;;  %v2520_v54 = vmul.f32 %v5709_v14, %v7070_v28  ;;  %v2622_v28 = vmax.f32 %v7092_v38, %v7115_v15  ;;  %v2620_v1 = vmax.f32 %v7097_v63, %v7123_v57 }
 0x4da   : > { %v7137_v25 = vpop.eup %5714  ;;  %v2719_v20 = vpack.c.bf16 %v2512_v52, %v2511_v19  ;;  %v2721_v55 = vpack.c.bf16 %v2516_v53, %v2515_v23  ;;  %v2625_v30 = vmax.f32 %v2621_v7, %v7135_v35  ;;  %v2524_v29 = vmul.f32 %v5709_v14, %v7075_v33 }
 0x4db   : > { %v7141_v13 = vpop.eup %5716  ;;  %v7144_v43 = vpop.f32.mrf.mxu1  ;;  %v2597_v18 = vadd.f32 %v7131_v61, %v2593_v42  ;;  %v2723_v52 = vpack.c.bf16 %v2520_v54, %v2519_v46 }
 0x4dc   : > { %v7146_v51 = vpop.eup %5718  ;;  %v2587_v12 = vadd.f32 %v7141_v13, %v7137_v25  ;;  %5398 = vmatprep.mubr.msk.bf16.mxu0 %vm2744_vm4, %v2719_v20  ;;  %v2623_v19 = vmax.f32 %v2619_v9, %v7144_v43 }
 0x4dd   : > { %v7151_v21 = vpop.eup %5720  ;;  %5399 = vmatmul.mubr.msk.bf16.gmra.mxu0 %vm2744_vm4, %v2720_v3  ;;  %v7154_v48 = vpop.f32.mrf.mxu1  ;;  %5738 = vrcp.f32 %v2597_v18 }
 0x4de   : > { %v7158_v4 = vpop.eup %5722  ;;  %v2591_v5 = vadd.f32 %v7146_v51, %v2587_v12  ;;  %5402 = vmatprep.mubr.msk.bf16.mxu0 %vm2744_vm4, %v2721_v55  ;;  %v2626_v12 = vmax.f32 %v2622_v28, %v7154_v48 }
 0x4df   : > { %v7164_v47 = vpop.eup %5724  ;;  %v7170_v16 = vpop.f32.mrf.mxu1 }
 0x4e0   : > { %v7172_v26 = vpop.eup %5726  ;;  %v2590_v49 = vadd.f32 %v7164_v47, %v7158_v4  ;;  %v2595_v44 = vadd.f32 %v7151_v21, %v2591_v5  ;;  %v2624_v55 = vmax.f32 %v2620_v1, %v7170_v16 }
 0x4e1   : > { %v7183_v50 = vpop.eup %5728  ;;  %v7189_v59 = vpop.f32.mrf.mxu1 }
 0x4e2   : > { %v7193_v10 = vpop.eup %5730  ;;  %v2594_v45 = vadd.f32 %v7172_v26, %v2590_v49  ;;  %v7200_v60 = vmax.f32 %v2625_v30, %v7189_v59  ;;  %5740 = vrcp.f32 %v2595_v44 }
 0x4e3   : > { %v7202_v24 = vpop.eup %5732  ;;  %v2328_v53 = vpop.f32.mrf.mxu1 }
 0x4e4   : > { %v2598_v2 = vadd.f32 %v7183_v50, %v2594_v45  ;;  %v2588_v20 = vadd.f32 %v7202_v24, %v7193_v10  ;;  %v2633_v23 = vsub.f32 %v7082_v37, %v7200_v60  ;;  %v2645_v42 = vsub.f32 %v7104_v36, %v7200_v60  ;;  %v7213_v3 = vpop.eup %5734 }
 0x4e5   : > { %5403 = vmatmul.mubr.msk.bf16.gmra.mxu0 %vm2744_vm4, %v2722_v31  ;;  %v2657_v33 = vsub.f32 %v7135_v35, %v7200_v60  ;;  %v2627_v14 = vmax.f32 %v2623_v19, %v2328_v53  ;;  %v5379_v6 = vpop.f32.mrf.mxu1  ;;  %v7222_v7 = vpop.eup %5736  ;;  %v2523_v31 = vmul.f32 %v7106_v41, %v7009_v27  ;;  %v2724_v45 = vpack.c.bf16 %v2522_v58, %v7181_v0 }
 0x4e6   : > { %v2592_v5 = vadd.f32 %v7213_v3, %v2588_v20  ;;  %5406 = vmatprep.mubr.msk.bf16.mxu0 %vm2744_vm4, %v2723_v52  ;;  %v2639_v37 = vmul.f32 1.442695, %v2633_v23  ;;  %v2651_v36 = vmul.f32 1.442695, %v2645_v42  ;;  %5742 = vrcp.f32 %v2598_v2 }
 0x4e7   : > { %v2663_v18 = vmul.f32 1.442695, %v2657_v33  ;;  %v2631_v56 = vsub.f32 %v7087_v34, %v2627_v14  ;;  %v2643_v54 = vsub.f32 %v7110_v40, %v2627_v14  ;;  %v2331_v49 = vpop.f32.mrf.mxu1  ;;  %v2655_v30 = vsub.f32 %v7144_v43, %v2627_v14 }
 0x4e8   : > { %v2596_v35 = vadd.f32 %v7222_v7, %v2592_v5  ;;  %5744 = vpow2.f32 %v2639_v37  ;;  %v2667_v46 = vsub.f32 %v2328_v53, %v2627_v14  ;;  %v2630_v28 = vmax.f32 %v2626_v12, %v5379_v6 }
 0x4e9   : > { %5746 = vpow2.f32 %v2651_v36  ;;  %v2635_v9 = vmul.f32 1.442695, %v2631_v56  ;;  %v2647_v44 = vmul.f32 1.442695, %v2643_v54  ;;  %v2628_v34 = vmax.f32 %v2624_v55, %v2331_v49 }
 0x4ea   : > { %5748 = vrcp.f32 %v2596_v35  ;;  %v2659_v1 = vmul.f32 1.442695, %v2655_v30  ;;  %v2634_v40 = vsub.f32 %v7092_v38, %v2630_v28  ;;  %v2646_v19 = vsub.f32 %v7115_v15, %v2630_v28  ;;  %v7242_v58 = vpop.eup %5738 }
 0x4eb   : > { %v2658_v52 = vsub.f32 %v7154_v48, %v2630_v28  ;;  %5750 = vpow2.f32 %v2663_v18  ;;  %v2671_v43 = vmul.f32 1.442695, %v2667_v46  ;;  %v2670_v53 = vsub.f32 %v5379_v6, %v2630_v28 }
 0x4ec   : > { %v2725_v2 = vpack.c.bf16 %v2524_v29, %v2523_v31  ;;  %5752 = vpow2.f32 %v2635_v9  ;;  %v2641_v20 = vmul.f32 1.442695, %v2634_v40  ;;  %v2632_v27 = vsub.f32 %v7097_v63, %v2628_v34 }
 0x4ed   : > { %5407 = vmatmul.mubr.msk.bf16.gmra.mxu0 %vm2744_vm4, %v2724_v45  ;;  %5754 = vpow2.f32 %v2647_v44  ;;  %v2653_v41 = vmul.f32 1.442695, %v2646_v19  ;;  %v2644_v38 = vsub.f32 %v7123_v57, %v2628_v34  ;;  %v2669_v15 = vsub.f32 %v7189_v59, %v7200_v60 }
 0x4ee   : > { %5410 = vmatprep.mubr.msk.bf16.mxu0 %vm2744_vm4, %v2725_v2  ;;  %5756 = vpow2.f32 %v2659_v1  ;;  %v2665_v48 = vmul.f32 1.442695, %v2658_v52  ;;  %v2526_v0 = vmul.f32 %v7108_v8, %v7046_v22  ;;  %v2677_v29 = vmul.f32 1.442695, %v2670_v53 }
 0x4ef   : > { %5758 = vpow2.f32 %v2671_v43  ;;  %v2656_v63 = vsub.f32 %v7170_v16, %v2628_v34  ;;  %v2637_v23 = vmul.f32 1.442695, %v2632_v27  ;;  %v2525_v42 = vmul.f32 %v7099_v11, %v6989_v39  ;;  %v7247_v59 = vpop.eup %5740 }
 0x4f0   : > { %5760 = vpow2.f32 %v2641_v20  ;;  %v2649_v57 = vmul.f32 1.442695, %v2644_v38  ;;  %v2668_v12 = vsub.f32 %v2331_v49, %v2628_v34  ;;  %v2675_v60 = vmul.f32 1.442695, %v2669_v15 }
 0x4f1   : > { %5762 = vpow2.f32 %v2653_v41  ;;  %v2726_v55 = vpack.c.bf16 %v2526_v0, %v2525_v42  ;;  %v2661_v8 = vmul.f32 1.442695, %v2656_v63  ;;  %v2603_v6 = vmul.f32 %v7247_v59, %v7137_v25 }
 0x4f2   : > { %5764 = vpow2.f32 %v2665_v48  ;;  %v2673_v39 = vmul.f32 1.442695, %v2668_v12  ;;  %v2605_v18 = vmul.f32 %v7242_v58, %v7113_v62  ;;  %v2607_v49 = vmul.f32 %v7247_v59, %v7141_v13 }
 0x4f3   : > { %v7249_v22 = vpop.eup %5742  ;;  %5766 = vpow2.f32 %v2677_v29  ;;  %v2609_v40 = vmul.f32 %v7242_v58, %v7117_v17  ;;  %v2613_v63 = vmul.f32 %v7242_v58, %v7125_v32 }
 0x4f4   : > { %5768 = vpow2.f32 %v2637_v23  ;;  %v2606_v14 = vmul.f32 %v7249_v22, %v7158_v4  ;;  %v2610_v9 = vmul.f32 %v7249_v22, %v7164_v47  ;;  %v2611_v47 = vmul.f32 %v7247_v59, %v7146_v51 }
 0x4f5   : > { %v7251_v33 = vpop.eup %5744  ;;  %5411 = vmatmul.mubr.msk.bf16.gmra.mxu0 %vm2744_vm4, %v2726_v55  ;;  %5770 = vpow2.f32 %v2649_v57  ;;  %v2614_v51 = vmul.f32 %v7249_v22, %v7172_v26  ;;  %v2615_v23 = vmul.f32 %v7247_v59, %v7151_v21  ;;  %v2618_v26 = vmul.f32 %v7249_v22, %v7183_v50 }
 0x4f6   : > { %v7254_v16 = vpop.eup %5746  ;;  %5772 = vpow2.f32 %v2675_v60  ;;  %v2728_v35 = vpack.c.bf16 %v2606_v14, %v2605_v18  ;;  %v2730_v53 = vpack.c.bf16 %v2610_v9, %v2609_v40  ;;  %v7335_v9 = vpop.permute.xlu0 %3134 }
 0x4f7   : > { %v5749_v11 = vpop.eup %5748  ;;  %5774 = vpow2.f32 %v2661_v8  ;;  %v2681_v62 = vadd.f32 %v7254_v16, %v7251_v33  ;;  %v2732_v42 = vpack.c.bf16 %v2614_v51, %v2613_v63 }
 0x4f8   : > { %v2604_v5 = vmul.f32 %v5749_v11, %v7193_v10  ;;  %v2608_v37 = vmul.f32 %v5749_v11, %v7202_v24  ;;  %v7262_v36 = vpop.eup %5750  ;;  %5776 = vpow2.f32 %v2673_v39  ;;  %v2612_v45 = vmul.f32 %v5749_v11, %v7213_v3 }
 0x4f9   : > { %v5753_v56 = vpop.eup %5752  ;;  %v2685_v1 = vadd.f32 %v7262_v36, %v2681_v62  ;;  %v2616_v29 = vmul.f32 %v5749_v11, %v7222_v7  ;;  %v2617_v7 = vmul.f32 %v7242_v58, %v7131_v61 }
 0x4fa   : > { %v2727_v54 = vpack.c.bf16 %v2604_v5, %v2603_v6  ;;  %v7268_v4 = vpop.eup %5754  ;;  %v2729_v10 = vpack.c.bf16 %v2608_v37, %v2607_v49  ;;  %v2731_v41 = vpack.c.bf16 %v2612_v45, %v2611_v47  ;;  %v5587_v5 = vld [vmem:[%s6195_s22] sm:$0xff]   ;;  %s8215_s22 = sld [smem:[#allocation23_spill]] (!%p5134_p13) }
 0x4fb   : > { %v7270_v30 = vpop.eup %5756  ;;  %v2679_v25 = vadd.f32 %v7268_v4, %v5753_v56  ;;  %v2733_v57 = vpack.c.bf16 %v2616_v29, %v2615_v23  ;;  %v2734_v12 = vpack.c.bf16 %v2618_v26, %v2617_v7  ;;  %5448 = vmatprep.subr.bf16.mxu1 %v5587_v5 }
 0x4fc   : > { %5414 = vmatprep.mubr.msk.bf16.mxu0 %vm2744_vm4, %v2727_v54  ;;  %v7274_v24 = vpop.eup %5758  ;;  %5449 = vmatpush3.bf16.msra.mxu1 %v5587_v5 }
 0x4fd   : > { %5415 = vmatmul.mubr.msk.bf16.gmra.mxu0 %vm2744_vm4, %v2728_v35  ;;  %v5761_v46 = vpop.eup %5760  ;;  %v2683_v31 = vadd.f32 %v7270_v30, %v2679_v25 }
 0x4fe   : > { %5418 = vmatprep.mubr.msk.bf16.mxu0 %vm2744_vm4, %v2729_v10  ;;  %v5763_v13 = vpop.eup %5762 }
 0x4ff   : > { %v7282_v28 = vpop.eup %5764  ;;  %v2682_v44 = vadd.f32 %v5763_v13, %v5761_v46  ;;  %v2687_v20 = vadd.f32 %v7274_v24, %v2683_v31 }
 0x500   : > { %v7286_v34 = vpop.eup %5766 }
 0x501   : > { %v5769_v19 = vpop.eup %5768  ;;  %v2686_v52 = vadd.f32 %v7282_v28, %v2682_v44 }
 0x502   : > { %v5771_v43 = vpop.eup %5770 }
 0x503   : > { %v7294_v2 = vpop.eup %5772  ;;  %v2690_v3 = vadd.f32 %v7286_v34, %v2686_v52  ;;  %v2680_v27 = vadd.f32 %v5771_v43, %v5769_v19 }
 0x504   : > { %v5775_v38 = vpop.eup %5774  ;;  %v2689_v15 = vadd.f32 %v7294_v2, %v2685_v1 }
 0x505   : > { %5419 = vmatmul.mubr.msk.bf16.gmra.mxu0 %vm2744_vm4, %v2730_v53  ;;  %v2684_v17 = vadd.f32 %v5775_v38, %v2680_v27  ;;  %v5777_v48 = vpop.eup %5776  ;;  %5778 = vrcp.f32 %v2690_v3 }
 0x506   : > { %5422 = vmatprep.mubr.msk.bf16.mxu0 %vm2744_vm4, %v2731_v41  ;;  %5780 = vrcp.f32 %v2687_v20 }
 0x507   : > { %v2688_v0 = vadd.f32 %v5777_v48, %v2684_v17  ;;  %5782 = vrcp.f32 %v2689_v15 }
 0x509   : > { %5784 = vrcp.f32 %v2688_v0 }
 0x50d   : > { %5423 = vmatmul.mubr.msk.bf16.gmra.mxu0 %vm2744_vm4, %v2732_v42 }
 0x50e   : > { %5426 = vmatprep.mubr.msk.bf16.mxu0 %vm2744_vm4, %v2733_v57 }
 0x512   : > { %v5779_v60 = vpop.eup %5778 }
 0x513   : > { %v5781_v55 = vpop.eup %5780  ;;  %v2698_v59 = vmul.f32 %v5779_v60, %v5761_v46  ;;  %v2702_v58 = vmul.f32 %v5779_v60, %v5763_v13  ;;  %v2706_v49 = vmul.f32 %v5779_v60, %v7282_v28  ;;  %v7333_v13 = vpop.permute.xlu1 %3136 }
 0x514   : > { %v5783_v32 = vpop.eup %5782  ;;  %v2695_v8 = vmul.f32 %v5781_v55, %v5753_v56  ;;  %v2699_v50 = vmul.f32 %v5781_v55, %v7268_v4  ;;  %v2703_v56 = vmul.f32 %v5781_v55, %v7270_v30  ;;  %v2707_v25 = vmul.f32 %v5781_v55, %v7274_v24  ;;  %v7339_v24 = vpop.permute.xlu0 %3150 }
 0x515   : > { %5427 = vmatmul.mubr.msk.bf16.gmra.mxu0 %vm2744_vm4, %v2734_v12  ;;  %v2697_v14 = vmul.f32 %v5783_v32, %v7251_v33  ;;  %v2701_v18 = vmul.f32 %v5783_v32, %v7254_v16  ;;  %v2705_v35 = vmul.f32 %v5783_v32, %v7262_v36  ;;  %v2710_v16 = vmul.f32 %v5779_v60, %v7286_v34 }
 0x516   : > { %v5785_v21 = vpop.eup %5784  ;;  %v2709_v30 = vmul.f32 %v5783_v32, %v7294_v2 }
 0x517   : > { %v2696_v39 = vmul.f32 %v5785_v21, %v5769_v19  ;;  %v2700_v11 = vmul.f32 %v5785_v21, %v5771_v43  ;;  %v2736_v22 = vpack.c.bf16 %v2698_v59, %v2697_v14  ;;  %v2704_v37 = vmul.f32 %v5785_v21, %v5775_v38  ;;  %v7337_v36 = vpop.permute.xlu1 %3152 }
 0x518   : > { %v2738_v33 = vpack.c.bf16 %v2702_v58, %v2701_v18  ;;  %v2708_v4 = vmul.f32 %v5785_v21, %v5777_v48  ;;  %v2740_v10 = vpack.c.bf16 %v2706_v49, %v2705_v35  ;;  %v2742_v46 = vpack.c.bf16 %v2710_v16, %v2709_v30  ;;  %v7343_v31 = vpop.permute.xlu0 %3138 }
 0x519   : > { %v2735_v6 = vpack.c.bf16 %v2696_v39, %v2695_v8  ;;  %v2737_v61 = vpack.c.bf16 %v2700_v11, %v2699_v50  ;;  %v2739_v54 = vpack.c.bf16 %v2704_v37, %v2703_v56 }
 0x51a   : > { %v2741_v62 = vpack.c.bf16 %v2708_v4, %v2707_v25 }
 0x51b   : > { %5430 = vmatprep.mubr.msk.bf16.mxu0 %vm2744_vm4, %v2735_v6  ;;  %v7341_v28 = vpop.permute.xlu1 %3140 }
 0x51c   : > { %v7347_v40 = vpop.permute.xlu0 %3154 }
 0x51d   : > { %5431 = vmatmul.mubr.msk.bf16.gmra.mxu0 %vm2744_vm4, %v2736_v22 }
 0x51e   : > { %5434 = vmatprep.mubr.msk.bf16.mxu0 %vm2744_vm4, %v2737_v61 }
 0x51f   : > { %v7345_v34 = vpop.permute.xlu1 %3156 }
 0x520   : > { %v7351_v53 = vpop.permute.xlu0 %3170 }
 0x523   : > { %v7349_v47 = vpop.permute.xlu1 %3172 }
 0x524   : > { %v7355_v41 = vpop.permute.xlu0 %3174 }
 0x525   : > { %5435 = vmatmul.mubr.msk.bf16.gmra.mxu0 %vm2744_vm4, %v2738_v33 }
 0x526   : > { %5438 = vmatprep.mubr.msk.bf16.mxu0 %vm2744_vm4, %v2739_v54 }
 0x527   : > { %v7353_v3 = vpop.permute.xlu1 %3176 }
 0x528   : > { %v7359_v51 = vpop.permute.xlu0 %3190 }
 0x52b   : > { %v7357_v17 = vpop.permute.xlu1 %3192 }
 0x52c   : > { %v7375_v14 = vpop.permute.xlu0 %3194 }
 0x52d   : > { %5439 = vmatmul.mubr.msk.bf16.gmra.mxu0 %vm2744_vm4, %v2740_v10 }
 0x52e   : > { %5442 = vmatprep.mubr.msk.bf16.mxu0 %vm2744_vm4, %v2741_v62 }
 0x52f   : > { %v7371_v21 = vpop.permute.xlu1 %3196 }
 0x535   : > { %5443 = vmatmul.mubr.msk.bf16.gmra.mxu0 %vm2744_vm4, %v2742_v46 }
 0x57c   : > { %v5384_v44 = vpop.f32.mrf.mxu0 }
 0x57d   : > { %v3148_v59 = vmul.f32 %v5384_v44, %v7343_v31 }
 0x57e   : > { %v2879_v45 = vpop.f32.mrf.mxu0 }
 0x57f   : > { %v3146_v12 = vmul.f32 %v7335_v9, %v2879_v45 }
 0x580   : > { %v5385_v1 = vpop.f32.mrf.mxu0 }
 0x581   : > { %v3149_v42 = vmul.f32 %v5385_v1, %v7341_v28 }
 0x582   : > { %v2882_v19 = vpop.f32.mrf.mxu0 }
 0x583   : > { %v3147_v60 = vmul.f32 %v7333_v13, %v2882_v19 }
 0x584   : > { %v5388_v52 = vpop.f32.mrf.mxu0 }
 0x585   : > { %v3164_v57 = vmul.f32 %v5388_v52, %v7347_v40 }
 0x586   : > { %v2895_v43 = vpop.f32.mrf.mxu0 }
 0x587   : > { %v3162_v63 = vmul.f32 %v7339_v24, %v2895_v43  ;;  %v3168_v58 = vadd.f32 %v3164_v57, %v3148_v59 }
 0x588   : > { %v5389_v2 = vpop.f32.mrf.mxu0 }
 0x589   : > { %v3165_v0 = vmul.f32 %v5389_v2, %v7345_v34  ;;  %v3166_v6 = vadd.f32 %v3162_v63, %v3146_v12 }
 0x58a   : > { %v2898_v20 = vpop.f32.mrf.mxu0 }
 0x58b   : > { %v3163_v23 = vmul.f32 %v7337_v36, %v2898_v20  ;;  %v3169_v8 = vadd.f32 %v3165_v0, %v3149_v42 }
 0x58c   : > { %v5392_v27 = vpop.f32.mrf.mxu0 }
 0x58d   : > { %v3184_v39 = vmul.f32 %v5392_v27, %v7355_v41  ;;  %v3167_v50 = vadd.f32 %v3163_v23, %v3147_v60 }
 0x58e   : > { %v2911_v38 = vpop.f32.mrf.mxu0 }
 0x58f   : > { %v3182_v55 = vmul.f32 %v7351_v53, %v2911_v38  ;;  %v3188_v49 = vadd.f32 %v3184_v39, %v3168_v58 }
 0x590   : > { %v5393_v15 = vpop.f32.mrf.mxu0 }
 0x591   : > { %v3185_v26 = vmul.f32 %v5393_v15, %v7353_v3  ;;  %v3186_v56 = vadd.f32 %v3182_v55, %v3166_v6 }
 0x592   : > { %v2914_v48 = vpop.f32.mrf.mxu0 }
 0x593   : > { %v3183_v32 = vmul.f32 %v7349_v47, %v2914_v48  ;;  %v3189_v5 = vadd.f32 %v3185_v26, %v3169_v8 }
 0x594   : > { %v5396_v29 = vpop.f32.mrf.mxu0 }
 0x595   : > { %v3204_v37 = vmul.f32 %v5396_v29, %v7375_v14  ;;  %v3187_v33 = vadd.f32 %v3183_v32, %v3167_v50 }
 0x596   : > { %v2927_v7 = vpop.f32.mrf.mxu0 }
 0x597   : > { %v3202_v22 = vmul.f32 %v7359_v51, %v2927_v7  ;;  %v3208_v62 = vadd.f32 %v3204_v37, %v3188_v49 }
 0x598   : > { %v5397_v11 = vpop.f32.mrf.mxu0 }
 0x599   : > { %v3205_v61 = vmul.f32 %v5397_v11, %v7371_v21  ;;  %v3206_v35 = vadd.f32 %v3202_v22, %v3186_v56 }
 0x59a   : > { %v2930_v18 = vpop.f32.mrf.mxu0 }
 0x59b   : > { %v3203_v54 = vmul.f32 %v7357_v17, %v2930_v18  ;;  %v3209_v4 = vadd.f32 %v3205_v61, %v3189_v5 }
 0x59d   : > { %v3207_v25 = vadd.f32 %v3203_v54, %v3187_v33  ;;  %v5400_v10 = vpop.f32.mrf.mxu0  ;;  %v3295_v46 = vpack.c.bf16 %v3209_v4, %v3208_v62 }
 0x59e   : > { %v3212_v55 = vmul.f32 %v5400_v10, %v7343_v31 }
 0x59f   : > { %v3294_v16 = vpack.c.bf16 %v3207_v25, %v3206_v35  ;;  %v2943_v30 = vpop.f32.mrf.mxu0 }
 0x5a0   : > { %v3210_v26 = vmul.f32 %v7335_v9, %v2943_v30 }
 0x5a1   : > { %v5401_v44 = vpop.f32.mrf.mxu0  ;;  %5450 = vmatprep.mubr.msk.bf16.mxu1 %vm1376_vm2, %v3294_v16 }
 0x5a2   : > { %5451 = vmatmul.mubr.msk.bf16.vlgmr.msra.gmra.mxu1 %vm1376_vm2, %v3295_v46  ;;  %v3213_v63 = vmul.f32 %v5401_v44, %v7341_v28 }
 0x5a3   : > { %v2946_v45 = vpop.f32.mrf.mxu0 }
 0x5a4   : > { %v3211_v7 = vmul.f32 %v7333_v13, %v2946_v45 }
 0x5a5   : > { %v5404_v1 = vpop.f32.mrf.mxu0 }
 0x5a6   : > { %v3216_v23 = vmul.f32 %v5404_v1, %v7347_v40 }
 0x5a7   : > { %v2959_v19 = vpop.f32.mrf.mxu0 }
 0x5a8   : > { %v3214_v0 = vmul.f32 %v7339_v24, %v2959_v19  ;;  %v3220_v22 = vadd.f32 %v3216_v23, %v3212_v55 }
 0x5a9   : > { %v5405_v52 = vpop.f32.mrf.mxu0 }
 0x5aa   : > { %v3217_v15 = vmul.f32 %v5405_v52, %v7345_v34  ;;  %v3218_v39 = vadd.f32 %v3214_v0, %v3210_v26 }
 0x5ab   : > { %v2962_v43 = vpop.f32.mrf.mxu0 }
 0x5ac   : > { %v3215_v29 = vmul.f32 %v7337_v36, %v2962_v43  ;;  %v3221_v32 = vadd.f32 %v3217_v15, %v3213_v63 }
 0x5ad   : > { %v5408_v2 = vpop.f32.mrf.mxu0 }
 0x5ae   : > { %v3224_v59 = vmul.f32 %v5408_v2, %v7355_v41  ;;  %v3219_v11 = vadd.f32 %v3215_v29, %v3211_v7 }
 0x5af   : > { %v2975_v20 = vpop.f32.mrf.mxu0 }
 0x5b0   : > { %v3222_v12 = vmul.f32 %v7351_v53, %v2975_v20  ;;  %v3228_v33 = vadd.f32 %v3224_v59, %v3220_v22 }
 0x5b1   : > { %v5409_v27 = vpop.f32.mrf.mxu0 }
 0x5b2   : > { %v3225_v42 = vmul.f32 %v5409_v27, %v7353_v3  ;;  %v3226_v37 = vadd.f32 %v3222_v12, %v3218_v39 }
 0x5b3   : > { %v2978_v38 = vpop.f32.mrf.mxu0 }
 0x5b4   : > { %v3223_v60 = vmul.f32 %v7349_v47, %v2978_v38  ;;  %v3229_v61 = vadd.f32 %v3225_v42, %v3221_v32 }
 0x5b5   : > { %v5412_v48 = vpop.f32.mrf.mxu0 }
 0x5b6   : > { %v3232_v58 = vmul.f32 %v5412_v48, %v7375_v14  ;;  %v3227_v18 = vadd.f32 %v3223_v60, %v3219_v11 }
 0x5b7   : > { %v2991_v57 = vpop.f32.mrf.mxu0 }
 0x5b8   : > { %v3230_v6 = vmul.f32 %v7359_v51, %v2991_v57  ;;  %v3236_v25 = vadd.f32 %v3232_v58, %v3228_v33 }
 0x5b9   : > { %v5413_v8 = vpop.f32.mrf.mxu0 }
 0x5ba   : > { %v3233_v50 = vmul.f32 %v5413_v8, %v7371_v21  ;;  %v3234_v4 = vadd.f32 %v3230_v6, %v3226_v37 }
 0x5bb   : > { %v2994_v5 = vpop.f32.mrf.mxu0 }
 0x5bc   : > { %v3231_v56 = vmul.f32 %v7357_v17, %v2994_v5  ;;  %v3237_v54 = vadd.f32 %v3233_v50, %v3229_v61 }
 0x5bd   : > { %v5416_v49 = vpop.f32.mrf.mxu0 }
 0x5be   : > { %v3235_v35 = vadd.f32 %v3231_v56, %v3227_v18  ;;  %v3297_v16 = vpack.c.bf16 %v3237_v54, %v3236_v25  ;;  %v3240_v12 = vmul.f32 %v5416_v49, %v7343_v31 }
 0x5bf   : > { %v3007_v10 = vpop.f32.mrf.mxu0 }
 0x5c0   : > { %v3296_v62 = vpack.c.bf16 %v3235_v35, %v3234_v4  ;;  %v3238_v42 = vmul.f32 %v7335_v9, %v3007_v10 }
 0x5c1   : > { %v5417_v30 = vpop.f32.mrf.mxu0 }
 0x5c2   : > { %5454 = vmatprep.mubr.msk.bf16.mxu1 %vm1376_vm2, %v3296_v62  ;;  %v3241_v0 = vmul.f32 %v5417_v30, %v7341_v28 }
 0x5c3   : > { %v3010_v46 = vpop.f32.mrf.mxu0  ;;  %5455 = vmatmul.mubr.msk.bf16.gmra.mxu1 %vm1376_vm2, %v3297_v16 }
 0x5c4   : > { %v3239_v57 = vmul.f32 %v7333_v13, %v3010_v46 }
 0x5c5   : > { %v5420_v44 = vpop.f32.mrf.mxu0 }
 0x5c6   : > { %v3244_v29 = vmul.f32 %v5420_v44, %v7347_v40 }
 0x5c7   : > { %v3023_v45 = vpop.f32.mrf.mxu0 }
 0x5c8   : > { %v3242_v15 = vmul.f32 %v7339_v24, %v3023_v45  ;;  %v3248_v6 = vadd.f32 %v3244_v29, %v3240_v12 }
 0x5c9   : > { %v5421_v1 = vpop.f32.mrf.mxu0 }
 0x5ca   : > { %v3245_v27 = vmul.f32 %v5421_v1, %v7345_v34  ;;  %v3246_v59 = vadd.f32 %v3242_v15, %v3238_v42 }
 0x5cb   : > { %v3026_v19 = vpop.f32.mrf.mxu0 }
 0x5cc   : > { %v3243_v48 = vmul.f32 %v7337_v36, %v3026_v19  ;;  %v3249_v60 = vadd.f32 %v3245_v27, %v3241_v0 }
 0x5cd   : > { %v5424_v52 = vpop.f32.mrf.mxu0 }
 0x5ce   : > { %v3252_v55 = vmul.f32 %v5424_v52, %v7355_v41  ;;  %v3247_v8 = vadd.f32 %v3243_v48, %v3239_v57 }
 0x5cf   : > { %v3039_v43 = vpop.f32.mrf.mxu0 }
 0x5d0   : > { %v3250_v26 = vmul.f32 %v7351_v53, %v3039_v43  ;;  %v3256_v18 = vadd.f32 %v3252_v55, %v3248_v6 }
 0x5d1   : > { %v5425_v2 = vpop.f32.mrf.mxu0 }
 0x5d2   : > { %v3253_v63 = vmul.f32 %v5425_v2, %v7353_v3  ;;  %v3254_v58 = vadd.f32 %v3250_v26, %v3246_v59 }
 0x5d3   : > { %v3042_v20 = vpop.f32.mrf.mxu0 }
 0x5d4   : > { %v3251_v7 = vmul.f32 %v7349_v47, %v3042_v20  ;;  %v3257_v50 = vadd.f32 %v3253_v63, %v3249_v60 }
 0x5d5   : > { %v5428_v38 = vpop.f32.mrf.mxu0 }
 0x5d6   : > { %v3260_v22 = vmul.f32 %v5428_v38, %v7375_v14  ;;  %v3255_v5 = vadd.f32 %v3251_v7, %v3247_v8 }
 0x5d7   : > { %v3055_v23 = vpop.f32.mrf.mxu0 }
 0x5d8   : > { %v3258_v39 = vmul.f32 %v7359_v51, %v3055_v23  ;;  %v3264_v4 = vadd.f32 %v3260_v22, %v3256_v18  ;;  %v5852_v18 = vld [vmem:[#allocation2 + $0x18] sm:$0xff] }
 0x5d9   : > { %v5429_v32 = vpop.f32.mrf.mxu0 }
 0x5da   : > { %v3261_v11 = vmul.f32 %v5429_v32, %v7371_v21  ;;  %v3262_v54 = vadd.f32 %v3258_v39, %v3254_v58 }
 0x5db   : > { %v3058_v61 = vpop.f32.mrf.mxu0 }
 0x5dc   : > { %v3259_v37 = vmul.f32 %v7357_v17, %v3058_v61  ;;  %v3265_v56 = vadd.f32 %v3261_v11, %v3257_v50  ;;  %v5851_v50 = vld [vmem:[#allocation2] sm:$0xff] }
 0x5dd   : > { %v5432_v33 = vpop.f32.mrf.mxu0 }
 0x5de   : > { %v3263_v49 = vadd.f32 %v3259_v37, %v3255_v5  ;;  %v3299_v10 = vpack.c.bf16 %v3265_v56, %v3264_v4  ;;  %v3268_v57 = vmul.f32 %v5432_v33, %v7343_v31  ;;  %v5853_v33 = vld [vmem:[#allocation2 + $0x8] sm:$0xff] }
 0x5df   : > { %v3071_v35 = vpop.f32.mrf.mxu0 }
 0x5e0   : > { %v3298_v25 = vpack.c.bf16 %v3263_v49, %v3262_v54  ;;  %v3266_v63 = vmul.f32 %v7335_v9, %v3071_v35 }
 0x5e1   : > { %v5433_v62 = vpop.f32.mrf.mxu0 }
 0x5e2   : > { %5458 = vmatprep.mubr.msk.bf16.mxu1 %vm1376_vm2, %v3298_v25  ;;  %v3269_v15 = vmul.f32 %v5433_v62, %v7341_v28 }
 0x5e3   : > { %v3074_v16 = vpop.f32.mrf.mxu0  ;;  %5459 = vmatmul.mubr.msk.bf16.gmra.mxu1 %vm1376_vm2, %v3299_v10 }
 0x5e4   : > { %v3267_v23 = vmul.f32 %v7333_v13, %v3074_v16 }
 0x5e5   : > { %v5436_v30 = vpop.f32.mrf.mxu0 }
 0x5e6   : > { %v3272_v48 = vmul.f32 %v5436_v30, %v7347_v40 }
 0x5e7   : > { %v3087_v46 = vpop.f32.mrf.mxu0 }
 0x5e8   : > { %v3270_v27 = vmul.f32 %v7339_v24, %v3087_v46  ;;  %v3276_v12 = vadd.f32 %v3272_v48, %v3268_v57  ;;  %v5854_v46 = vld [vmem:[#allocation2 + $0x30] sm:$0xff] }
 0x5e9   : > { %v5437_v44 = vpop.f32.mrf.mxu0 }
 0x5ea   : > { %v3273_v2 = vmul.f32 %v5437_v44, %v7345_v34  ;;  %v3274_v28 = vadd.f32 %v3270_v27, %v3266_v63 }
 0x5eb   : > { %v3090_v45 = vpop.f32.mrf.mxu0 }
 0x5ec   : > { %v3271_v38 = vmul.f32 %v7337_v36, %v3090_v45  ;;  %v3277_v24 = vadd.f32 %v3273_v2, %v3269_v15  ;;  %v5855_v45 = vld [vmem:[#allocation2 + $0x20] sm:$0xff] }
 0x5ed   : > { %v5440_v1 = vpop.f32.mrf.mxu0 }
 0x5ee   : > { %v3280_v36 = vmul.f32 %v5440_v1, %v7355_v41  ;;  %v3275_v7 = vadd.f32 %v3271_v38, %v3267_v23  ;;  %v5857_v38 = vld [vmem:[#allocation2 + $0x28] sm:$0xff] }
 0x5ef   : > { %v3103_v19 = vpop.f32.mrf.mxu0 }
 0x5f0   : > { %v3278_v42 = vmul.f32 %v7351_v53, %v3103_v19  ;;  %v3284_v31 = vadd.f32 %v3280_v36, %v3276_v12 }
 0x5f1   : > { %v5441_v52 = vpop.f32.mrf.mxu0 }
 0x5f2   : > { %v3281_v0 = vmul.f32 %v5441_v52, %v7353_v3  ;;  %v3282_v53 = vadd.f32 %v3278_v42, %v3274_v28 }
 0x5f3   : > { %v3106_v43 = vpop.f32.mrf.mxu0 }
 0x5f4   : > { %v3279_v34 = vmul.f32 %v7349_v47, %v3106_v43  ;;  %v3285_v9 = vadd.f32 %v3281_v0, %v3277_v24  ;;  %v5858_v24 = vld [vmem:[#allocation2 + $0x50] sm:$0xff] }
 0x5f5   : > { %v5444_v20 = vpop.f32.mrf.mxu0 }
 0x5f6   : > { %v3288_v13 = vmul.f32 %v5444_v20, %v7375_v14  ;;  %v3283_v55 = vadd.f32 %v3279_v34, %v3275_v7  ;;  %v5850_v14 = vld [vmem:[#allocation2 + $0x10] sm:$0xff]  ;;  %v5856_v20 = vld [vmem:[#allocation2 + $0x38] sm:$0xff] }
 0x5f7   : > { %v3119_v29 = vpop.f32.mrf.mxu0 }
 0x5f8   : > { %v3286_v40 = vmul.f32 %v7359_v51, %v3119_v29  ;;  %v3292_v8 = vadd.f32 %v3288_v13, %v3284_v31 }
 0x5f9   : > { %v5445_v26 = vpop.f32.mrf.mxu0 }
 0x5fa   : > { %v3289_v3 = vmul.f32 %v5445_v26, %v7371_v21  ;;  %v3290_v41 = vadd.f32 %v3286_v40, %v3282_v53  ;;  %v5859_v26 = vld [vmem:[#allocation2 + $0x40] sm:$0xff] }
 0x5fb   : > { %v3122_v60 = vpop.f32.mrf.mxu0 }
 0x5fc   : > { %v3287_v47 = vmul.f32 %v7357_v17, %v3122_v60  ;;  %v3293_v32 = vadd.f32 %v3289_v3, %v3285_v9  ;;  %v7442_v17 = vld [vmem:[%s8209_s7] ss:$0 sm:$0xff]  ;;  %v5860_v9 = vld [vmem:[#allocation2 + $0x58] sm:$0xff]  ;;  %v5861_v60 = vld [vmem:[#allocation2 + $0x48] sm:$0xff] }
 0x5fe   : > { %v3291_v59 = vadd.f32 %v3287_v47, %v3283_v55  ;;  %v3301_v11 = vpack.c.bf16 %v3293_v32, %v3292_v8 }
 0x600   : > { %v3300_v39 = vpack.c.bf16 %v3291_v59, %v3290_v41 }
 0x602   : > { %5462 = vmatprep.mubr.msk.bf16.mxu1 %vm1376_vm2, %v3300_v39 }
 0x603   : > { %5463 = vmatmul.mubr.msk.bf16.gmra.mxu1 %vm1376_vm2, %v3301_v11  ;;  %v5862_v11 = vld [vmem:[#allocation2 + $0x70] sm:$0xff] }
 0x662   : > { %v5452_v51 = vpop.f32.mrf.mxu1 }
 0x663   : > { %v3441_v6 = vadd.f32 %v5850_v14, %v5452_v51 }
 0x664   : > { %v3376_v21 = vpop.f32.mrf.mxu1 }
 0x665   : > { %v3439_v22 = vadd.f32 %v5851_v50, %v3376_v21  ;;  %v7448_v37 = vadd.f32 %v7442_v17, %v3441_v6  ;;  %v5863_v21 = vld [vmem:[#allocation2 + $0x60] sm:$0xff] }
 0x666   : > { %v5453_v61 = vpop.f32.mrf.mxu1 }
 0x667   : > { %v7445_v58 = vadd.f32 %v7442_v17, %v3439_v22  ;;  %v3442_v56 = vadd.f32 %v5852_v18, %v5453_v61  ;;  %v3486_v25 = vsel %vm1376_vm2, %v7448_v37, 0.0 }
 0x668   : > { %v3379_v5 = vpop.f32.mrf.mxu1 }
 0x669   : > { %v3440_v54 = vadd.f32 %v5853_v33, %v3379_v5  ;;  %v3480_v49 = vsel %vm1376_vm2, %v7445_v58, 0.0  ;;  %v7456_v35 = vadd.f32 %v7442_v17, %v3442_v56  ;;  %v5864_v5 = vld [vmem:[#allocation2 + $0x78] sm:$0xff]  ;;  %v5865_v56 = vld [vmem:[#allocation2 + $0x68] sm:$0xff] }
 0x66a   : > { %3481 = vadd.xlane.f32.xlu0 %v3480_v49 }
 0x66b   : > { %v7453_v4 = vadd.f32 %v7442_v17, %v3440_v54  ;;  %v3489_v62 = vsel %vm1376_vm2, %v7456_v35, 0.0 }
 0x66d   : > { %v3483_v10 = vsel %vm1376_vm2, %v7453_v4, 0.0 }
 0x66e   : > { %3487 = vadd.xlane.f32.xlu0 %v3486_v25  ;;  %3484 = vadd.xlane.f32.xlu1 %v3483_v10 }
 0x672   : > { %3490 = vadd.xlane.f32.xlu0 %v3489_v62 }
 0x683   : > { %v5456_v16 = vpop.f32.mrf.mxu1 }
 0x684   : > { %v3445_v44 = vadd.f32 %v5854_v46, %v5456_v16 }
 0x685   : > { %v3392_v30 = vpop.f32.mrf.mxu1 }
 0x686   : > { %v3443_v1 = vadd.f32 %v5855_v45, %v3392_v30  ;;  %v7468_v2 = vadd.f32 %v7442_v17, %v3445_v44  ;;  %v5588_v30 = vld [vmem:[%s6212_s28 + $0x8] sm:$0xff]  }
 0x687   : > { %v5457_v19 = vpop.f32.mrf.mxu1  ;;  %5466 = vmatprep.subr.bf16.mxu0 %v5588_v30 }
 0x688   : > { %v7465_v52 = vadd.f32 %v7442_v17, %v3443_v1  ;;  %v3446_v27 = vadd.f32 %v5856_v20, %v5457_v19  ;;  %v3498_v63 = vsel %vm1376_vm2, %v7468_v2, 0.0  ;;  %5467 = vmatpush3.bf16.msra.mxu0 %v5588_v30 }
 0x689   : > { %v3395_v43 = vpop.f32.mrf.mxu1 }
 0x68a   : > { %v3444_v15 = vadd.f32 %v5857_v38, %v3395_v43  ;;  %v3492_v48 = vsel %vm1376_vm2, %v7465_v52, 0.0  ;;  %v7476_v29 = vadd.f32 %v7442_v17, %v3446_v27 }
 0x68b   : > { %3493 = vadd.xlane.f32.xlu0 %v3492_v48 }
 0x68c   : > { %v7473_v0 = vadd.f32 %v7442_v17, %v3444_v15  ;;  %v3501_v42 = vsel %vm1376_vm2, %v7476_v29, 0.0 }
 0x68e   : > { %v3495_v23 = vsel %vm1376_vm2, %v7473_v0, 0.0 }
 0x68f   : > { %3499 = vadd.xlane.f32.xlu0 %v3498_v63  ;;  %3496 = vadd.xlane.f32.xlu1 %v3495_v23 }
 0x693   : > { %3502 = vadd.xlane.f32.xlu1 %v3501_v42 }
 0x6a3   : > { %v5460_v34 = vpop.f32.mrf.mxu1 }
 0x6a4   : > { %v3449_v36 = vadd.f32 %v5858_v24, %v5460_v34 }
 0x6a5   : > { %v3408_v57 = vpop.f32.mrf.mxu1 }
 0x6a6   : > { %v3447_v28 = vadd.f32 %v5859_v26, %v3408_v57  ;;  %v7488_v12 = vadd.f32 %v7442_v17, %v3449_v36 }
 0x6a7   : > { %v5461_v7 = vpop.f32.mrf.mxu1 }
 0x6a8   : > { %v7485_v40 = vadd.f32 %v7442_v17, %v3447_v28  ;;  %v3450_v13 = vadd.f32 %v5860_v9, %v5461_v7  ;;  %v3510_v32 = vsel %vm1376_vm2, %v7488_v12, 0.0 }
 0x6a9   : > { %v3411_v3 = vpop.f32.mrf.mxu1 }
 0x6aa   : > { %v3448_v53 = vadd.f32 %v5861_v60, %v3411_v3  ;;  %v3504_v55 = vsel %vm1376_vm2, %v7485_v40, 0.0  ;;  %v7496_v31 = vadd.f32 %v7442_v17, %v3450_v13 }
 0x6ab   : > { %3505 = vadd.xlane.f32.xlu0 %v3504_v55 }
 0x6ac   : > { %v7493_v47 = vadd.f32 %v7442_v17, %v3448_v53  ;;  %v3513_v59 = vsel %vm1376_vm2, %v7496_v31, 0.0 }
 0x6ae   : > { %v3507_v41 = vsel %vm1376_vm2, %v7493_v47, 0.0 }
 0x6af   : > { %3511 = vadd.xlane.f32.xlu0 %v3510_v32  ;;  %3508 = vadd.xlane.f32.xlu1 %v3507_v41 }
 0x6b3   : > { %3514 = vadd.xlane.f32.xlu1 %v3513_v59 }
 0x6c3   : > { %v5464_v8 = vpop.f32.mrf.mxu1 }
 0x6c4   : > { %v3453_v51 = vadd.f32 %v5862_v11, %v5464_v8 }
 0x6c5   : > { %v3424_v39 = vpop.f32.mrf.mxu1 }
 0x6c6   : > { %v3451_v14 = vadd.f32 %v5863_v21, %v3424_v39  ;;  %v7508_v61 = vadd.f32 %v7442_v17, %v3453_v51 }
 0x6c7   : > { %v5465_v6 = vpop.f32.mrf.mxu1 }
 0x6c8   : > { %v7505_v50 = vadd.f32 %v7442_v17, %v3451_v14  ;;  %v3454_v18 = vadd.f32 %v5864_v5, %v5465_v6  ;;  %v3522_v10 = vsel %vm1376_vm2, %v7508_v61, 0.0  ;;  %v5589_v5 = vld [vmem:[%s6212_s28] sm:$0xff]   ;;  %s8216_s28 = sld [smem:[#allocation24_spill]] (!%p5134_p13) }
 0x6c9   : > { %v3427_v22 = vpop.f32.mrf.mxu1  ;;  %5468 = vmatprep.subr.bf16.mxu0 %v5589_v5 }
 0x6ca   : > { %v3452_v33 = vadd.f32 %v5865_v56, %v3427_v22  ;;  %v3516_v54 = vsel %vm1376_vm2, %v7505_v50, 0.0  ;;  %v7516_v25 = vadd.f32 %v7442_v17, %v3454_v18  ;;  %5469 = vmatpush3.bf16.msra.mxu0 %v5589_v5 }
 0x6cb   : > { %3517 = vadd.xlane.f32.xlu0 %v3516_v54 }
 0x6cc   : > { %v7513_v49 = vadd.f32 %v7442_v17, %v3452_v33  ;;  %v3525_v16 = vsel %vm1376_vm2, %v7516_v25, 0.0 }
 0x6ce   : > { %v3519_v62 = vsel %vm1376_vm2, %v7513_v49, 0.0 }
 0x6cf   : > { %3523 = vadd.xlane.f32.xlu0 %v3522_v10  ;;  %3520 = vadd.xlane.f32.xlu1 %v3519_v62 }
 0x6d3   : > { %3526 = vadd.xlane.f32.xlu1 %v3525_v16 }
 0x6f3   : > { %v3482_v46 = vpop.xlane.xlu0 %3481 }
 0x6f4   : > { %v3528_v44 = vmul.f32 0.03125, %v3482_v46 }
 0x6f6   : > { %v7526_v17 = vsub.f32 %v7445_v58, %v3528_v44 }
 0x6f7   : > { %v3488_v45 = vpop.xlane.xlu0 %3487  ;;  %v3485_v1 = vpop.xlane.xlu1 %3484 }
 0x6f8   : > { %v3530_v19 = vmul.f32 0.03125, %v3488_v45  ;;  %v3529_v43 = vmul.f32 0.03125, %v3485_v1  ;;  %v3560_v20 = vmul.f32 %v7526_v17, %v7526_v17 }
 0x6fa   : > { %v7531_v27 = vsub.f32 %v7448_v37, %v3530_v19  ;;  %v7534_v38 = vsub.f32 %v7453_v4, %v3529_v43  ;;  %v3576_v15 = vsel %vm1376_vm2, %v3560_v20, 0.0 }
 0x6fb   : > { %v3491_v48 = vpop.xlane.xlu0 %3490  ;;  %3577 = vadd.xlane.f32.xlu0 %v3576_v15 }
 0x6fc   : > { %v3531_v63 = vmul.f32 0.03125, %v3491_v48  ;;  %v3562_v23 = vmul.f32 %v7531_v27, %v7531_v27  ;;  %v3561_v42 = vmul.f32 %v7534_v38, %v7534_v38 }
 0x6fe   : > { %v7542_v34 = vsub.f32 %v7456_v35, %v3531_v63  ;;  %v3582_v57 = vsel %vm1376_vm2, %v3562_v23, 0.0  ;;  %v3579_v24 = vsel %vm1376_vm2, %v3561_v42, 0.0 }
 0x6ff   : > { %3583 = vadd.xlane.f32.xlu0 %v3582_v57  ;;  %3580 = vadd.xlane.f32.xlu1 %v3579_v24 }
 0x700   : > { %v3563_v36 = vmul.f32 %v7542_v34, %v7542_v34 }
 0x702   : > { %v3585_v26 = vsel %vm1376_vm2, %v3563_v36, 0.0 }
 0x703   : > { %3586 = vadd.xlane.f32.xlu1 %v3585_v26 }
 0x714   : > { %v3494_v28 = vpop.xlane.xlu0 %3493 }
 0x715   : > { %v3532_v7 = vmul.f32 0.03125, %v3494_v28 }
 0x717   : > { %v7550_v3 = vsub.f32 %v7465_v52, %v3532_v7 }
 0x718   : > { %v3500_v9 = vpop.xlane.xlu0 %3499  ;;  %v3497_v13 = vpop.xlane.xlu1 %3496 }
 0x719   : > { %v3534_v60 = vmul.f32 0.03125, %v3500_v9  ;;  %v3533_v53 = vmul.f32 0.03125, %v3497_v13  ;;  %v3564_v55 = vmul.f32 %v7550_v3, %v7550_v3 }
 0x71b   : > { %v7555_v32 = vsub.f32 %v7468_v2, %v3534_v60  ;;  %v7558_v41 = vsub.f32 %v7473_v0, %v3533_v53  ;;  %v3588_v59 = vsel %vm1376_vm2, %v3564_v55, 0.0 }
 0x71c   : > { %v3503_v8 = vpop.xlane.xlu1 %3502  ;;  %3589 = vadd.xlane.f32.xlu0 %v3588_v59 }
 0x71d   : > { %v3535_v39 = vmul.f32 0.03125, %v3503_v8  ;;  %v3566_v11 = vmul.f32 %v7555_v32, %v7555_v32  ;;  %v3565_v51 = vmul.f32 %v7558_v41, %v7558_v41 }
 0x71f   : > { %v7566_v21 = vsub.f32 %v7476_v29, %v3535_v39  ;;  %v3594_v14 = vsel %vm1376_vm2, %v3566_v11, 0.0  ;;  %v3591_v6 = vsel %vm1376_vm2, %v3565_v51, 0.0 }
 0x720   : > { %3595 = vadd.xlane.f32.xlu0 %v3594_v14  ;;  %3592 = vadd.xlane.f32.xlu1 %v3591_v6 }
 0x721   : > { %v3567_v22 = vmul.f32 %v7566_v21, %v7566_v21 }
 0x723   : > { %v3597_v18 = vsel %vm1376_vm2, %v3567_v22, 0.0 }
 0x724   : > { %3598 = vadd.xlane.f32.xlu1 %v3597_v18 }
 0x734   : > { %v3506_v56 = vpop.xlane.xlu0 %3505 }
 0x735   : > { %v3536_v33 = vmul.f32 0.03125, %v3506_v56 }
 0x737   : > { %v7575_v54 = vsub.f32 %v7485_v40, %v3536_v33 }
 0x738   : > { %v3512_v10 = vpop.xlane.xlu0 %3511  ;;  %v3509_v62 = vpop.xlane.xlu1 %3508 }
 0x739   : > { %v3538_v16 = vmul.f32 0.03125, %v3512_v10  ;;  %v3537_v30 = vmul.f32 0.03125, %v3509_v62  ;;  %v3568_v46 = vmul.f32 %v7575_v54, %v7575_v54 }
 0x73b   : > { %v7580_v44 = vsub.f32 %v7488_v12, %v3538_v16  ;;  %v7583_v45 = vsub.f32 %v7493_v47, %v3537_v30  ;;  %v3600_v1 = vsel %vm1376_vm2, %v3568_v46, 0.0 }
 0x73c   : > { %v3515_v19 = vpop.xlane.xlu1 %3514  ;;  %3601 = vadd.xlane.f32.xlu0 %v3600_v1 }
 0x73d   : > { %v3539_v43 = vmul.f32 0.03125, %v3515_v19  ;;  %v3570_v20 = vmul.f32 %v7580_v44, %v7580_v44  ;;  %v3569_v15 = vmul.f32 %v7583_v45, %v7583_v45 }
 0x73f   : > { %v7591_v48 = vsub.f32 %v7496_v31, %v3539_v43  ;;  %v3606_v63 = vsel %vm1376_vm2, %v3570_v20, 0.0  ;;  %v3603_v23 = vsel %vm1376_vm2, %v3569_v15, 0.0 }
 0x740   : > { %3607 = vadd.xlane.f32.xlu0 %v3606_v63  ;;  %3604 = vadd.xlane.f32.xlu1 %v3603_v23 }
 0x741   : > { %v3571_v42 = vmul.f32 %v7591_v48, %v7591_v48 }
 0x743   : > { %v3609_v57 = vsel %vm1376_vm2, %v3571_v42, 0.0  ;;  %v7628_v42 = vld [vmem:[%s8210_s9] ss:$0 sm:$0xff] }
 0x744   : > { %3610 = vadd.xlane.f32.xlu1 %v3609_v57 }
 0x754   : > { %v3518_v24 = vpop.xlane.xlu0 %3517 }
 0x755   : > { %v3540_v36 = vmul.f32 0.03125, %v3518_v24 }
 0x757   : > { %v7599_v26 = vsub.f32 %v7505_v50, %v3540_v36 }
 0x758   : > { %v3524_v28 = vpop.xlane.xlu0 %3523  ;;  %v3521_v7 = vpop.xlane.xlu1 %3520 }
 0x759   : > { %v3542_v9 = vmul.f32 0.03125, %v3524_v28  ;;  %v3541_v13 = vmul.f32 0.03125, %v3521_v7  ;;  %v3572_v60 = vmul.f32 %v7599_v26, %v7599_v26 }
 0x75b   : > { %v7604_v53 = vsub.f32 %v7508_v61, %v3542_v9  ;;  %v7607_v55 = vsub.f32 %v7513_v49, %v3541_v13  ;;  %v3612_v59 = vsel %vm1376_vm2, %v3572_v60, 0.0  ;;  %v7638_v9 = vld [vmem:[%s8211_s3] ss:$0 sm:$0xff] }
 0x75c   : > { %3613 = vadd.xlane.f32.xlu0 %v3612_v59  ;;  %v3527_v8 = vpop.xlane.xlu1 %3526 }
 0x75d   : > { %v3543_v39 = vmul.f32 0.03125, %v3527_v8  ;;  %v3574_v11 = vmul.f32 %v7604_v53, %v7604_v53  ;;  %v3573_v51 = vmul.f32 %v7607_v55, %v7607_v55 }
 0x75f   : > { %v7615_v14 = vsub.f32 %v7516_v25, %v3543_v39  ;;  %v3618_v6 = vsel %vm1376_vm2, %v3574_v11, 0.0  ;;  %v3615_v22 = vsel %vm1376_vm2, %v3573_v51, 0.0 }
 0x760   : > { %3619 = vadd.xlane.f32.xlu0 %v3618_v6  ;;  %3616 = vadd.xlane.f32.xlu1 %v3615_v22 }
 0x761   : > { %v3575_v5 = vmul.f32 %v7615_v14, %v7615_v14 }
 0x763   : > { %v3621_v18 = vsel %vm1376_vm2, %v3575_v5, 0.0 }
 0x764   : > { %3622 = vadd.xlane.f32.xlu1 %v3621_v18 }
 0x784   : > { %v3578_v56 = vpop.xlane.xlu0 %3577 }
 0x785   : > { %v3624_v33 = vmul.f32 0.03125, %v3578_v56 }
 0x787   : > { %v3640_v10 = vadd.f32 1e-05, %v3624_v33 }
 0x788   : > { %v3584_v62 = vpop.xlane.xlu0 %3583  ;;  %v3581_v16 = vpop.xlane.xlu1 %3580 }
 0x789   : > { %5786 = vrsqrt.f32 %v3640_v10  ;;  %v3626_v30 = vmul.f32 0.03125, %v3584_v62  ;;  %v3625_v46 = vmul.f32 0.03125, %v3581_v16 }
 0x78b   : > { %v3642_v1 = vadd.f32 1e-05, %v3626_v30  ;;  %v3641_v19 = vadd.f32 1e-05, %v3625_v46 }
 0x78c   : > { %v3587_v43 = vpop.xlane.xlu1 %3586 }
 0x78d   : > { %5788 = vrsqrt.f32 %v3642_v1  ;;  %v3627_v20 = vmul.f32 0.03125, %v3587_v43 }
 0x78e   : > { %5790 = vrsqrt.f32 %v3641_v19 }
 0x78f   : > { %v3643_v15 = vadd.f32 1e-05, %v3627_v20 }
 0x791   : > { %5792 = vrsqrt.f32 %v3643_v15 }
 0x796   : > { %v5787_v63 = vpop.eup %5786 }
 0x797   : > { %v3672_v23 = vmul.f32 %v5787_v63, %v7526_v17 }
 0x799   : > { %v3694_v7 = vmul.f32 %v7628_v42, %v3672_v23 }
 0x79a   : > { %v5789_v57 = vpop.eup %5788 }
 0x79b   : > { %v5791_v24 = vpop.eup %5790  ;;  %v3674_v36 = vmul.f32 %v5789_v57, %v7531_v27  ;;  %v3716_v8 = vadd.f32 %v7638_v9, %v3694_v7 }
 0x79c   : > { %v3673_v28 = vmul.f32 %v5791_v24, %v7534_v38 }
 0x79d   : > { %v3696_v60 = vmul.f32 %v7628_v42, %v3674_v36 }
 0x79e   : > { %v5793_v17 = vpop.eup %5792  ;;  %v3695_v13 = vmul.f32 %v7628_v42, %v3673_v28 }
 0x79f   : > { %v3675_v59 = vmul.f32 %v5793_v17, %v7542_v34  ;;  %v3718_v11 = vadd.f32 %v7638_v9, %v3696_v60 }
 0x7a0   : > { %v3717_v27 = vadd.f32 %v7638_v9, %v3695_v13 }
 0x7a1   : > { %v3697_v38 = vmul.f32 %v7628_v42, %v3675_v59 }
 0x7a2   : > { %v3732_v39 = vpack.c.bf16 %v3717_v27, %v3716_v8 }
 0x7a3   : > { %v3719_v51 = vadd.f32 %v7638_v9, %v3697_v38 }
 0x7a4   : > { %5470 = vmatprep.mubr.msk.bf16.mxu0 %vm1376_vm2, %v3732_v39 }
 0x7a5   : > { %v3590_v6 = vpop.xlane.xlu0 %3589  ;;  %v3733_v22 = vpack.c.bf16 %v3719_v51, %v3718_v11 }
 0x7a6   : > { %v3628_v5 = vmul.f32 0.03125, %v3590_v6 }
 0x7a7   : > { %5471 = vmatmul.mubr.msk.bf16.vlgmr.msra.gmra.mxu0 %vm1376_vm2, %v3733_v22 }
 0x7a8   : > { %v3644_v18 = vadd.f32 1e-05, %v3628_v5 }
 0x7a9   : > { %v3596_v34 = vpop.xlane.xlu0 %3595  ;;  %v3593_v56 = vpop.xlane.xlu1 %3592 }
 0x7aa   : > { %5794 = vrsqrt.f32 %v3644_v18  ;;  %v3630_v33 = vmul.f32 0.03125, %v3596_v34  ;;  %v3629_v10 = vmul.f32 0.03125, %v3593_v56 }
 0x7ac   : > { %v3646_v62 = vadd.f32 1e-05, %v3630_v33  ;;  %v3645_v16 = vadd.f32 1e-05, %v3629_v10 }
 0x7ad   : > { %v3599_v30 = vpop.xlane.xlu1 %3598 }
 0x7ae   : > { %5796 = vrsqrt.f32 %v3646_v62  ;;  %v3631_v46 = vmul.f32 0.03125, %v3599_v30 }
 0x7af   : > { %5798 = vrsqrt.f32 %v3645_v16 }
 0x7b0   : > { %v3647_v1 = vadd.f32 1e-05, %v3631_v46 }
 0x7b2   : > { %5800 = vrsqrt.f32 %v3647_v1 }
 0x7b7   : > { %v5795_v19 = vpop.eup %5794 }
 0x7b8   : > { %v3676_v43 = vmul.f32 %v5795_v19, %v7550_v3 }
 0x7ba   : > { %v3698_v57 = vmul.f32 %v7628_v42, %v3676_v43 }
 0x7bb   : > { %v5797_v20 = vpop.eup %5796 }
 0x7bc   : > { %v5799_v15 = vpop.eup %5798  ;;  %v3678_v63 = vmul.f32 %v5797_v20, %v7555_v32  ;;  %v3720_v17 = vadd.f32 %v7638_v9, %v3698_v57 }
 0x7bd   : > { %v3677_v23 = vmul.f32 %v5799_v15, %v7558_v41 }
 0x7be   : > { %v3700_v7 = vmul.f32 %v7628_v42, %v3678_v63 }
 0x7bf   : > { %v5801_v24 = vpop.eup %5800  ;;  %v3699_v36 = vmul.f32 %v7628_v42, %v3677_v23 }
 0x7c0   : > { %v3679_v28 = vmul.f32 %v5801_v24, %v7566_v21  ;;  %v3722_v32 = vadd.f32 %v7638_v9, %v3700_v7 }
 0x7c1   : > { %v3721_v13 = vadd.f32 %v7638_v9, %v3699_v36 }
 0x7c2   : > { %v3701_v3 = vmul.f32 %v7628_v42, %v3679_v28 }
 0x7c3   : > { %v3734_v60 = vpack.c.bf16 %v3721_v13, %v3720_v17 }
 0x7c4   : > { %v3723_v41 = vadd.f32 %v7638_v9, %v3701_v3 }
 0x7c5   : > { %5474 = vmatprep.mubr.msk.bf16.mxu0 %vm1376_vm2, %v3734_v60  ;;  %v3602_v59 = vpop.xlane.xlu0 %3601 }
 0x7c6   : > { %v3632_v8 = vmul.f32 0.03125, %v3602_v59  ;;  %v3735_v27 = vpack.c.bf16 %v3723_v41, %v3722_v32 }
 0x7c8   : > { %v3648_v38 = vadd.f32 1e-05, %v3632_v8  ;;  %5475 = vmatmul.mubr.msk.bf16.gmra.mxu0 %vm1376_vm2, %v3735_v27 }
 0x7c9   : > { %v3608_v21 = vpop.xlane.xlu0 %3607  ;;  %v3605_v39 = vpop.xlane.xlu1 %3604 }
 0x7ca   : > { %5802 = vrsqrt.f32 %v3648_v38  ;;  %v3634_v11 = vmul.f32 0.03125, %v3608_v21  ;;  %v3633_v51 = vmul.f32 0.03125, %v3605_v39 }
 0x7cc   : > { %v3650_v6 = vadd.f32 1e-05, %v3634_v11  ;;  %v3649_v22 = vadd.f32 1e-05, %v3633_v51 }
 0x7cd   : > { %v3611_v5 = vpop.xlane.xlu1 %3610 }
 0x7ce   : > { %5804 = vrsqrt.f32 %v3650_v6  ;;  %v3635_v18 = vmul.f32 0.03125, %v3611_v5 }
 0x7cf   : > { %5806 = vrsqrt.f32 %v3649_v22 }
 0x7d0   : > { %v3651_v34 = vadd.f32 1e-05, %v3635_v18 }
 0x7d2   : > { %5808 = vrsqrt.f32 %v3651_v34  ;;  %v5590_v34 = vld [vmem:[%s6222_s29 + $0x18] sm:$0xff]  }
 0x7d3   : > { %5486 = vmatprep.subr.bf16.mxu1 %v5590_v34 }
 0x7d4   : > { %5487 = vmatpush3.bf16.msra.mxu1 %v5590_v34 }
 0x7d7   : > { %v5803_v56 = vpop.eup %5802 }
 0x7d8   : > { %v3680_v33 = vmul.f32 %v5803_v56, %v7575_v54 }
 0x7da   : > { %v3702_v46 = vmul.f32 %v7628_v42, %v3680_v33 }
 0x7db   : > { %v5805_v10 = vpop.eup %5804 }
 0x7dc   : > { %v5807_v62 = vpop.eup %5806  ;;  %v3682_v16 = vmul.f32 %v5805_v10, %v7580_v44  ;;  %v3724_v15 = vadd.f32 %v7638_v9, %v3702_v46 }
 0x7dd   : > { %v3681_v30 = vmul.f32 %v5807_v62, %v7583_v45 }
 0x7de   : > { %v3704_v20 = vmul.f32 %v7628_v42, %v3682_v16  ;;  %v5592_v16 = vld [vmem:[%s6222_s29 + $0x8] sm:$0xff]  }
 0x7df   : > { %v5809_v1 = vpop.eup %5808  ;;  %v3703_v19 = vmul.f32 %v7628_v42, %v3681_v30  ;;  %v7701_v30 = vld [vmem:[%s8212_s18] ss:$0 sm:$0xff] }
 0x7e0   : > { %v3683_v43 = vmul.f32 %v5809_v1, %v7591_v48  ;;  %v3726_v44 = vadd.f32 %v7638_v9, %v3704_v20 }
 0x7e1   : > { %v3725_v63 = vadd.f32 %v7638_v9, %v3703_v19 }
 0x7e2   : > { %v3705_v54 = vmul.f32 %v7628_v42, %v3683_v43 }
 0x7e3   : > { %v3736_v23 = vpack.c.bf16 %v3725_v63, %v3724_v15 }
 0x7e4   : > { %v3727_v45 = vadd.f32 %v7638_v9, %v3705_v54 }
 0x7e5   : > { %5478 = vmatprep.mubr.msk.bf16.mxu0 %vm1376_vm2, %v3736_v23  ;;  %v3614_v57 = vpop.xlane.xlu0 %3613 }
 0x7e6   : > { %v3636_v24 = vmul.f32 0.03125, %v3614_v57  ;;  %v3737_v36 = vpack.c.bf16 %v3727_v45, %v3726_v44 }
 0x7e8   : > { %v3652_v28 = vadd.f32 1e-05, %v3636_v24  ;;  %5479 = vmatmul.mubr.msk.bf16.gmra.mxu0 %vm1376_vm2, %v3737_v36 }
 0x7e9   : > { %v3620_v48 = vpop.xlane.xlu0 %3619  ;;  %v3617_v7 = vpop.xlane.xlu1 %3616 }
 0x7ea   : > { %5810 = vrsqrt.f32 %v3652_v28  ;;  %v3638_v17 = vmul.f32 0.03125, %v3620_v48  ;;  %v3637_v13 = vmul.f32 0.03125, %v3617_v7 }
 0x7ec   : > { %v3654_v3 = vadd.f32 1e-05, %v3638_v17  ;;  %v3653_v60 = vadd.f32 1e-05, %v3637_v13 }
 0x7ed   : > { %v3623_v32 = vpop.xlane.xlu1 %3622 }
 0x7ee   : > { %5812 = vrsqrt.f32 %v3654_v3  ;;  %v3639_v41 = vmul.f32 0.03125, %v3623_v32 }
 0x7ef   : > { %5814 = vrsqrt.f32 %v3653_v60 }
 0x7f0   : > { %v3655_v59 = vadd.f32 1e-05, %v3639_v41 }
 0x7f2   : > { %5816 = vrsqrt.f32 %v3655_v59 }
 0x7f7   : > { %v5811_v8 = vpop.eup %5810 }
 0x7f8   : > { %v3684_v27 = vmul.f32 %v5811_v8, %v7599_v26 }
 0x7fa   : > { %v3706_v51 = vmul.f32 %v7628_v42, %v3684_v27 }
 0x7fb   : > { %v5813_v38 = vpop.eup %5812 }
 0x7fc   : > { %v5815_v21 = vpop.eup %5814  ;;  %v3686_v39 = vmul.f32 %v5813_v38, %v7604_v53  ;;  %v3728_v26 = vadd.f32 %v7638_v9, %v3706_v51 }
 0x7fd   : > { %v3685_v11 = vmul.f32 %v5815_v21, %v7607_v55 }
 0x7fe   : > { %v3708_v18 = vmul.f32 %v7628_v42, %v3686_v39 }
 0x7ff   : > { %v5817_v6 = vpop.eup %5816  ;;  %v3707_v22 = vmul.f32 %v7628_v42, %v3685_v11 }
 0x800   : > { %v3687_v5 = vmul.f32 %v5817_v6, %v7615_v14  ;;  %v3730_v33 = vadd.f32 %v7638_v9, %v3708_v18  ;;  %v5591_v14 = vld [vmem:[%s6222_s29 + $0x10] sm:$0xff]  }
 0x801   : > { %v3729_v56 = vadd.f32 %v7638_v9, %v3707_v22  ;;  %5488 = vmatprep.subr.bf16.mxu1 %v5591_v14 }
 0x802   : > { %v3709_v53 = vmul.f32 %v7628_v42, %v3687_v5  ;;  %5489 = vmatpush3.bf16.msra.mxu1 %v5591_v14  ;;  %v5593_v42 = vld [vmem:[%s6222_s29] sm:$0xff]  }
 0x803   : > { %v3738_v55 = vpack.c.bf16 %v3729_v56, %v3728_v26  ;;  %5490 = vmatprep.subr.bf16.mxu1 %v5592_v16 }
 0x804   : > { %v3731_v10 = vadd.f32 %v7638_v9, %v3709_v53 }
 0x805   : > { %5482 = vmatprep.mubr.msk.bf16.mxu0 %vm1376_vm2, %v3738_v55 }
 0x806   : > { %v3739_v62 = vpack.c.bf16 %v3731_v10, %v3730_v33  ;;  %5491 = vmatpush3.bf16.msra.mxu1 %v5592_v16 }
 0x807   : > { %5492 = vmatprep.subr.bf16.mxu1 %v5593_v42 }
 0x808   : > { %5483 = vmatmul.mubr.msk.bf16.gmra.mxu0 %vm1376_vm2, %v3739_v62 }
 0x80a   : > { %5493 = vmatpush3.bf16.msra.mxu1 %v5593_v42 }
 0x867   : > { %v5472_v9 = vpop.f32.mrf.mxu0 }
 0x868   : > { %v3830_v46 = vadd.f32 %v5472_v9, %v7701_v30 }
 0x869   : > { %v3821_v1 = vpop.f32.mrf.mxu0 }
 0x86a   : > { %v3902_v19 = vmul.f32 0.044715, %v3830_v46  ;;  %v3822_v43 = vadd.f32 %v7701_v30, %v3821_v1  ;;  %v3886_v33 = vmul.f32 0.5, %v3830_v46 }
 0x86b   : > { %v5473_v20 = vpop.f32.mrf.mxu0 }
 0x86c   : > { %v3918_v15 = vmul.f32 %v3902_v19, %v3830_v46  ;;  %v3900_v63 = vmul.f32 0.044715, %v3822_v43  ;;  %v3833_v54 = vadd.f32 %v5473_v20, %v7701_v30  ;;  %v3884_v56 = vmul.f32 0.5, %v3822_v43 }
 0x86d   : > { %v3824_v23 = vpop.f32.mrf.mxu0 }
 0x86e   : > { %v3934_v44 = vmul.f32 %v3918_v15, %v3830_v46  ;;  %v3916_v45 = vmul.f32 %v3900_v63, %v3822_v43  ;;  %v3903_v57 = vmul.f32 0.044715, %v3833_v54  ;;  %v3825_v24 = vadd.f32 %v7701_v30, %v3824_v23 }
 0x86f   : > { %v3887_v18 = vmul.f32 0.5, %v3833_v54 }
 0x870   : > { %v3950_v36 = vadd.f32 %v3934_v44, %v3830_v46  ;;  %v3932_v28 = vmul.f32 %v3916_v45, %v3822_v43  ;;  %v3919_v48 = vmul.f32 %v3903_v57, %v3833_v54  ;;  %v3901_v7 = vmul.f32 0.044715, %v3825_v24 }
 0x871   : > { %v3885_v53 = vmul.f32 0.5, %v3825_v24 }
 0x872   : > { %v3966_v17 = vmul.f32 0.7978846, %v3950_v36  ;;  %v3948_v13 = vadd.f32 %v3932_v28, %v3822_v43  ;;  %v3935_v3 = vmul.f32 %v3919_v48, %v3833_v54  ;;  %v3917_v60 = vmul.f32 %v3901_v7, %v3825_v24 }
 0x874   : > { %v3964_v32 = vmul.f32 0.7978846, %v3948_v13  ;;  %v3951_v41 = vadd.f32 %v3935_v3, %v3833_v54  ;;  %v3933_v59 = vmul.f32 %v3917_v60, %v3825_v24  ;;  %5818 = vtanh.f32 %v3966_v17 }
 0x876   : > { %v3967_v8 = vmul.f32 0.7978846, %v3951_v41  ;;  %5820 = vtanh.f32 %v3964_v32  ;;  %v3949_v27 = vadd.f32 %v3933_v59, %v3825_v24 }
 0x878   : > { %5822 = vtanh.f32 %v3967_v8  ;;  %v3965_v38 = vmul.f32 0.7978846, %v3949_v27 }
 0x87a   : > { %5824 = vtanh.f32 %v3965_v38 }
 0x881   : > { %v5819_v21 = vpop.eup %5818 }
 0x882   : > { %v3998_v5 = vadd.f32 1.0, %v5819_v21 }
 0x883   : > { %v5821_v39 = vpop.eup %5820 }
 0x884   : > { %v3996_v6 = vadd.f32 1.0, %v5821_v39  ;;  %v4014_v1 = vmul.f32 %v3998_v5, %v3886_v33 }
 0x885   : > { %v5823_v11 = vpop.eup %5822 }
 0x886   : > { %v3999_v51 = vadd.f32 1.0, %v5823_v11  ;;  %v4012_v42 = vmul.f32 %v3996_v6, %v3884_v56 }
 0x887   : > { %v5825_v22 = vpop.eup %5824 }
 0x888   : > { %v5476_v34 = vpop.f32.mrf.mxu0  ;;  %v3997_v55 = vadd.f32 1.0, %v5825_v22  ;;  %v4015_v10 = vmul.f32 %v3999_v51, %v3887_v18 }
 0x889   : > { %v3846_v26 = vadd.f32 %v5476_v34, %v7701_v30 }
 0x88a   : > { %v3837_v14 = vpop.f32.mrf.mxu0  ;;  %v4013_v9 = vmul.f32 %v3997_v55, %v3885_v53  ;;  %v4029_v23 = vpack.c.bf16 %v4015_v10, %v4014_v1 }
 0x88b   : > { %v3906_v62 = vmul.f32 0.044715, %v3846_v26  ;;  %v3838_v16 = vadd.f32 %v7701_v30, %v3837_v14  ;;  %v3890_v10 = vmul.f32 0.5, %v3846_v26 }
 0x88c   : > { %v5477_v19 = vpop.f32.mrf.mxu0  ;;  %v4028_v54 = vpack.c.bf16 %v4013_v9, %v4012_v42 }
 0x88d   : > { %v3922_v20 = vmul.f32 %v3906_v62, %v3846_v26  ;;  %v3904_v15 = vmul.f32 0.044715, %v3838_v16  ;;  %v3849_v63 = vadd.f32 %v5477_v19, %v7701_v30  ;;  %v3888_v56 = vmul.f32 0.5, %v3838_v16 }
 0x88e   : > { %v3840_v43 = vpop.f32.mrf.mxu0  ;;  %5494 = vmatprep.mubr.msk.bf16.mxu1 %vm4068_vm5, %v4028_v54 }
 0x88f   : > { %v3938_v44 = vmul.f32 %v3922_v20, %v3846_v26  ;;  %v3920_v45 = vmul.f32 %v3904_v15, %v3838_v16  ;;  %v3907_v46 = vmul.f32 0.044715, %v3849_v63  ;;  %v3841_v57 = vadd.f32 %v7701_v30, %v3840_v43  ;;  %5495 = vmatmul.mubr.msk.bf16.vlgmr.msra.gmra.mxu1 %vm4068_vm5, %v4029_v23 }
 0x890   : > { %v3891_v5 = vmul.f32 0.5, %v3849_v63 }
 0x891   : > { %v3954_v24 = vadd.f32 %v3938_v44, %v3846_v26  ;;  %v3936_v36 = vmul.f32 %v3920_v45, %v3838_v16  ;;  %v3923_v28 = vmul.f32 %v3907_v46, %v3849_v63  ;;  %v3905_v48 = vmul.f32 0.044715, %v3841_v57 }
 0x892   : > { %v3889_v53 = vmul.f32 0.5, %v3841_v57 }
 0x893   : > { %v3952_v7 = vadd.f32 %v3936_v36, %v3838_v16  ;;  %v3939_v17 = vmul.f32 %v3923_v28, %v3849_v63  ;;  %v3921_v13 = vmul.f32 %v3905_v48, %v3841_v57  ;;  %v3970_v3 = vmul.f32 0.7978846, %v3954_v24 }
 0x895   : > { %v3968_v60 = vmul.f32 0.7978846, %v3952_v7  ;;  %v3955_v32 = vadd.f32 %v3939_v17, %v3849_v63  ;;  %v3937_v41 = vmul.f32 %v3921_v13, %v3841_v57 }
 0x897   : > { %5826 = vtanh.f32 %v3968_v60  ;;  %v3971_v59 = vmul.f32 0.7978846, %v3955_v32  ;;  %v3953_v8 = vadd.f32 %v3937_v41, %v3841_v57 }
 0x898   : > { %5828 = vtanh.f32 %v3970_v3 }
 0x899   : > { %5830 = vtanh.f32 %v3971_v59  ;;  %v3969_v27 = vmul.f32 0.7978846, %v3953_v8 }
 0x89b   : > { %5832 = vtanh.f32 %v3969_v27 }
 0x8a4   : > { %v5827_v38 = vpop.eup %5826 }
 0x8a5   : > { %v5829_v21 = vpop.eup %5828  ;;  %v4000_v11 = vadd.f32 1.0, %v5827_v38 }
 0x8a6   : > { %v5831_v39 = vpop.eup %5830  ;;  %v4002_v18 = vadd.f32 1.0, %v5829_v21 }
 0x8a7   : > { %v4003_v51 = vadd.f32 1.0, %v5831_v39  ;;  %v4016_v9 = vmul.f32 %v4000_v11, %v3888_v56 }
 0x8a8   : > { %v5833_v6 = vpop.eup %5832  ;;  %v5480_v22 = vpop.f32.mrf.mxu0  ;;  %v4018_v20 = vmul.f32 %v4002_v18, %v3890_v10 }
 0x8a9   : > { %v3862_v34 = vadd.f32 %v5480_v22, %v7701_v30  ;;  %v4001_v55 = vadd.f32 1.0, %v5833_v6  ;;  %v4019_v14 = vmul.f32 %v4003_v51, %v3891_v5 }
 0x8aa   : > { %v3853_v33 = vpop.f32.mrf.mxu0 }
 0x8ab   : > { %v3910_v62 = vmul.f32 0.044715, %v3862_v34  ;;  %v3854_v42 = vadd.f32 %v7701_v30, %v3853_v33  ;;  %v4017_v1 = vmul.f32 %v4001_v55, %v3889_v53  ;;  %v4031_v44 = vpack.c.bf16 %v4019_v14, %v4018_v20 }
 0x8ac   : > { %v5481_v19 = vpop.f32.mrf.mxu0  ;;  %v3894_v10 = vmul.f32 0.5, %v3862_v34 }
 0x8ad   : > { %v3926_v15 = vmul.f32 %v3910_v62, %v3862_v34  ;;  %v3908_v54 = vmul.f32 0.044715, %v3854_v42  ;;  %v3865_v63 = vadd.f32 %v5481_v19, %v7701_v30  ;;  %v4030_v23 = vpack.c.bf16 %v4017_v1, %v4016_v9 }
 0x8ae   : > { %v3856_v43 = vpop.f32.mrf.mxu0  ;;  %v3892_v56 = vmul.f32 0.5, %v3854_v42 }
 0x8af   : > { %v3942_v16 = vmul.f32 %v3926_v15, %v3862_v34  ;;  %v3924_v45 = vmul.f32 %v3908_v54, %v3854_v42  ;;  %v3911_v46 = vmul.f32 0.044715, %v3865_v63  ;;  %v3857_v26 = vadd.f32 %v7701_v30, %v3856_v43  ;;  %5498 = vmatprep.mubr.msk.bf16.mxu1 %vm4068_vm5, %v4030_v23 }
 0x8b0   : > { %5499 = vmatmul.mubr.msk.bf16.gmra.mxu1 %vm4068_vm5, %v4031_v44  ;;  %v3895_v22 = vmul.f32 0.5, %v3865_v63 }
 0x8b1   : > { %v3958_v57 = vadd.f32 %v3942_v16, %v3862_v34  ;;  %v3940_v24 = vmul.f32 %v3924_v45, %v3854_v42  ;;  %v3927_v36 = vmul.f32 %v3911_v46, %v3865_v63  ;;  %v3909_v28 = vmul.f32 0.044715, %v3857_v26 }
 0x8b2   : > { %v3893_v53 = vmul.f32 0.5, %v3857_v26 }
 0x8b3   : > { %v3956_v48 = vadd.f32 %v3940_v24, %v3854_v42  ;;  %v3943_v7 = vmul.f32 %v3927_v36, %v3865_v63  ;;  %v3925_v17 = vmul.f32 %v3909_v28, %v3857_v26  ;;  %v3974_v13 = vmul.f32 0.7978846, %v3958_v57 }
 0x8b5   : > { %v3972_v3 = vmul.f32 0.7978846, %v3956_v48  ;;  %v3959_v60 = vadd.f32 %v3943_v7, %v3865_v63  ;;  %v3941_v32 = vmul.f32 %v3925_v17, %v3857_v26 }
 0x8b7   : > { %5834 = vtanh.f32 %v3972_v3  ;;  %v3975_v41 = vmul.f32 0.7978846, %v3959_v60  ;;  %v3957_v59 = vadd.f32 %v3941_v32, %v3857_v26 }
 0x8b8   : > { %5836 = vtanh.f32 %v3974_v13 }
 0x8b9   : > { %5838 = vtanh.f32 %v3975_v41  ;;  %v3973_v8 = vmul.f32 0.7978846, %v3957_v59 }
 0x8bb   : > { %5840 = vtanh.f32 %v3973_v8 }
 0x8c4   : > { %v5835_v27 = vpop.eup %5834 }
 0x8c5   : > { %v5837_v38 = vpop.eup %5836  ;;  %v4004_v39 = vadd.f32 1.0, %v5835_v27 }
 0x8c6   : > { %v5839_v21 = vpop.eup %5838  ;;  %v4006_v5 = vadd.f32 1.0, %v5837_v38 }
 0x8c7   : > { %v4007_v11 = vadd.f32 1.0, %v5839_v21  ;;  %v4020_v1 = vmul.f32 %v4004_v39, %v3892_v56 }
 0x8c8   : > { %v5841_v51 = vpop.eup %5840  ;;  %v5484_v6 = vpop.f32.mrf.mxu0  ;;  %v4022_v15 = vmul.f32 %v4006_v5, %v3894_v10 }
 0x8c9   : > { %v3878_v18 = vadd.f32 %v5484_v6, %v7701_v30  ;;  %v4005_v55 = vadd.f32 1.0, %v5841_v51  ;;  %v4023_v14 = vmul.f32 %v4007_v11, %v3895_v22 }
 0x8ca   : > { %v3869_v33 = vpop.f32.mrf.mxu0 }
 0x8cb   : > { %v3914_v62 = vmul.f32 0.044715, %v3878_v18  ;;  %v3870_v9 = vadd.f32 %v7701_v30, %v3869_v33  ;;  %v4021_v19 = vmul.f32 %v4005_v55, %v3893_v53  ;;  %v4033_v16 = vpack.c.bf16 %v4023_v14, %v4022_v15 }
 0x8cc   : > { %v5485_v20 = vpop.f32.mrf.mxu0  ;;  %v3898_v56 = vmul.f32 0.5, %v3878_v18 }
 0x8cd   : > { %v3930_v54 = vmul.f32 %v3914_v62, %v3878_v18  ;;  %v3912_v23 = vmul.f32 0.044715, %v3870_v9  ;;  %v3881_v63 = vadd.f32 %v5485_v20, %v7701_v30  ;;  %v4032_v43 = vpack.c.bf16 %v4021_v19, %v4020_v1  ;;  %v5133_v19 = vld [vmem:[%s989_s1] ss:$0 sm:$0xff] }
 0x8ce   : > { %v3872_v44 = vpop.f32.mrf.mxu0  ;;  %v3896_v6 = vmul.f32 0.5, %v3870_v9 }
 0x8cf   : > { %v3946_v42 = vmul.f32 %v3930_v54, %v3878_v18  ;;  %v3928_v45 = vmul.f32 %v3912_v23, %v3870_v9  ;;  %v3915_v46 = vmul.f32 0.044715, %v3881_v63  ;;  %v3873_v34 = vadd.f32 %v7701_v30, %v3872_v44  ;;  %5502 = vmatprep.mubr.msk.bf16.mxu1 %vm4068_vm5, %v4032_v43 }
 0x8d0   : > { %5503 = vmatmul.mubr.msk.bf16.gmra.mxu1 %vm4068_vm5, %v4033_v16  ;;  %v3899_v11 = vmul.f32 0.5, %v3881_v63 }
 0x8d1   : > { %v3962_v26 = vadd.f32 %v3946_v42, %v3878_v18  ;;  %v3944_v57 = vmul.f32 %v3928_v45, %v3870_v9  ;;  %v3931_v24 = vmul.f32 %v3915_v46, %v3881_v63  ;;  %v3913_v36 = vmul.f32 0.044715, %v3873_v34 }
 0x8d2   : > { %v3897_v22 = vmul.f32 0.5, %v3873_v34 }
 0x8d3   : > { %v3960_v28 = vadd.f32 %v3944_v57, %v3870_v9  ;;  %v3947_v48 = vmul.f32 %v3931_v24, %v3881_v63  ;;  %v3929_v7 = vmul.f32 %v3913_v36, %v3873_v34  ;;  %v3978_v17 = vmul.f32 0.7978846, %v3962_v26 }
 0x8d5   : > { %v3976_v13 = vmul.f32 0.7978846, %v3960_v28  ;;  %v3963_v3 = vadd.f32 %v3947_v48, %v3881_v63  ;;  %v3945_v60 = vmul.f32 %v3929_v7, %v3873_v34 }
 0x8d7   : > { %5842 = vtanh.f32 %v3976_v13  ;;  %v3979_v32 = vmul.f32 0.7978846, %v3963_v3  ;;  %v3961_v41 = vadd.f32 %v3945_v60, %v3873_v34 }
 0x8d8   : > { %5844 = vtanh.f32 %v3978_v17 }
 0x8d9   : > { %5846 = vtanh.f32 %v3979_v32  ;;  %v3977_v30 = vmul.f32 0.7978846, %v3961_v41 }
 0x8db   : > { %5848 = vtanh.f32 %v3977_v30 }
 0x8e4   : > { %v5843_v59 = vpop.eup %5842 }
 0x8e5   : > { %v5845_v8 = vpop.eup %5844  ;;  %v4008_v38 = vadd.f32 1.0, %v5843_v59 }
 0x8e6   : > { %v5847_v27 = vpop.eup %5846  ;;  %v4010_v51 = vadd.f32 1.0, %v5845_v8 }
 0x8e7   : > { %v4011_v21 = vadd.f32 1.0, %v5847_v27  ;;  %v4024_v55 = vmul.f32 %v4008_v38, %v3896_v6 }
 0x8e8   : > { %v5849_v39 = vpop.eup %5848  ;;  %v4026_v10 = vmul.f32 %v4010_v51, %v3898_v56 }
 0x8e9   : > { %v4009_v5 = vadd.f32 1.0, %v5849_v39  ;;  %v4027_v53 = vmul.f32 %v4011_v21, %v3899_v11 }
 0x8eb   : > { %v4025_v33 = vmul.f32 %v4009_v5, %v3897_v22  ;;  %v4035_v62 = vpack.c.bf16 %v4027_v53, %v4026_v10 }
 0x8ed   : > { %v4034_v14 = vpack.c.bf16 %v4025_v33, %v4024_v55 }
 0x8ef   : > { %5506 = vmatprep.mubr.msk.bf16.mxu1 %vm4068_vm5, %v4034_v14 }
 0x8f0   : > { %5507 = vmatmul.mubr.msk.bf16.gmra.mxu1 %vm4068_vm5, %v4035_v62 }
 0x94f   : > { %v5496_v1 = vpop.f32.mrf.mxu1 }
 0x950   : > { %v4192_v9 = vadd.f32 %v5496_v1, %v7448_v37 }
 0x951   : > { %v4127_v20 = vpop.f32.mrf.mxu1 }
 0x952   : > { %v7733_v18 = vadd.f32 %v5133_v19, %v4192_v9  ;;  %v4190_v15 = vadd.f32 %v4127_v20, %v7445_v58 }
 0x953   : > { %v5497_v54 = vpop.f32.mrf.mxu1 }
 0x954   : > { %4231 = vst.msk [vmem:[#allocation2 + $0x10] sm:$0xff] %vm1376_vm2, %v7733_v18  ;;  %v7738_v23 = vadd.f32 %v5133_v19, %v4190_v15  ;;  %v4193_v63 = vadd.f32 %v5497_v54, %v7456_v35 }
 0x955   : > { %v4130_v43 = vpop.f32.mrf.mxu1 }
 0x956   : > { %4229 = vst.msk [vmem:[#allocation2] sm:$0xff] %vm1376_vm2, %v7738_v23  ;;  %v7743_v44 = vadd.f32 %v5133_v19, %v4193_v63  ;;  %v4191_v37 = vadd.f32 %v4130_v43, %v7453_v4 }
 0x958   : > { %4232 = vst.msk [vmem:[#allocation2 + $0x18] sm:$0xff] %vm1376_vm2, %v7743_v44  ;;  %v7748_v58 = vadd.f32 %v5133_v19, %v4191_v37 }
 0x95a   : > { %4230 = vst.msk [vmem:[#allocation2 + $0x8] sm:$0xff] %vm1376_vm2, %v7748_v58 }
 0x970   : > { %v5500_v16 = vpop.f32.mrf.mxu1 }
 0x971   : > { %v4196_v42 = vadd.f32 %v5500_v16, %v7468_v2 }
 0x972   : > { %v4143_v35 = vpop.f32.mrf.mxu1 }
 0x973   : > { %v7753_v45 = vadd.f32 %v5133_v19, %v4196_v42  ;;  %v4194_v46 = vadd.f32 %v4143_v35, %v7465_v52 }
 0x974   : > { %v5501_v34 = vpop.f32.mrf.mxu1 }
 0x975   : > { %4235 = vst.msk [vmem:[#allocation2 + $0x30] sm:$0xff] %vm1376_vm2, %v7753_v45  ;;  %v7758_v4 = vadd.f32 %v5133_v19, %v4194_v46  ;;  %v4197_v26 = vadd.f32 %v5501_v34, %v7476_v29 }
 0x976   : > { %v4146_v57 = vpop.f32.mrf.mxu1 }
 0x977   : > { %4233 = vst.msk [vmem:[#allocation2 + $0x20] sm:$0xff] %vm1376_vm2, %v7758_v4  ;;  %v7763_v24 = vadd.f32 %v5133_v19, %v4197_v26  ;;  %v4195_v2 = vadd.f32 %v4146_v57, %v7473_v0 }
 0x979   : > { %4236 = vst.msk [vmem:[#allocation2 + $0x38] sm:$0xff] %vm1376_vm2, %v7763_v24  ;;  %v7768_v52 = vadd.f32 %v5133_v19, %v4195_v2 }
 0x97b   : > { %4234 = vst.msk [vmem:[#allocation2 + $0x28] sm:$0xff] %vm1376_vm2, %v7768_v52 }
 0x990   : > { %v5504_v36 = vpop.f32.mrf.mxu1 }
 0x991   : > { %v4200_v28 = vadd.f32 %v5504_v36, %v7488_v12 }
 0x992   : > { %v4159_v29 = vpop.f32.mrf.mxu1 }
 0x993   : > { %v7773_v48 = vadd.f32 %v5133_v19, %v4200_v28  ;;  %v4198_v7 = vadd.f32 %v4159_v29, %v7485_v40 }
 0x994   : > { %v5505_v17 = vpop.f32.mrf.mxu1 }
 0x995   : > { %4239 = vst.msk [vmem:[#allocation2 + $0x50] sm:$0xff] %vm1376_vm2, %v7773_v48  ;;  %v7778_v0 = vadd.f32 %v5133_v19, %v4198_v7  ;;  %v4201_v13 = vadd.f32 %v5505_v17, %v7496_v31 }
 0x996   : > { %v4162_v3 = vpop.f32.mrf.mxu1 }
 0x997   : > { %4237 = vst.msk [vmem:[#allocation2 + $0x40] sm:$0xff] %vm1376_vm2, %v7778_v0  ;;  %v7783_v60 = vadd.f32 %v5133_v19, %v4201_v13  ;;  %v4199_v12 = vadd.f32 %v4162_v3, %v7493_v47 }
 0x999   : > { %4240 = vst.msk [vmem:[#allocation2 + $0x58] sm:$0xff] %vm1376_vm2, %v7783_v60  ;;  %v7788_v40 = vadd.f32 %v5133_v19, %v4199_v12 }
 0x99b   : > { %4238 = vst.msk [vmem:[#allocation2 + $0x48] sm:$0xff] %vm1376_vm2, %v7788_v40 }
 0x9b0   : > { %v5508_v32 = vpop.f32.mrf.mxu1 }
 0x9b1   : > { %v4204_v41 = vadd.f32 %v5508_v32, %v7508_v61 }
 0x9b2   : > { %v4175_v31 = vpop.f32.mrf.mxu1 }
 0x9b3   : > { %v7793_v30 = vadd.f32 %v5133_v19, %v4204_v41  ;;  %v4202_v59 = vadd.f32 %v4175_v31, %v7505_v50 }
 0x9b4   : > { %v5509_v8 = vpop.f32.mrf.mxu1 }
 0x9b5   : > { %4243 = vst.msk [vmem:[#allocation2 + $0x70] sm:$0xff] %vm1376_vm2, %v7793_v30  ;;  %v7798_v47 = vadd.f32 %v5133_v19, %v4202_v59  ;;  %v4205_v27 = vadd.f32 %v5509_v8, %v7516_v25 }
 0x9b6   : > { %v4178_v38 = vpop.f32.mrf.mxu1 }
 0x9b7   : > { %4241 = vst.msk [vmem:[#allocation2 + $0x60] sm:$0xff] %vm1376_vm2, %v7798_v47  ;;  %v7803_v21 = vadd.f32 %v5133_v19, %v4205_v27  ;;  %v4203_v61 = vadd.f32 %v4178_v38, %v7513_v49  ;;  %4248 = sbr.rel (%p5134_p13) target bundleno = 3176 (0xc68), region = 157 }
 0x9b9   : > { %4244 = vst.msk [vmem:[#allocation2 + $0x78] sm:$0xff] %vm1376_vm2, %v7803_v21  ;;  %v7808_v50 = vadd.f32 %v5133_v19, %v4203_v61 }
 0x9bb   : > { %4242 = vst.msk [vmem:[#allocation2 + $0x68] sm:$0xff] %vm1376_vm2, %v7808_v50 }
 0x9bc   : > { %v4251_v25 = vsel %vm1376_vm2, %v7738_v23, 0.0  ;;  %v4275_v39 = vsel %vm1376_vm2, %v7778_v0, 0.0  ;;  %v4263_v49 = vsel %vm1376_vm2, %v7758_v4, 0.0  ;;  %v4254_v11 = vsel %vm1376_vm2, %v7748_v58, 0.0 }
 0x9bd   : > { %4252 = vadd.xlane.f32.xlu0 %v4251_v25  ;;  %4276 = vadd.xlane.f32.xlu1 %v4275_v39  ;;  %v4266_v51 = vsel %vm1376_vm2, %v7768_v52, 0.0  ;;  %v4278_v6 = vsel %vm1376_vm2, %v7788_v40, 0.0  ;;  %v4257_v22 = vsel %vm1376_vm2, %v7733_v18, 0.0  ;;  %v4269_v5 = vsel %vm1376_vm2, %v7753_v45, 0.0 }
 0x9be   : > { %v4281_v56 = vsel %vm1376_vm2, %v7773_v48, 0.0  ;;  %v4287_v53 = vsel %vm1376_vm2, %v7798_v47, 0.0  ;;  %v4260_v55 = vsel %vm1376_vm2, %v7743_v44, 0.0  ;;  %v4272_v33 = vsel %vm1376_vm2, %v7763_v24, 0.0 }
 0x9bf   : > { %v4284_v10 = vsel %vm1376_vm2, %v7783_v60, 0.0  ;;  %v4290_v14 = vsel %vm1376_vm2, %v7808_v50, 0.0  ;;  %v4293_v62 = vsel %vm1376_vm2, %v7793_v30, 0.0  ;;  %v4296_v1 = vsel %vm1376_vm2, %v7803_v21, 0.0 }
 0x9c1   : > { %4264 = vadd.xlane.f32.xlu0 %v4263_v49  ;;  %4255 = vadd.xlane.f32.xlu1 %v4254_v11 }
 0x9c5   : > { %4267 = vadd.xlane.f32.xlu0 %v4266_v51  ;;  %4279 = vadd.xlane.f32.xlu1 %v4278_v6 }
 0x9c9   : > { %4258 = vadd.xlane.f32.xlu0 %v4257_v22  ;;  %4270 = vadd.xlane.f32.xlu1 %v4269_v5 }
 0x9cd   : > { %4282 = vadd.xlane.f32.xlu0 %v4281_v56  ;;  %4288 = vadd.xlane.f32.xlu1 %v4287_v53 }
 0x9d1   : > { %4261 = vadd.xlane.f32.xlu0 %v4260_v55  ;;  %4273 = vadd.xlane.f32.xlu1 %v4272_v33 }
 0x9d5   : > { %4285 = vadd.xlane.f32.xlu0 %v4284_v10  ;;  %4291 = vadd.xlane.f32.xlu1 %v4290_v14 }
 0x9d9   : > { %4294 = vadd.xlane.f32.xlu0 %v4293_v62  ;;  %4297 = vadd.xlane.f32.xlu1 %v4296_v1 }
 0xa46   : > { %v4253_v19 = vpop.xlane.xlu0 %4252  ;;  %v4277_v9 = vpop.xlane.xlu1 %4276 }
 0xa47   : > { %v4299_v20 = vmul.f32 0.03125, %v4253_v19  ;;  %v4307_v15 = vmul.f32 0.03125, %v4277_v9 }
 0xa49   : > { %v7846_v54 = vsub.f32 %v7738_v23, %v4299_v20  ;;  %v7849_v63 = vsub.f32 %v7778_v0, %v4307_v15 }
 0xa4a   : > { %v4265_v43 = vpop.xlane.xlu0 %4264  ;;  %v4256_v37 = vpop.xlane.xlu1 %4255 }
 0xa4b   : > { %v4303_v16 = vmul.f32 0.03125, %v4265_v43  ;;  %v4300_v42 = vmul.f32 0.03125, %v4256_v37  ;;  %v4331_v35 = vmul.f32 %v7846_v54, %v7846_v54  ;;  %v4339_v46 = vmul.f32 %v7849_v63, %v7849_v63 }
 0xa4d   : > { %v7856_v34 = vsub.f32 %v7758_v4, %v4303_v16  ;;  %v7859_v26 = vsub.f32 %v7748_v58, %v4300_v42  ;;  %v4347_v23 = vsel %vm1376_vm2, %v4331_v35, 0.0  ;;  %v4371_v36 = vsel %vm1376_vm2, %v4339_v46, 0.0 }
 0xa4e   : > { %4348 = vadd.xlane.f32.xlu0 %v4347_v23  ;;  %v4268_v57 = vpop.xlane.xlu0 %4267  ;;  %v4280_v2 = vpop.xlane.xlu1 %4279 }
 0xa4f   : > { %v4304_v28 = vmul.f32 0.03125, %v4268_v57  ;;  %v4308_v29 = vmul.f32 0.03125, %v4280_v2  ;;  %v4335_v7 = vmul.f32 %v7856_v34, %v7856_v34  ;;  %v4332_v17 = vmul.f32 %v7859_v26, %v7859_v26 }
 0xa51   : > { %v7868_v4 = vsub.f32 %v7768_v52, %v4304_v28  ;;  %v7871_v58 = vsub.f32 %v7788_v40, %v4308_v29  ;;  %v4359_v0 = vsel %vm1376_vm2, %v4335_v7, 0.0  ;;  %v4350_v12 = vsel %vm1376_vm2, %v4332_v17, 0.0 }
 0xa52   : > { %4372 = vadd.xlane.f32.xlu0 %v4371_v36  ;;  %4360 = vadd.xlane.f32.xlu1 %v4359_v0  ;;  %v4259_v13 = vpop.xlane.xlu0 %4258  ;;  %v4271_v3 = vpop.xlane.xlu1 %4270 }
 0xa53   : > { %v4301_v32 = vmul.f32 0.03125, %v4259_v13  ;;  %v4305_v41 = vmul.f32 0.03125, %v4271_v3  ;;  %v4336_v31 = vmul.f32 %v7868_v4, %v7868_v4  ;;  %v4340_v52 = vmul.f32 %v7871_v58, %v7871_v58 }
 0xa55   : > { %v7880_v59 = vsub.f32 %v7733_v18, %v4301_v32  ;;  %v7883_v40 = vsub.f32 %v7753_v45, %v4305_v41  ;;  %v4362_v8 = vsel %vm1376_vm2, %v4336_v31, 0.0  ;;  %v4374_v61 = vsel %vm1376_vm2, %v4340_v52, 0.0 }
 0xa56   : > { %4351 = vadd.xlane.f32.xlu1 %v4350_v12  ;;  %4363 = vadd.xlane.f32.xlu0 %v4362_v8  ;;  %v4283_v27 = vpop.xlane.xlu0 %4282  ;;  %v4289_v38 = vpop.xlane.xlu1 %4288 }
 0xa57   : > { %v4309_v25 = vmul.f32 0.03125, %v4283_v27  ;;  %v4311_v39 = vmul.f32 0.03125, %v4289_v38  ;;  %v4333_v49 = vmul.f32 %v7880_v59, %v7880_v59  ;;  %v4337_v18 = vmul.f32 %v7883_v40, %v7883_v40 }
 0xa59   : > { %v7892_v11 = vsub.f32 %v7773_v48, %v4309_v25  ;;  %v7895_v45 = vsub.f32 %v7798_v47, %v4311_v39  ;;  %v4353_v51 = vsel %vm1376_vm2, %v4333_v49, 0.0  ;;  %v4365_v5 = vsel %vm1376_vm2, %v4337_v18, 0.0 }
 0xa5a   : > { %4375 = vadd.xlane.f32.xlu1 %v4374_v61  ;;  %4354 = vadd.xlane.f32.xlu0 %v4353_v51  ;;  %v4262_v6 = vpop.xlane.xlu0 %4261  ;;  %v4274_v22 = vpop.xlane.xlu1 %4273 }
 0xa5b   : > { %v4302_v56 = vmul.f32 0.03125, %v4262_v6  ;;  %v4306_v53 = vmul.f32 0.03125, %v4274_v22  ;;  %v4341_v55 = vmul.f32 %v7892_v11, %v7892_v11  ;;  %v4343_v48 = vmul.f32 %v7895_v45, %v7895_v45 }
 0xa5d   : > { %v7904_v33 = vsub.f32 %v7743_v44, %v4302_v56  ;;  %v7907_v47 = vsub.f32 %v7763_v24, %v4306_v53  ;;  %v4377_v10 = vsel %vm1376_vm2, %v4341_v55, 0.0  ;;  %v4383_v1 = vsel %vm1376_vm2, %v4343_v48, 0.0 }
 0xa5e   : > { %4366 = vadd.xlane.f32.xlu1 %v4365_v5  ;;  %4378 = vadd.xlane.f32.xlu0 %v4377_v10  ;;  %v4286_v14 = vpop.xlane.xlu0 %4285  ;;  %v4292_v62 = vpop.xlane.xlu1 %4291  ;;  %v7944_v10 = vld [vmem:[%s8214_s19] ss:$0 sm:$0xff] }
 0xa5f   : > { %v4310_v19 = vmul.f32 0.03125, %v4286_v14  ;;  %v4312_v9 = vmul.f32 0.03125, %v4292_v62  ;;  %v4334_v20 = vmul.f32 %v7904_v33, %v7904_v33  ;;  %v4338_v44 = vmul.f32 %v7907_v47, %v7907_v47 }
 0xa61   : > { %v7916_v15 = vsub.f32 %v7783_v60, %v4310_v19  ;;  %v7919_v24 = vsub.f32 %v7808_v50, %v4312_v9  ;;  %v4356_v43 = vsel %vm1376_vm2, %v4334_v20, 0.0  ;;  %v4368_v42 = vsel %vm1376_vm2, %v4338_v44, 0.0  ;;  %v7950_v20 = vld [vmem:[%s8215_s22] ss:$0 sm:$0xff] }
 0xa62   : > { %4384 = vadd.xlane.f32.xlu1 %v4383_v1  ;;  %4357 = vadd.xlane.f32.xlu0 %v4356_v43  ;;  %v4295_v37 = vpop.xlane.xlu0 %4294  ;;  %v4298_v16 = vpop.xlane.xlu1 %4297 }
 0xa63   : > { %v4313_v35 = vmul.f32 0.03125, %v4295_v37  ;;  %v4314_v46 = vmul.f32 0.03125, %v4298_v16  ;;  %v4342_v23 = vmul.f32 %v7916_v15, %v7916_v15  ;;  %v4344_v60 = vmul.f32 %v7919_v24, %v7919_v24 }
 0xa65   : > { %v7928_v57 = vsub.f32 %v7793_v30, %v4313_v35  ;;  %v7931_v50 = vsub.f32 %v7803_v21, %v4314_v46  ;;  %v4380_v2 = vsel %vm1376_vm2, %v4342_v23, 0.0  ;;  %v4386_v36 = vsel %vm1376_vm2, %v4344_v60, 0.0 }
 0xa66   : > { %4369 = vadd.xlane.f32.xlu1 %v4368_v42  ;;  %4381 = vadd.xlane.f32.xlu0 %v4380_v2  ;;  %v7956_v42 = vld [vmem:[%s8216_s28] ss:$0 sm:$0xff] }
 0xa67   : > { %v4345_v28 = vmul.f32 %v7928_v57, %v7928_v57  ;;  %v4346_v29 = vmul.f32 %v7931_v50, %v7931_v50 }
 0xa69   : > { %v4389_v7 = vsel %vm1376_vm2, %v4345_v28, 0.0  ;;  %v4392_v30 = vsel %vm1376_vm2, %v4346_v29, 0.0 }
 0xa6a   : > { %4387 = vadd.xlane.f32.xlu1 %v4386_v36  ;;  %4390 = vadd.xlane.f32.xlu0 %v4389_v7 }
 0xa6e   : > { %4393 = vadd.xlane.f32.xlu1 %v4392_v30 }
 0xad7   : > { %v4349_v21 = vpop.xlane.xlu0 %4348 }
 0xad8   : > { %v4395_v17 = vmul.f32 0.03125, %v4349_v21 }
 0xada   : > { %v4411_v0 = vadd.f32 1e-05, %v4395_v17 }
 0xadb   : > { %v4361_v13 = vpop.xlane.xlu1 %4360  ;;  %v4373_v3 = vpop.xlane.xlu0 %4372 }
 0xadc   : > { %5868 = vrsqrt.f32 %v4411_v0  ;;  %v4399_v12 = vmul.f32 0.03125, %v4361_v13  ;;  %v4403_v32 = vmul.f32 0.03125, %v4373_v3  ;;  %v7969_v0 = vld [vmem:[%s8217_s30] ss:$0 sm:$0xff] }
 0xade   : > { %v4415_v41 = vadd.f32 1e-05, %v4399_v12  ;;  %v4419_v31 = vadd.f32 1e-05, %v4403_v32 }
 0xadf   : > { %v4352_v52 = vpop.xlane.xlu1 %4351  ;;  %v4364_v8 = vpop.xlane.xlu0 %4363 }
 0xae0   : > { %5870 = vrsqrt.f32 %v4415_v41  ;;  %v4396_v27 = vmul.f32 0.03125, %v4352_v52  ;;  %v4400_v38 = vmul.f32 0.03125, %v4364_v8 }
 0xae1   : > { %5872 = vrsqrt.f32 %v4419_v31 }
 0xae2   : > { %v4412_v61 = vadd.f32 1e-05, %v4396_v27  ;;  %v4416_v25 = vadd.f32 1e-05, %v4400_v38 }
 0xae3   : > { %v4376_v39 = vpop.xlane.xlu1 %4375  ;;  %v4355_v49 = vpop.xlane.xlu0 %4354 }
 0xae4   : > { %5874 = vrsqrt.f32 %v4412_v61  ;;  %v4404_v18 = vmul.f32 0.03125, %v4376_v39  ;;  %v4397_v51 = vmul.f32 0.03125, %v4355_v49 }
 0xae5   : > { %5876 = vrsqrt.f32 %v4416_v25 }
 0xae6   : > { %v4420_v6 = vadd.f32 1e-05, %v4404_v18  ;;  %v4413_v22 = vadd.f32 1e-05, %v4397_v51 }
 0xae7   : > { %v4367_v5 = vpop.xlane.xlu1 %4366  ;;  %v4379_v56 = vpop.xlane.xlu0 %4378 }
 0xae8   : > { %5878 = vrsqrt.f32 %v4420_v6  ;;  %v4401_v53 = vmul.f32 0.03125, %v4367_v5  ;;  %v4405_v55 = vmul.f32 0.03125, %v4379_v56 }
 0xae9   : > { %v5869_v48 = vpop.eup %5868  ;;  %5880 = vrsqrt.f32 %v4413_v22 }
 0xaea   : > { %v4417_v14 = vadd.f32 1e-05, %v4401_v53  ;;  %v4421_v62 = vadd.f32 1e-05, %v4405_v55  ;;  %v4443_v1 = vmul.f32 %v5869_v48, %v7846_v54 }
 0xaeb   : > { %v4385_v19 = vpop.xlane.xlu1 %4384  ;;  %v4358_v9 = vpop.xlane.xlu0 %4357 }
 0xaec   : > { %5882 = vrsqrt.f32 %v4417_v14  ;;  %v4407_v44 = vmul.f32 0.03125, %v4385_v19  ;;  %v4398_v43 = vmul.f32 0.03125, %v4358_v9  ;;  %v4465_v37 = vmul.f32 %v7944_v10, %v4443_v1 }
 0xaed   : > { %v5871_v16 = vpop.eup %5870  ;;  %5884 = vrsqrt.f32 %v4421_v62 }
 0xaee   : > { %v5873_v54 = vpop.eup %5872  ;;  %v4423_v35 = vadd.f32 1e-05, %v4407_v44  ;;  %v4414_v46 = vadd.f32 1e-05, %v4398_v43  ;;  %v7959_v23 = vadd.f32 %v7950_v20, %v4465_v37  ;;  %v4447_v60 = vmul.f32 %v5871_v16, %v7856_v34 }
 0xaef   : > { %v4370_v2 = vpop.xlane.xlu1 %4369  ;;  %v4382_v36 = vpop.xlane.xlu0 %4381  ;;  %v4451_v28 = vmul.f32 %v5873_v54, %v7849_v63 }
 0xaf0   : > { %5886 = vrsqrt.f32 %v4423_v35  ;;  %v4402_v29 = vmul.f32 0.03125, %v4370_v2  ;;  %v4406_v7 = vmul.f32 0.03125, %v4382_v36  ;;  %v4510_v30 = vmul.f32 %v7956_v42, %v7959_v23 }
 0xaf1   : > { %v5875_v21 = vpop.eup %5874  ;;  %5888 = vrsqrt.f32 %v4414_v46  ;;  %v4469_v17 = vmul.f32 %v7944_v10, %v4447_v60  ;;  %v4473_v34 = vmul.f32 %v7944_v10, %v4451_v28 }
 0xaf2   : > { %v5877_v13 = vpop.eup %5876  ;;  %v4418_v3 = vadd.f32 1e-05, %v4402_v29  ;;  %v4422_v63 = vadd.f32 1e-05, %v4406_v7  ;;  %v4514_v12 = vsel %vm1376_vm2, %v4510_v30, 0.0  ;;  %v4444_v32 = vmul.f32 %v5875_v21, %v7859_v26 }
 0xaf3   : > { %v4388_v41 = vpop.xlane.xlu1 %4387  ;;  %v4391_v31 = vpop.xlane.xlu0 %4390  ;;  %4515 = vadd.xlane.f32.xlu0 %v4514_v12  ;;  %v7975_v52 = vadd.f32 %v7950_v20, %v4469_v17  ;;  %v7978_v8 = vadd.f32 %v7950_v20, %v4473_v34  ;;  %v4448_v27 = vmul.f32 %v5877_v13, %v7868_v4 }
 0xaf4   : > { %5890 = vrsqrt.f32 %v4418_v3  ;;  %v4408_v38 = vmul.f32 0.03125, %v4388_v41  ;;  %v4409_v61 = vmul.f32 0.03125, %v4391_v31  ;;  %v4466_v25 = vmul.f32 %v7944_v10, %v4444_v32 }
 0xaf5   : > { %v5879_v39 = vpop.eup %5878  ;;  %5892 = vrsqrt.f32 %v4422_v63  ;;  %v4533_v26 = vmul.f32 %v7969_v0, %v7975_v52  ;;  %v4564_v49 = vmul.f32 %v7969_v0, %v7978_v8  ;;  %v4470_v18 = vmul.f32 %v7944_v10, %v4448_v27 }
 0xaf6   : > { %v5881_v51 = vpop.eup %5880  ;;  %v4424_v6 = vadd.f32 1e-05, %v4408_v38  ;;  %v4425_v22 = vadd.f32 1e-05, %v4409_v61  ;;  %v7988_v4 = vadd.f32 %v7950_v20, %v4466_v25  ;;  %v4452_v5 = vmul.f32 %v5879_v39, %v7871_v58 }
 0xaf7   : > { %v4394_v56 = vpop.xlane.xlu1 %4393  ;;  %v4537_v53 = vsel %vm1376_vm2, %v4533_v26, 0.0  ;;  %v4568_v55 = vsel %vm1376_vm2, %v4564_v49, 0.0  ;;  %v7994_v48 = vadd.f32 %v7950_v20, %v4470_v18  ;;  %v4445_v14 = vmul.f32 %v5881_v51, %v7880_v59 }
 0xaf8   : > { %5894 = vrsqrt.f32 %v4424_v6  ;;  %v4410_v62 = vmul.f32 0.03125, %v4394_v56  ;;  %4538 = vadd.xlane.f32.xlu1 %v4537_v53  ;;  %4569 = vadd.xlane.f32.xlu0 %v4568_v55  ;;  %v4511_v1 = vmul.f32 %v7956_v42, %v7988_v4  ;;  %v4474_v19 = vmul.f32 %v7944_v10, %v4452_v5 }
 0xaf9   : > { %v5883_v58 = vpop.eup %5882  ;;  %5896 = vrsqrt.f32 %v4425_v22  ;;  %v4534_v9 = vmul.f32 %v7969_v0, %v7994_v48  ;;  %v4467_v44 = vmul.f32 %v7944_v10, %v4445_v14 }
 0xafa   : > { %v5885_v43 = vpop.eup %5884  ;;  %v4426_v37 = vadd.f32 1e-05, %v4410_v62  ;;  %v4517_v59 = vsel %vm1376_vm2, %v4511_v1, 0.0  ;;  %v8005_v16 = vadd.f32 %v7950_v20, %v4474_v19  ;;  %v4449_v54 = vmul.f32 %v5883_v58, %v7883_v40 }
 0xafb   : > { %v4540_v35 = vsel %vm1376_vm2, %v4534_v9, 0.0  ;;  %v8010_v46 = vadd.f32 %v7950_v20, %v4467_v44  ;;  %v4453_v60 = vmul.f32 %v5885_v43, %v7892_v11 }
 0xafc   : > { %5898 = vrsqrt.f32 %v4426_v37  ;;  %4518 = vadd.xlane.f32.xlu1 %v4517_v59  ;;  %4541 = vadd.xlane.f32.xlu0 %v4540_v35  ;;  %v4565_v2 = vmul.f32 %v7969_v0, %v8005_v16  ;;  %v4471_v36 = vmul.f32 %v7944_v10, %v4449_v54 }
 0xafd   : > { %v5887_v28 = vpop.eup %5886  ;;  %v4512_v29 = vmul.f32 %v7956_v42, %v8010_v46  ;;  %v4475_v40 = vmul.f32 %v7944_v10, %v4453_v60 }
 0xafe   : > { %v5889_v7 = vpop.eup %5888  ;;  %v4571_v30 = vsel %vm1376_vm2, %v4565_v2, 0.0  ;;  %v8021_v21 = vadd.f32 %v7950_v20, %v4471_v36  ;;  %v4455_v11 = vmul.f32 %v5887_v28, %v7895_v45  ;;  %v5990_v2 = vmov 0  }
 0xaff   : > { %v4520_v17 = vsel %vm1376_vm2, %v4512_v29, 0.0  ;;  %v8026_v34 = vadd.f32 %v7950_v20, %v4475_v40  ;;  %v4446_v13 = vmul.f32 %v5889_v7, %v7904_v33  ;;  %5866 = vset.pattern.permute.xlu0 %v5990_v2  ;;  %5867 = vset.pattern.permute.xlu1 %v5990_v2 }
 0xb00   : > { %4572 = vadd.xlane.f32.xlu1 %v4571_v30  ;;  %4521 = vadd.xlane.f32.xlu0 %v4520_v17  ;;  %v4535_v3 = vmul.f32 %v7969_v0, %v8021_v21  ;;  %v4477_v63 = vmul.f32 %v7944_v10, %v4455_v11  ;;  %v5139_v17 = vld [vmem:[#allocation3] ss:$0 sm:$0xff] }
 0xb01   : > { %v5891_v12 = vpop.eup %5890  ;;  %v4566_v32 = vmul.f32 %v7969_v0, %v8026_v34  ;;  %v4468_v45 = vmul.f32 %v7944_v10, %v4446_v13 }
 0xb02   : > { %v5893_v41 = vpop.eup %5892  ;;  %v4543_v31 = vsel %vm1376_vm2, %v4535_v3, 0.0  ;;  %v8037_v27 = vadd.f32 %v7950_v20, %v4477_v63  ;;  %v4450_v33 = vmul.f32 %v5891_v12, %v7907_v47 }
 0xb03   : > { %v4574_v38 = vsel %vm1376_vm2, %v4566_v32, 0.0  ;;  %v8042_v61 = vadd.f32 %v7950_v20, %v4468_v45  ;;  %v4454_v25 = vmul.f32 %v5893_v41, %v7916_v15 }
 0xb04   : > { %4544 = vadd.xlane.f32.xlu1 %v4543_v31  ;;  %4575 = vadd.xlane.f32.xlu0 %v4574_v38  ;;  %v4588_v39 = vmul.f32 %v7969_v0, %v8037_v27  ;;  %v4472_v26 = vmul.f32 %v7944_v10, %v4450_v33 }
 0xb05   : > { %v5895_v49 = vpop.eup %5894  ;;  %v4513_v18 = vmul.f32 %v7956_v42, %v8042_v61  ;;  %v4476_v47 = vmul.f32 %v7944_v10, %v4454_v25 }
 0xb06   : > { %v5897_v51 = vpop.eup %5896  ;;  %v4592_v6 = vsel %vm1376_vm2, %v4588_v39, 0.0  ;;  %v8053_v22 = vadd.f32 %v7950_v20, %v4472_v26  ;;  %v4456_v15 = vmul.f32 %v5895_v49, %v7919_v24 }
 0xb07   : > { %v4523_v5 = vsel %vm1376_vm2, %v4513_v18, 0.0  ;;  %v8058_v56 = vadd.f32 %v7950_v20, %v4476_v47  ;;  %v4457_v53 = vmul.f32 %v5897_v51, %v7928_v57 }
 0xb08   : > { %4593 = vadd.xlane.f32.xlu1 %v4592_v6  ;;  %4524 = vadd.xlane.f32.xlu0 %v4523_v5  ;;  %v4536_v42 = vmul.f32 %v7969_v0, %v8053_v22  ;;  %v4478_v55 = vmul.f32 %v7944_v10, %v4456_v15 }
 0xb09   : > { %v5899_v14 = vpop.eup %5898  ;;  %v4567_v62 = vmul.f32 %v7969_v0, %v8058_v56  ;;  %v4479_v24 = vmul.f32 %v7944_v10, %v4457_v53 }
 0xb0a   : > { %v4546_v1 = vsel %vm1376_vm2, %v4536_v42, 0.0  ;;  %v8069_v19 = vadd.f32 %v7950_v20, %v4478_v55  ;;  %v4458_v57 = vmul.f32 %v5899_v14, %v7931_v50 }
 0xb0b   : > { %v4577_v58 = vsel %vm1376_vm2, %v4567_v62, 0.0  ;;  %v8074_v9 = vadd.f32 %v7950_v20, %v4479_v24 }
 0xb0c   : > { %4547 = vadd.xlane.f32.xlu1 %v4546_v1  ;;  %4578 = vadd.xlane.f32.xlu0 %v4577_v58  ;;  %v4589_v44 = vmul.f32 %v7969_v0, %v8069_v19  ;;  %v4480_v43 = vmul.f32 %v7944_v10, %v4458_v57 }
 0xb0d   : > { %v4590_v37 = vmul.f32 %v7969_v0, %v8074_v9 }
 0xb0e   : > { %v4595_v59 = vsel %vm1376_vm2, %v4589_v44, 0.0  ;;  %v8083_v54 = vadd.f32 %v7950_v20, %v4480_v43 }
 0xb0f   : > { %v4598_v50 = vsel %vm1376_vm2, %v4590_v37, 0.0 }
 0xb10   : > { %4596 = vadd.xlane.f32.xlu1 %v4595_v59  ;;  %4599 = vadd.xlane.f32.xlu0 %v4598_v50  ;;  %v4591_v35 = vmul.f32 %v7969_v0, %v8083_v54 }
 0xb12   : > { %v4601_v60 = vsel %vm1376_vm2, %v4591_v35, 0.0 }
 0xb14   : > { %4602 = vadd.xlane.f32.xlu1 %v4601_v60 }
 0xb7c   : > { %v4516_v10 = vpop.xlane.xlu0 %4515 }
 0xb81   : > { %v4539_v36 = vpop.xlane.xlu1 %4538  ;;  %v4570_v28 = vpop.xlane.xlu0 %4569 }
 0xb82   : > { %v4549_v30 = vadd.f32 %v4539_v36, %v4516_v10  ;;  %v4580_v11 = vadd.f32 %v4570_v28, %v4516_v10 }
 0xb84   : > { %v4560_v63 = vadd.f32 %v5139_v17, %v4549_v30  ;;  %v4584_v0 = vadd.f32 %v5139_v17, %v4580_v11 }
 0xb85   : > { %v4519_v29 = vpop.xlane.xlu1 %4518  ;;  %v4542_v40 = vpop.xlane.xlu0 %4541 }
 0xb86   : > { %v4612_v41 = vmax.f32 %v4560_v63, %v4584_v0  ;;  %v4550_v49 = vadd.f32 %v4542_v40, %v4519_v29 }
 0xb88   : > { %v4561_v24 = vadd.f32 %v5139_v17, %v4550_v49 }
 0xb89   : > { %v4573_v20 = vpop.xlane.xlu1 %4572  ;;  %v4522_v7 = vpop.xlane.xlu0 %4521 }
 0xb8a   : > { %v4581_v31 = vadd.f32 %v4573_v20, %v4519_v29 }
 0xb8c   : > { %v4585_v6 = vadd.f32 %v5139_v17, %v4581_v31 }
 0xb8d   : > { %v4545_v13 = vpop.xlane.xlu1 %4544  ;;  %v4576_v3 = vpop.xlane.xlu0 %4575 }
 0xb8e   : > { %v4551_v38 = vadd.f32 %v4545_v13, %v4522_v7  ;;  %v4582_v25 = vadd.f32 %v4576_v3, %v4522_v7  ;;  %v4613_v50 = vmax.f32 %v4561_v24, %v4585_v6 }
 0xb90   : > { %v4562_v42 = vadd.f32 %v5139_v17, %v4551_v38  ;;  %v4586_v55 = vadd.f32 %v5139_v17, %v4582_v25 }
 0xb91   : > { %v4594_v12 = vpop.xlane.xlu1 %4593  ;;  %v4525_v32 = vpop.xlane.xlu0 %4524 }
 0xb92   : > { %v4604_v45 = vadd.f32 %v4594_v12, %v4516_v10  ;;  %v4614_v60 = vmax.f32 %v4562_v42, %v4586_v55 }
 0xb94   : > { %v4608_v33 = vadd.f32 %v5139_v17, %v4604_v45 }
 0xb95   : > { %v4548_v39 = vpop.xlane.xlu1 %4547  ;;  %v4579_v26 = vpop.xlane.xlu0 %4578 }
 0xb96   : > { %v4616_v18 = vmax.f32 %v4612_v41, %v4608_v33  ;;  %v4552_v47 = vadd.f32 %v4548_v39, %v4525_v32  ;;  %v4583_v51 = vadd.f32 %v4579_v26, %v4525_v32 }
 0xb98   : > { %v4620_v15 = vsub.f32 %v4560_v63, %v4616_v18  ;;  %v4632_v5 = vsub.f32 %v4584_v0, %v4616_v18  ;;  %v4644_v53 = vsub.f32 %v4608_v33, %v4616_v18  ;;  %v4563_v43 = vadd.f32 %v5139_v17, %v4552_v47 }
 0xb99   : > { %v4597_v14 = vpop.xlane.xlu1 %4596  ;;  %v4600_v62 = vpop.xlane.xlu0 %4599  ;;  %v4587_v37 = vadd.f32 %v5139_v17, %v4583_v51 }
 0xb9a   : > { %v4624_v1 = vmul.f32 1.442695, %v4620_v15  ;;  %v4636_v57 = vmul.f32 1.442695, %v4632_v5  ;;  %v4605_v58 = vadd.f32 %v4597_v14, %v4519_v29  ;;  %v4648_v44 = vmul.f32 1.442695, %v4644_v53 }
 0xb9b   : > { %v4606_v59 = vadd.f32 %v4600_v62, %v4522_v7  ;;  %v4615_v40 = vmax.f32 %v4563_v43, %v4587_v37 }
 0xb9c   : > { %5900 = vpow2.f32 %v4624_v1  ;;  %v4609_v35 = vadd.f32 %v5139_v17, %v4605_v58 }
 0xb9d   : > { %5902 = vpow2.f32 %v4636_v57  ;;  %v4610_v2 = vadd.f32 %v5139_v17, %v4606_v59  ;;  %v4603_v10 = vpop.xlane.xlu1 %4602 }
 0xb9e   : > { %v4617_v36 = vmax.f32 %v4613_v50, %v4609_v35  ;;  %v4607_v28 = vadd.f32 %v4603_v10, %v4525_v32  ;;  %5904 = vpow2.f32 %v4648_v44 }
 0xb9f   : > { %v4618_v20 = vmax.f32 %v4614_v60, %v4610_v2 }
 0xba0   : > { %v4621_v30 = vsub.f32 %v4561_v24, %v4617_v36  ;;  %v4633_v11 = vsub.f32 %v4585_v6, %v4617_v36  ;;  %v4645_v13 = vsub.f32 %v4609_v35, %v4617_v36  ;;  %v4611_v29 = vadd.f32 %v5139_v17, %v4607_v28 }
 0xba1   : > { %v4622_v3 = vsub.f32 %v4562_v42, %v4618_v20  ;;  %v4634_v63 = vsub.f32 %v4586_v55, %v4618_v20  ;;  %v4646_v0 = vsub.f32 %v4610_v2, %v4618_v20 }
 0xba2   : > { %v4626_v7 = vmul.f32 1.442695, %v4621_v30  ;;  %v4638_v12 = vmul.f32 1.442695, %v4633_v11  ;;  %v4650_v45 = vmul.f32 1.442695, %v4645_v13  ;;  %v4619_v41 = vmax.f32 %v4615_v40, %v4611_v29 }
 0xba3   : > { %v4628_v31 = vmul.f32 1.442695, %v4622_v3  ;;  %v4640_v33 = vmul.f32 1.442695, %v4634_v63  ;;  %v4652_v32 = vmul.f32 1.442695, %v4646_v0 }
 0xba4   : > { %5906 = vpow2.f32 %v4626_v7  ;;  %v4623_v38 = vsub.f32 %v4563_v43, %v4619_v41  ;;  %v4635_v25 = vsub.f32 %v4587_v37, %v4619_v41  ;;  %v4647_v39 = vsub.f32 %v4611_v29, %v4619_v41 }
 0xba5   : > { %5908 = vpow2.f32 %v4638_v12 }
 0xba6   : > { %5910 = vpow2.f32 %v4650_v45  ;;  %v4630_v26 = vmul.f32 1.442695, %v4623_v38  ;;  %v4642_v49 = vmul.f32 1.442695, %v4635_v25  ;;  %v4654_v18 = vmul.f32 1.442695, %v4647_v39 }
 0xba7   : > { %5912 = vpow2.f32 %v4628_v31 }
 0xba8   : > { %5914 = vpow2.f32 %v4640_v33 }
 0xba9   : > { %v5901_v17 = vpop.eup %5900  ;;  %5916 = vpow2.f32 %v4652_v32 }
 0xbaa   : > { %v5903_v47 = vpop.eup %5902  ;;  %5918 = vpow2.f32 %v4630_v26 }
 0xbab   : > { %v4656_v51 = vadd.f32 %v5903_v47, %v5901_v17  ;;  %5920 = vpow2.f32 %v4642_v49  ;;  %v5905_v6 = vpop.eup %5904 }
 0xbac   : > { %5922 = vpow2.f32 %v4654_v18 }
 0xbad   : > { %v4660_v15 = vadd.f32 %v5905_v6, %v4656_v51 }
 0xbaf   : > { %5924 = vrcp.f32 %v4660_v15 }
 0xbb1   : > { %v5907_v5 = vpop.eup %5906 }
 0xbb2   : > { %v5909_v53 = vpop.eup %5908 }
 0xbb3   : > { %v5911_v42 = vpop.eup %5910  ;;  %v4657_v55 = vadd.f32 %v5909_v53, %v5907_v5 }
 0xbb4   : > { %v5913_v14 = vpop.eup %5912 }
 0xbb5   : > { %v5915_v62 = vpop.eup %5914  ;;  %v4661_v24 = vadd.f32 %v5911_v42, %v4657_v55 }
 0xbb6   : > { %v5917_v1 = vpop.eup %5916  ;;  %v4658_v57 = vadd.f32 %v5915_v62, %v5913_v14 }
 0xbb7   : > { %v5919_v58 = vpop.eup %5918  ;;  %5926 = vrcp.f32 %v4661_v24 }
 0xbb8   : > { %v5921_v44 = vpop.eup %5920  ;;  %v4662_v43 = vadd.f32 %v5917_v1, %v4658_v57 }
 0xbb9   : > { %v4659_v37 = vadd.f32 %v5921_v44, %v5919_v58  ;;  %v5923_v59 = vpop.eup %5922 }
 0xbba   : > { %5928 = vrcp.f32 %v4662_v43 }
 0xbbb   : > { %v4663_v50 = vadd.f32 %v5923_v59, %v4659_v37 }
 0xbbc   : > { %v5925_v35 = vpop.eup %5924 }
 0xbbd   : > { %5930 = vrcp.f32 %v4663_v50  ;;  %v4668_v60 = vmul.f32 %v5925_v35, %v5901_v17  ;;  %v4700_v11 = vmul.f32 %v5925_v35, %v5903_v47  ;;  %v4732_v63 = vmul.f32 %v5925_v35, %v5905_v6 }
 0xbbf   : > { %4674 = vperm.xlu0 %5866, %v4668_v60  }
 0xbc4   : > { %v5927_v2 = vpop.eup %5926 }
 0xbc5   : > { %v4733_v10 = vmul.f32 %v5927_v2, %v5911_v42  ;;  %v4669_v36 = vmul.f32 %v5927_v2, %v5907_v5  ;;  %v4701_v29 = vmul.f32 %v5927_v2, %v5909_v53 }
 0xbc7   : > { %v5929_v28 = vpop.eup %5928  ;;  %4743 = vperm.xlu0 %5866, %v4733_v10   ;;  %4679 = vperm.xlu1 %5867, %v4669_v36  }
 0xbc8   : > { %v4670_v40 = vmul.f32 %v5929_v28, %v5913_v14  ;;  %v4702_v3 = vmul.f32 %v5929_v28, %v5915_v62  ;;  %v4734_v7 = vmul.f32 %v5929_v28, %v5917_v1 }
 0xbca   : > { %v5931_v20 = vpop.eup %5930 }
 0xbcb   : > { %v4735_v30 = vmul.f32 %v5931_v20, %v5923_v59  ;;  %4684 = vperm.xlu1 %5867, %v4670_v40   ;;  %v4671_v13 = vmul.f32 %v5931_v20, %v5919_v58  ;;  %v4703_v0 = vmul.f32 %v5931_v20, %v5921_v44 }
 0xbcd   : > { %4753 = vperm.xlu0 %5866, %v4735_v30  }
 0xbcf   : > { %4706 = vperm.xlu1 %5867, %v4700_v11  }
 0xbd3   : > { %4689 = vperm.xlu1 %5867, %v4671_v13  }
 0xbd7   : > { %4711 = vperm.xlu1 %5867, %v4701_v29  }
 0xbdb   : > { %4716 = vperm.xlu1 %5867, %v4702_v3  }
 0xbdf   : > { %4738 = vperm.xlu1 %5867, %v4732_v63  }
 0xbe3   : > { %4721 = vperm.xlu1 %5867, %v4703_v0  }
 0xbe7   : > { %4748 = vperm.xlu1 %5867, %v4734_v7  }
 0xc3a   : > { %v4675_v33 = vpop.permute.xlu0 %4674 }
 0xc3b   : > { %v4692_v32 = vmul.f32 %v4675_v33, %v7975_v52 }
 0xc3d   : > { %v4696_v18 = vadd.f32 %v4692_v32, %v7959_v23 }
 0xc42   : > { %v4680_v12 = vpop.permute.xlu1 %4679  ;;  %v4744_v47 = vpop.permute.xlu0 %4743 }
 0xc43   : > { %v4693_v25 = vmul.f32 %v4680_v12, %v7994_v48  ;;  %v4757_v48 = vmul.f32 %v4744_v47, %v8069_v19 }
 0xc45   : > { %v4697_v17 = vadd.f32 %v4693_v25, %v7988_v4 }
 0xc46   : > { %v4685_v45 = vpop.permute.xlu1 %4684 }
 0xc4a   : > { %v4707_v41 = vpop.permute.xlu1 %4706 }
 0xc4b   : > { %v4724_v49 = vmul.f32 %v4707_v41, %v7978_v8 }
 0xc4d   : > { %v4728_v15 = vadd.f32 %v4724_v49, %v4696_v18 }
 0xc4e   : > { %v4690_v31 = vpop.permute.xlu1 %4689 }
 0xc4f   : > { %v4695_v52 = vmul.f32 %v4690_v31, %v8053_v22  ;;  %v4754_v22 = vpop.permute.xlu0 %4753 }
 0xc50   : > { %v4759_v24 = vmul.f32 %v4754_v22, %v8083_v54 }
 0xc51   : > { %v4699_v55 = vadd.f32 %v4695_v52, %v8042_v61 }
 0xc52   : > { %v4712_v38 = vpop.permute.xlu1 %4711 }
 0xc53   : > { %v4725_v39 = vmul.f32 %v4712_v38, %v8005_v16  ;;  %v4694_v16 = vmul.f32 %v4685_v45, %v8021_v21 }
 0xc55   : > { %v4729_v51 = vadd.f32 %v4725_v39, %v4697_v17 }
 0xc56   : > { %v4717_v26 = vpop.permute.xlu1 %4716 }
 0xc57   : > { %v4761_v42 = vadd.f32 %v4757_v48, %v4729_v51  ;;  %v4726_v23 = vmul.f32 %v4717_v26, %v8026_v34 }
 0xc59   : > { %4765 = vst.msk [vmem:[%s6231_s23 + $0x8] sm:$0xff] %vm1376_vm2, %v4761_v42 }
 0xc5a   : > { %v4739_v6 = vpop.permute.xlu1 %4738 }
 0xc5b   : > { %v4756_v5 = vmul.f32 %v4739_v6, %v8037_v27  ;;  %v4698_v27 = vadd.f32 %v4694_v16, %v8010_v46 }
 0xc5d   : > { %v4760_v53 = vadd.f32 %v4756_v5, %v4728_v15  ;;  %v4730_v14 = vadd.f32 %v4726_v23, %v4698_v27 }
 0xc5e   : > { %v4722_v8 = vpop.permute.xlu1 %4721 }
 0xc5f   : > { %4764 = vst.msk [vmem:[%s6231_s23] sm:$0xff] %vm1376_vm2, %v4760_v53  ;;  %v4727_v4 = vmul.f32 %v4722_v8, %v8058_v56 }
 0xc61   : > { %v4731_v19 = vadd.f32 %v4727_v4, %v4699_v55 }
 0xc62   : > { %v4749_v21 = vpop.permute.xlu1 %4748 }
 0xc63   : > { %v4758_v62 = vmul.f32 %v4749_v21, %v8074_v9  ;;  %v4763_v34 = vadd.f32 %v4759_v24, %v4731_v19 }
 0xc65   : > { %v4762_v1 = vadd.f32 %v4758_v62, %v4730_v14  ;;  %4767 = vst.msk [vmem:[%s6231_s23 + $0x18] sm:$0xff] %vm1376_vm2, %v4763_v34 }
 0xc67   : > { %4766 = vst.msk [vmem:[%s6231_s23 + $0x10] sm:$0xff] %vm1376_vm2, %v4762_v1 }
 0xc68 PF: > { %s8218_s6 = sld [smem:[#allocation9_spill]] }
 0xc69   : > { %s8219_s29 = sld [smem:[#allocation5_spill]] }
 0xc6a   : > { %s8220_s30 = sld [smem:[#allocation12_spill]] }
 0xc6b   : > { %s8221_s4 = sld [smem:[#allocation7_spill]] }
 0xc6c   : > { %s8222_s0 = sld [smem:[#allocation8_spill]] }
 0xc6d   : > { %s8223_s23 = sld [smem:[#allocation10_spill]] }
 0xc6e   : > { %s34_s5 = sadd.s32 1, %s8218_s6   ;;  %s8224_s1 = sld [smem:[#allocation11_spill]] }
 0xc6f   : > { %p31_p0 = scmp.ge.s32.totalorder %s34_s5, 6  }
 0xc71   :  { %33 = sbr.rel (!%p31_p0) target bundleno = 19 (0x13), region = 231 }

</bundles_post_ra>
